<compile_context>
chip_gen: v7x
topology: tpu7x:2x2x1
jax: 0.10.0
libtpu: 0.0.40
codegen_flags: <defaults>
</compile_context>

<pallas_src>
import jax
import jax.numpy as jnp
from jax.experimental import pallas as pl
from jax.experimental.pallas import tpu as pltpu


def _heads_partials_kernel(logits_ref, label_ref, out_ref):
    """One row-tile: fused elementwise math + three partial-sum reductions."""
    logits = logits_ref[...]                          # (TB, D) f32
    label = label_ref[...].astype(jnp.float32)        # (TB, D) int8 0/1 -> f32

    # loss():  label * logits^2 + (1 - label) * max(1 - logits, 0)^2
    hinge = jnp.maximum(1.0 - logits, 0.0)
    loss_elem = label * logits * logits + (1.0 - label) * hinge * hinge

    # mse_loss():  (logits - label)^2
    diff = logits - label

    # accuracy():  predicted = (logits < 0.5); correct = (predicted == label)
    pred = jnp.where(logits < 0.5, 1.0, 0.0)
    correct = jnp.where(pred == label, 1.0, 0.0)

    loss_s = jnp.sum(loss_elem)
    mse_s = jnp.sum(diff * diff)
    acc_s = jnp.sum(correct)

    # Pack the three partials into a lane-dense (8, 128) slab:
    # lane 0 = loss, lane 1 = mse, lane 2 = accuracy (wrapper reads row 0).
    lane = jax.lax.broadcasted_iota(jnp.int32, (8, 128), 1)
    packed = jnp.where(lane == 0, loss_s,
             jnp.where(lane == 1, mse_s,
             jnp.where(lane == 2, acc_s, 0.0)))
    out_ref[0] = packed


def _choose_row_tile(B, D):
    """~1 MiB of f32 logits per block, capped at 512 rows, multiple of 32
    (int8 min-tile), and the tile must divide B; fallback: one full block."""
    tb = max(32, min(512, (1 << 20) // max(1, D * 4)))
    tb = (tb // 32) * 32
    while tb >= 32 and B % tb:
        tb -= 32
    if tb >= 32 and B % tb == 0:
        return tb
    return B  # single full-array block (shape == full dims is always legal)


def model_heads(logits, label):
    """Returns (loss, mse_loss, accuracy) as f32 scalars.

    Matches Model.loss / Model.mse_loss / Model.accuracy from the reference
    PyTorch module (batch_size = label.shape[0]).
    """
    B, D = logits.shape
    tb = _choose_row_tile(B, D)
    nb = B // tb
    # NOTE: very wide D would additionally want lane-axis blocking; for the
    # shapes this module sees, one full-D block per row-tile is sufficient.

    partials = pl.pallas_call(
        _heads_partials_kernel,
        out_shape=jax.ShapeDtypeStruct((nb, 8, 128), jnp.float32),
        grid=(nb,),
        in_specs=[
            pl.BlockSpec((tb, D), lambda i: (i, 0)),
            pl.BlockSpec((tb, D), lambda i: (i, 0)),
        ],
        out_specs=pl.BlockSpec((1, 8, 128), lambda i: (i, 0, 0)),
        compiler_params=pltpu.CompilerParams(
            dimension_semantics=("parallel",)),
    )(logits, label)

    p = partials[:, 0, :]                 # (nb, 128) -- lanes 0..2 used
    inv_n = 1.0 / float(B * D)
    loss = jnp.sum(p[:, 0]) * (1.0 / (2.0 * float(B)))   # sum / B / 2
    mse = jnp.sum(p[:, 1]) * inv_n                        # mean over all elems
    acc = jnp.sum(p[:, 2]) * inv_n                        # mean over all elems
    return loss, mse, acc


def _reference(logits, label):
    label_f = label.astype(jnp.float32)
    B = logits.shape[0]
    tmp = label_f * logits ** 2
    maxi = jnp.maximum(1.0 - logits, 0.0)
    tmp2 = (1.0 - label_f) * maxi ** 2
    loss = jnp.sum(tmp + tmp2) / B / 2.0
    mse = jnp.mean((logits - label_f) ** 2)
    pred = (logits < 0.5).astype(jnp.int32)
    acc = jnp.mean((pred == label).astype(jnp.float32))
    return loss, mse, acc


if __name__ == "__main__":
    # TODO(synk): Model.forward() raises NotImplementedError and
    # sentence_encoder is an external nn.DataParallel sub-module; only the
    # loss / mse_loss / accuracy heads are ported to Pallas.
    key = jax.random.PRNGKey(0)
    k1, k2 = jax.random.split(key)
    B, D = 2048, 128   # B = batch rows (N*Q style), D = per-example logit width
    logits = jax.random.uniform(k1, (B, D), dtype=jnp.float32,
                                minval=-0.5, maxval=1.5)
    label = jax.random.bernoulli(k2, 0.5, (B, D)).astype(jnp.int8)

    loss, mse, acc = model_heads(logits, label)
    jax.block_until_ready((loss, mse, acc))

    ref_loss, ref_mse, ref_acc = _reference(logits, label)
    assert jnp.allclose(loss, ref_loss, rtol=1e-4, atol=1e-4), (loss, ref_loss)
    assert jnp.allclose(mse, ref_mse, rtol=1e-4, atol=1e-4), (mse, ref_mse)
    assert jnp.allclose(acc, ref_acc, rtol=1e-4, atol=1e-4), (acc, ref_acc)

    print("KERNEL_OK")
</pallas_src>

<mosaic_0001>
module attributes {stable_mosaic.version = 11 : i64} {
  func.func @_heads_partials_kernel(%arg0: i32, %arg1: memref<512x128xf32, #tpu.memory_space<vmem>>, %arg2: memref<512x128xi8, #tpu.memory_space<vmem>>, %arg3: memref<1x8x128xf32, #tpu.memory_space<vmem>>) attributes {dimension_semantics = [#tpu.dimension_semantics<parallel>], iteration_bounds = array<i64: 4>, scalar_prefetch = 0 : i64, scratch_operands = 0 : i64, tpu.core_type = #tpu.core_type<tc>, window_params = [{transform_indices = @transform_0, window_bounds = array<i64: 512, 128>}, {transform_indices = @transform_1, window_bounds = array<i64: 512, 128>}, {transform_indices = @transform_2, window_bounds = array<i64: 1, 8, 128>}]} {
    %c0 = arith.constant 0 : index
    %c0_0 = arith.constant 0 : index
    %0 = vector.load %arg1[%c0, %c0_0] : memref<512x128xf32, #tpu.memory_space<vmem>>, vector<512x128xf32>
    %c0_1 = arith.constant 0 : index
    %c0_2 = arith.constant 0 : index
    %1 = vector.load %arg2[%c0_1, %c0_2] : memref<512x128xi8, #tpu.memory_space<vmem>>, vector<512x128xi8>
    %2 = arith.sitofp %1 : vector<512x128xi8> to vector<512x128xf32>
    %cst = arith.constant 1.000000e+00 : f32
    %3 = vector.broadcast %cst : f32 to vector<512x128xf32>
    %4 = arith.subf %3, %0 : vector<512x128xf32>
    %cst_3 = arith.constant 0.000000e+00 : f32
    %5 = vector.broadcast %cst_3 : f32 to vector<512x128xf32>
    %6 = arith.maximumf %4, %5 : vector<512x128xf32>
    %7 = arith.mulf %2, %0 : vector<512x128xf32>
    %8 = arith.mulf %7, %0 : vector<512x128xf32>
    %cst_4 = arith.constant 1.000000e+00 : f32
    %9 = vector.broadcast %cst_4 : f32 to vector<512x128xf32>
    %10 = arith.subf %9, %2 : vector<512x128xf32>
    %11 = arith.mulf %10, %6 : vector<512x128xf32>
    %12 = arith.mulf %11, %6 : vector<512x128xf32>
    %13 = arith.addf %8, %12 : vector<512x128xf32>
    %14 = arith.subf %0, %2 : vector<512x128xf32>
    %cst_5 = arith.constant 5.000000e-01 : f32
    %15 = vector.broadcast %cst_5 : f32 to vector<512x128xf32>
    %16 = arith.cmpf olt, %0, %15 : vector<512x128xf32>
    %cst_6 = arith.constant 1.000000e+00 : f32
    %cst_7 = arith.constant 0.000000e+00 : f32
    %17 = vector.broadcast %cst_6 : f32 to vector<512x128xf32>
    %18 = vector.broadcast %cst_7 : f32 to vector<512x128xf32>
    %19 = arith.select %16, %17, %18 : vector<512x128xi1>, vector<512x128xf32>
    %20 = arith.cmpf oeq, %19, %2 : vector<512x128xf32>
    %cst_8 = arith.constant 1.000000e+00 : f32
    %cst_9 = arith.constant 0.000000e+00 : f32
    %21 = vector.broadcast %cst_8 : f32 to vector<512x128xf32>
    %22 = vector.broadcast %cst_9 : f32 to vector<512x128xf32>
    %23 = arith.select %20, %21, %22 : vector<512x128xi1>, vector<512x128xf32>
    %24 = vector.shape_cast %13 : vector<512x128xf32> to vector<1x512x128xf32>
    %cst_10 = arith.constant dense<0.000000e+00> : vector<1xf32>
    %25 = vector.multi_reduction <add>, %24, %cst_10 [1, 2] : vector<1x512x128xf32> to vector<1xf32>
    %26 = vector.shape_cast %25 : vector<1xf32> to vector<1x1x1xf32>
    %27 = vector.extract %26[0, 0, 0] : f32 from vector<1x1x1xf32>
    %28 = arith.mulf %14, %14 : vector<512x128xf32>
    %29 = vector.shape_cast %28 : vector<512x128xf32> to vector<1x512x128xf32>
    %cst_11 = arith.constant dense<0.000000e+00> : vector<1xf32>
    %30 = vector.multi_reduction <add>, %29, %cst_11 [1, 2] : vector<1x512x128xf32> to vector<1xf32>
    %31 = vector.shape_cast %30 : vector<1xf32> to vector<1x1x1xf32>
    %32 = vector.extract %31[0, 0, 0] : f32 from vector<1x1x1xf32>
    %33 = vector.shape_cast %23 : vector<512x128xf32> to vector<1x512x128xf32>
    %cst_12 = arith.constant dense<0.000000e+00> : vector<1xf32>
    %34 = vector.multi_reduction <add>, %33, %cst_12 [1, 2] : vector<1x512x128xf32> to vector<1xf32>
    %35 = vector.shape_cast %34 : vector<1xf32> to vector<1x1x1xf32>
    %36 = vector.extract %35[0, 0, 0] : f32 from vector<1x1x1xf32>
    %37 = tpu.iota {dimensions = array<i32: 1>} : vector<8x128xi32>
    %c0_i32 = arith.constant 0 : i32
    %38 = vector.broadcast %c0_i32 : i32 to vector<8x128xi32>
    %39 = arith.cmpi eq, %37, %38 : vector<8x128xi32>
    %c1_i32 = arith.constant 1 : i32
    %40 = vector.broadcast %c1_i32 : i32 to vector<8x128xi32>
    %41 = arith.cmpi eq, %37, %40 : vector<8x128xi32>
    %c2_i32 = arith.constant 2 : i32
    %42 = vector.broadcast %c2_i32 : i32 to vector<8x128xi32>
    %43 = arith.cmpi eq, %37, %42 : vector<8x128xi32>
    %cst_13 = arith.constant 0.000000e+00 : f32
    %44 = vector.broadcast %36 : f32 to vector<8x128xf32>
    %45 = vector.broadcast %cst_13 : f32 to vector<8x128xf32>
    %46 = arith.select %43, %44, %45 : vector<8x128xi1>, vector<8x128xf32>
    %47 = vector.broadcast %32 : f32 to vector<8x128xf32>
    %48 = arith.select %41, %47, %46 : vector<8x128xi1>, vector<8x128xf32>
    %49 = vector.broadcast %27 : f32 to vector<8x128xf32>
    %50 = arith.select %39, %49, %48 : vector<8x128xi1>, vector<8x128xf32>
    %c0_14 = arith.constant 0 : index
    %c0_15 = arith.constant 0 : index
    %c0_16 = arith.constant 0 : index
    %51 = vector.load %arg3[%c0_14, %c0_15, %c0_16] : memref<1x8x128xf32, #tpu.memory_space<vmem>>, vector<1x8x128xf32>
    %52 = vector.shape_cast %51 : vector<1x8x128xf32> to vector<8x128xf32>
    %53 = vector.shape_cast %50 : vector<8x128xf32> to vector<1x8x128xf32>
    tpu.vector_store %arg3[%c0_14, %c0_15, %c0_16], %53 {strides = array<i32>} : memref<1x8x128xf32, #tpu.memory_space<vmem>>, vector<1x8x128xf32>,
    return
  }
  func.func @transform_0(%arg0: i32) -> (i32, i32) {
    %c0_i32 = arith.constant 0 : i32
    %c0_i32_0 = arith.constant 0 : i32
    return %arg0, %c0_i32 : i32, i32
  }
  func.func @transform_1(%arg0: i32) -> (i32, i32) {
    %c0_i32 = arith.constant 0 : i32
    %c0_i32_0 = arith.constant 0 : i32
    return %arg0, %c0_i32 : i32, i32
  }
  func.func @transform_2(%arg0: i32) -> (i32, i32, i32) {
    %c0_i32 = arith.constant 0 : i32
    %c0_i32_0 = arith.constant 0 : i32
    %c0_i32_1 = arith.constant 0 : i32
    return %arg0, %c0_i32, %c0_i32_0 : i32, i32, i32
  }
}

</mosaic_0001>

<bundles_post_ra>
// kernel: tpu_custom_call.1
= control target key start
LH: loop header
LB: loop body
LE: loop exit
PB: predicated region body
PF: predicated region fallthrough
CT: control target
= control target key end

     0   :  { %7 = vsyncpa [#allocation3], 0  ;;  %s4736_s0 = inlined_call_operand.hbm [shape: f32[2048,128], index: 0, kind: input, shape index: {}]   ;;  %s4737_s1 = inlined_call_operand.hbm [shape: s8[2048,128], index: 1, kind: input, shape index: {}]   ;;  %s4738_s2 = inlined_call_operand.hbm [shape: f32[4,8,128], index: 2, kind: output, shape index: {}]  }
   0x1   :  { %9 = vsyncpa [#allocation3 + $0x1], 0 }
   0x2   :  { %10 = vsyncpa [#allocation6], 0 }
   0x3   :  { %12 = vsyncpa [#allocation6 + $0x1], 0 }
   0x4   :  { %13 = vsyncpa [#allocation4], 0 }
   0x5   :  { %15 = vsyncpa [#allocation4 + $0x1], 0  ;;  %s1939_s9 = smov 0   ;;  %s1941_s10 = smov 0  }
   0x6   :  { %s1943_s11 = smov 0   ;;  %s1945_s12 = smov 0  }
   0x7 LB: > { %s1960_s13 = sadd.s32 4294967295, %s1916_s12   ;;  %s1643_s14 = sadd.s32 4294967294, %s1916_s12   ;;  %s1916_s12 = sphi %s1945_s12, %s6068_s12   ;;  %s1912_s11 = sphi %s1943_s11, %s6067_s11   ;;  %s1908_s10 = sphi %s1941_s10, %s6066_s10   ;;  %s1904_s9 = sphi %s1939_s9, %s6065_s9  }
   0x8   : > { %s1964_s15 = sadd.s32 1, %s1916_s12   ;;  %s28_s16 = sadd.s32 1, %s1912_s11 }
   0x9   : > { %s25_s17 = ssub.s32 %s1916_s12, %s1964_s15  ;;  %p35_p0 = scmp.ne.s32.totalorder %s1912_s11, %s1908_s10 }
   0xa   : > { %p26_p1 = scmp.eq.s32.totalorder %s25_s17, 0  ;;  %p36_p2 = scmp.eq.s32.totalorder %s1916_s12, 0 }
   0xb   : > { %p41_p3 = scmp.ne.s32.totalorder %s1908_s10, %s1904_s9  ;;  %p42_p4 = scmp.eq.s32.totalorder %s1960_s13, 0 }
   0xc   : > { %s1976_s18 = scalar_select %p26_p1, %s1912_s11, %s28_s16  }
   0xd   : > { %p1978_p5 = por %p36_p2, %p35_p0  ;;  %p1982_p6 = por %p42_p4, %p41_p3 }
   0xe   : > { %p91_p7 = scmp.eq.s32.totalorder %s1960_s13, 3  ;;  %p97_p8 = scmp.eq.s32.totalorder %s1643_s14, 3 }
   0xf   : > { %s5146_s20 = scalar_select %p1982_p6, 1, 0 }
  0x10   : > { %p1685_p9 = scmp.lt.s32.totalorder %s1916_s12, 4  ;;  %p1988_p10 = por %p91_p7, %p35_p0 }
  0x11   : > { %p1992_p11 = por %p97_p8, %p41_p3  ;;  %s1997_s23 = sand.u32 1, %s1912_s11  }
  0x12   : > { %s5147_s21 = scalar_select %p1988_p10, 1, 0 }
  0x13   : > { %s5148_s22 = scalar_select %p1992_p11, 1, 0 }
  0x14   : > { %s1660_s24 = sshll.u32 %s1916_s12, 13  ;;  %s1646_s25 = sshll.u32 %s1997_s23, 9 }
  0x15   : > { %s2004_s28 = scalar_lea.hbm %s4736_s0, %s1660_s24  ;;  %s121_s29 = scalar_lea.vmem [#allocation2], %s1646_s25 }
  0x16   : > { %s128_s30 = sshll.u32 %s121_s29, 4  ;;  %p2008_p12 = pnand %p1685_p9, %p1978_p5  ;;  %s2012_s30 = int_to_ptr.vmem [resolvable:$true] %s128_s30 }
  0x17   : > { %s118_s4 = scalar_lea.sflag [#allocation3], %s1997_s23  ;;  %s1786_s5 = scalar_lea.hbm %s2004_s28, 8192 }
  0x18   : > { %p1787_p13 = scmp.ne.s32.totalorder %s2004_s28, %s1786_s5  ;;  %p1788_p0 = pneg %p2008_p12 }
  0x19   : > { %s1791_s8 = scalar_lea.hbm %s4736_s0, 32768  ;;  %p1792_p3 = scmp.lt.u32.totalorder %s2004_s28, %s4736_s0 }
  0x1a   : > { %p1789_p1 = pnand %p1788_p0, %p1787_p13  ;;  %p1793_p4 = scmp.lt.u32.totalorder %s1791_s8, %s1786_s5 }
  0x1b   : > { %p1795_p7 = scmp.lt.u32.totalorder %s1786_s5, %s2004_s28 }
  0x1c   : > { %p1790_p2 = pneg %p1789_p1  ;;  %p1794_p5 = por %p1793_p4, %p1792_p3 }
  0x1e   : > { %p1796_p8 = por %p1795_p7, %p1794_p5 }
  0x20   : > { %p1797_p9 = pnand %p1796_p8, %p1790_p2 }
  0x22   : > { %1800 = shalt.err (!%p1797_p9)
}
  0x23   : > { %s1801_s17 = scalar_lea.vmem %s2012_s30, 8192  ;;  %s1918_s19 = smov [#allocation2]  }
  0x24   : > { %p1802_p13 = scmp.ne.s32.totalorder %s2012_s30, %s1801_s17  ;;  %s1806_s24 = sshll.u32 %s1918_s19, 4  ;;  %s1807_s24 = int_to_ptr.vmem [resolvable:$false] %s1806_s24 }
  0x25   : > { %s1808_s25 = scalar_lea.vmem %s1807_s24, 16384  ;;  %p1809_p10 = scmp.lt.s32.totalorder %s2012_s30, %s1807_s24 }
  0x26   : > { %p1804_p1 = pnand %p1802_p13, %p1788_p0  ;;  %p1810_p3 = scmp.lt.s32.totalorder %s1808_s25, %s1801_s17 }
  0x28   : > { %p1805_p11 = pneg %p1804_p1  ;;  %p1811_p4 = por %p1810_p3, %p1809_p10 }
  0x2a   : > { %p1812_p5 = pnand %p1811_p4, %p1805_p11 }
  0x2c   : > { %1815 = shalt.err (!%p1812_p5)
}
  0x2d   : > { %s1919_s26 = smov 128   ;;  %s1920_s27 = smov 8  }
  0x2e   : > { %1677 = dma.hbm_to_vmem [thread:$0]  (!%p2008_p12), %s2004_s28, 8192, %s2012_s30, %s118_s4, %s1919_s26, %s1919_s26, %s1920_s27  }
  0x2f   : > { %p1652_p10 = scmp.ge.s32.totalorder %s1916_s12, 1  ;;  %p157_p11 = scmp.lt.s32.totalorder %s1916_s12, 5 }
  0x30   : > { %s1649_s29 = sshll.u32 %s1997_s23, 7  ;;  %s1661_s6 = sshll.u32 %s1916_s12, 11 }
  0x31   : > { %p2048_p2 = pnand %p1652_p10, %p157_p11  ;;  %s142_s7 = scalar_lea.vmem [#allocation5], %s1649_s29 }
  0x32   : > { %s149_s8 = sshll.u32 %s142_s7, 4  ;;  %s2056_s17 = scalar_lea.hbm %s4737_s1, %s1661_s6  ;;  %s2058_s8 = int_to_ptr.vmem [resolvable:$true] %s149_s8 }
  0x33   : > { %s139_s28 = scalar_lea.sflag [#allocation6], %s1997_s23  ;;  %s1816_s30 = scalar_lea.hbm %s2056_s17, 2048 }
  0x34   : > { %p1817_p7 = scmp.ne.s32.totalorder %s2056_s17, %s1816_s30  ;;  %s1821_s24 = scalar_lea.hbm %s4737_s1, 8192 }
  0x35   : > { %p1822_p13 = scmp.lt.u32.totalorder %s2056_s17, %s4737_s1  ;;  %p1823_p1 = scmp.lt.u32.totalorder %s1821_s24, %s1816_s30 }
  0x36   : > { %p1819_p8 = pnand %p1817_p7, %p1788_p0  ;;  %p1825_p4 = scmp.lt.u32.totalorder %s1816_s30, %s2056_s17 }
  0x37   : > { %p1824_p3 = por %p1823_p1, %p1822_p13 }
  0x38   : > { %p1820_p9 = pneg %p1819_p8 }
  0x39   : > { %p1826_p5 = por %p1825_p4, %p1824_p3 }
  0x3b   : > { %p1827_p10 = pnand %p1826_p5, %p1820_p9 }
  0x3d   : > { %1830 = shalt.err (!%p1827_p10)
}
  0x3e   : > { %s1831_s6 = scalar_lea.vmem %s2058_s8, 2048  ;;  %s1921_s7 = smov [#allocation5]  }
  0x3f   : > { %p1832_p11 = scmp.ne.s32.totalorder %s2058_s8, %s1831_s6  ;;  %s1836_s14 = sshll.u32 %s1921_s7, 4  ;;  %s1837_s14 = int_to_ptr.vmem [resolvable:$false] %s1836_s14 }
  0x40   : > { %s1838_s16 = scalar_lea.vmem %s1837_s14, 4096  ;;  %p1839_p6 = scmp.lt.s32.totalorder %s2058_s8, %s1837_s14 }
  0x41   : > { %p1834_p7 = pnand %p1832_p11, %p1788_p0  ;;  %p1840_p13 = scmp.lt.s32.totalorder %s1838_s16, %s1831_s6 }
  0x43   : > { %p1835_p8 = pneg %p1834_p7  ;;  %p1841_p1 = por %p1840_p13, %p1839_p6 }
  0x45   : > { %p1842_p3 = pnand %p1841_p1, %p1835_p8 }
  0x47   : > { %1845 = shalt.err (!%p1842_p3)
}
  0x48   : > { %1680 = dma.hbm_to_vmem [thread:$0]  (!%p2008_p12), %s2056_s17, 2048, %s2058_s8, %s139_s28, %s1919_s26, %s1919_s26, %s1920_s27  }
  0x49   : > { %161 = sbr.rel (%p2048_p2) target bundleno = 699 (0x2bb), region = 28 }
  0x50   : > { %s2092_s30 = sand.u32 1, %s1908_s10   ;;  %p5151_p6 = scmp.ne.s32.totalorder %s5146_s20, 0 }
  0x51   : > { %s1653_s4 = sshll.u32 %s2092_s30, 9  ;;  %s164_s19 = scalar_lea.sflag [#allocation3], %s2092_s30 }
  0x52   : > { %s2096_s3 = scalar_lea.vmem [#allocation2], %s1653_s4 }
  0x53   : > { %1891 = dma.done.wait (%p5151_p6), %s164_s19, 8192  }
  0x54   : > { %1893 = vsyncadd (%p5151_p6), %s164_s19, 4294959104  ;;  %s1654_s23 = sshll.u32 %s2092_s30, 7  ;;  %s173_s26 = scalar_lea.sflag [#allocation6], %s2092_s30 }
  0x55   : > { %s2104_s27 = scalar_lea.vmem [#allocation5], %s1654_s23 }
  0x56   : > { %1895 = dma.done.wait (%p5151_p6), %s173_s26, 2048  }
  0x57   : > { %1897 = vsyncadd (%p5151_p6), %s173_s26, 4294965248  ;;  %v268_v0 = vld [vmem:[%s2104_s27] sm:$0xff]  ;;  %v2115_v2 = vld [vmem:[%s2096_s3 + $0x8] sm:$0xff]  ;;  %v4757_v19 = vmov 0.0   ;;  %s1655_s20 = sshll.u32 %s2092_s30, 3  ;;  %s1657_s17 = sshll.u32 %s1960_s13, 7 }
  0x58   : > { %v2112_v1 = vld [vmem:[%s2096_s3] sm:$0xff]  ;;  %5153 = vst [vmem:[#allocation12_spill] sm:$0xff] %v2115_v2  ;;  %v2118_v3 = vld [vmem:[%s2096_s3 + $0x10] sm:$0xff]  ;;  %v2121_v4 = vld [vmem:[%s2104_s27 + $0x8] sm:$0xff]  ;;  %v284_v8 = vunpack.c.0.s8 %v268_v0  ;;  %v285_v9 = vunpack.c.1.s8 %v268_v0  ;;  %vm989_vm1 = vcmp.lt.f32.partialorder %v2115_v2, 0.5  ;;  %v286_v12 = vunpack.c.2.s8 %v268_v0  ;;  %s201_s24 = scalar_lea.vmem [#allocation7], %s1655_s20  ;;  %s4693_s7 = scalar_lea.hbm %s4738_s2, %s1657_s17 }
  0x59   : > { %5152 = vst [vmem:[#allocation11_spill] sm:$0xff] %v2112_v1  ;;  %5154 = vst [vmem:[#allocation13_spill] sm:$0xff] %v2118_v3  ;;  %v2124_v5 = vld [vmem:[%s2096_s3 + $0x18] sm:$0xff]  ;;  %v2127_v6 = vld [vmem:[%s2096_s3 + $0x20] sm:$0xff]  ;;  %vm988_vm0 = vcmp.lt.f32.partialorder %v2112_v1, 0.5  ;;  %vm990_vm2 = vcmp.lt.f32.partialorder %v2118_v3, 0.5  ;;  %v287_v13 = vunpack.c.3.s8 %v268_v0  ;;  %v288_v14 = vunpack.c.0.s8 %v2121_v4 }
  0x5a   : > { %5155 = vst [vmem:[#allocation14_spill] sm:$0xff] %v2124_v5  ;;  %5156 = vst [vmem:[#allocation15_spill] sm:$0xff] %v2127_v6  ;;  %v2130_v7 = vld [vmem:[%s2096_s3 + $0x28] sm:$0xff]  ;;  %v2135_v10 = vld [vmem:[%s2096_s3 + $0x30] sm:$0xff]  ;;  %vm991_vm3 = vcmp.lt.f32.partialorder %v2124_v5, 0.5  ;;  %vm992_vm4 = vcmp.lt.f32.partialorder %v2127_v6, 0.5  ;;  %v289_v17 = vunpack.c.1.s8 %v2121_v4  ;;  %v290_v18 = vunpack.c.2.s8 %v2121_v4 }
  0x5b   : > { %5157 = vst [vmem:[#allocation16_spill] sm:$0xff] %v2130_v7  ;;  %5158 = vst [vmem:[#allocation17_spill] sm:$0xff] %v2135_v10  ;;  %v2138_v11 = vld [vmem:[%s2104_s27 + $0x10] sm:$0xff]  ;;  %vm993_vm5 = vcmp.lt.f32.partialorder %v2130_v7, 0.5  ;;  %vm994_vm6 = vcmp.lt.f32.partialorder %v2135_v10, 0.5  ;;  %v2147_v15 = vld [vmem:[%s2096_s3 + $0x38] sm:$0xff]  ;;  %v291_v22 = vunpack.c.3.s8 %v2121_v4  ;;  %v2162_v24 = vcvt.s32.f32 %v284_v8 }
  0x5c   : > { %5159 = vst [vmem:[#allocation18_spill] sm:$0xff] %v2147_v15  ;;  %v2150_v16 = vld [vmem:[%s2104_s27 + $0x18] sm:$0xff]  ;;  %v1052_v20 = vsel %vm988_vm0, 1.0, %v4757_v19  ;;  %v1053_v21 = vsel %vm989_vm1, 1.0, %v4757_v19  ;;  %v292_v23 = vunpack.c.0.s8 %v2138_v11  ;;  %v2164_v25 = vcvt.s32.f32 %v285_v9  ;;  %v2168_v26 = vld [vmem:[%s2096_s3 + $0x40] sm:$0xff]  ;;  %v2186_v34 = vld [vmem:[%s2096_s3 + $0x48] sm:$0xff] }
  0x5d   : > { %5160 = vst [vmem:[#allocation19_spill] sm:$0xff] %v2162_v24  ;;  %vm995_vm7 = vcmp.lt.f32.partialorder %v2147_v15, 0.5  ;;  %5162 = vst [vmem:[#allocation21_spill] sm:$0xff] %v2168_v26  ;;  %v2171_v27 = vld [vmem:[%s2104_s27 + $0x20] sm:$0xff]  ;;  %v293_v28 = vunpack.c.1.s8 %v2138_v11  ;;  %v294_v29 = vunpack.c.2.s8 %v2138_v11  ;;  %v295_v30 = vunpack.c.3.s8 %v2138_v11  ;;  %v2189_v35 = vld [vmem:[%s2104_s27 + $0x28] sm:$0xff]  ;;  %s1550_s25 = sshll.u32 %s201_s24, 4  ;;  %s4695_s25 = int_to_ptr.vmem [resolvable:$true] %s1550_s25 }
  0x5e   : > { %5161 = vst [vmem:[#allocation20_spill] sm:$0xff] %v2164_v25  ;;  %v1054_v31 = vsel %vm990_vm2, 1.0, %v4757_v19  ;;  %v296_v32 = vunpack.c.0.s8 %v2150_v16  ;;  %v2180_v33 = vcvt.s32.f32 %v286_v12  ;;  %vm996_vm8 = vcmp.lt.f32.partialorder %v2168_v26, 0.5  ;;  %5164 = vst [vmem:[#allocation23_spill] sm:$0xff] %v2186_v34  ;;  %v2204_v43 = vld [vmem:[%s2096_s3 + $0x50] sm:$0xff]  ;;  %v2226_v52 = vld [vmem:[%s2096_s3 + $0x58] sm:$0xff] }
  0x5f   : > { %vm1116_vm9 = vcmp.eq.f32.partialorder %v1052_v20, %v2162_v24  ;;  %vm1117_vm10 = vcmp.eq.f32.partialorder %v1053_v21, %v2164_v25  ;;  %v297_v36 = vunpack.c.1.s8 %v2150_v16  ;;  %v298_v37 = vunpack.c.2.s8 %v2150_v16  ;;  %5166 = vst [vmem:[#allocation25_spill] sm:$0xff] %v2204_v43  ;;  %v2217_v48 = vld [vmem:[%s2104_s27 + $0x30] sm:$0xff]  ;;  %5168 = vst [vmem:[#allocation27_spill] sm:$0xff] %v2226_v52  ;;  %v2237_v57 = vld [vmem:[%s2104_s27 + $0x38] sm:$0xff]  ;;  %s1537_s13 = scalar_lea.sflag [#allocation4], %s2092_s30  ;;  %s1846_s14 = scalar_lea.vmem %s4695_s25, 128 }
  0x60   : > { %5163 = vst [vmem:[#allocation22_spill] sm:$0xff] %v2180_v33  ;;  %v299_v38 = vunpack.c.3.s8 %v2150_v16  ;;  %v1055_v39 = vsel %vm991_vm3, 1.0, %v4757_v19  ;;  %v2199_v42 = vcvt.s32.f32 %v287_v13  ;;  %vm997_vm11 = vcmp.lt.f32.partialorder %v2186_v34, 0.5  ;;  %v2245_v61 = vld [vmem:[%s2096_s3 + $0x60] sm:$0xff]  ;;  %v2314_v20 = vld [vmem:[%s2104_s27 + $0x50] sm:$0xff]  ;;  %v2395_v53 = vld [vmem:[%s2104_s27 + $0x68] sm:$0xff]  ;;  %p1847_p12 = scmp.ne.s32.totalorder %s4695_s25, %s1846_s14 }
  0x61   : > { %vm1118_vm12 = vcmp.eq.f32.partialorder %v1054_v31, %v2180_v33  ;;  %v1056_v45 = vsel %vm992_vm4, 1.0, %v4757_v19  ;;  %v1180_v46 = vsel %vm1116_vm9, 1.0, %v4757_v19  ;;  %v1181_v47 = vsel %vm1117_vm10, 1.0, %v4757_v19  ;;  %5170 = vst [vmem:[#allocation29_spill] sm:$0xff] %v2245_v61  ;;  %v2363_v62 = vld [vmem:[%s2096_s3 + $0x90] sm:$0xff]  ;;  %v2780_v3 = vld [vmem:[%s2096_s3 + $0x178] sm:$0xff] }
  0x62   : > { %5165 = vst [vmem:[#allocation24_spill] sm:$0xff] %v2199_v42  ;;  %v2221_v51 = vcvt.s32.f32 %v288_v14  ;;  %vm998_vm13 = vcmp.lt.f32.partialorder %v2204_v43, 0.5  ;;  %vm1119_vm14 = vcmp.eq.f32.partialorder %v1055_v39, %v2199_v42  ;;  %v1057_v55 = vsel %vm993_vm5, 1.0, %v4757_v19  ;;  %v2261_v14 = vld [vmem:[%s2096_s3 + $0x68] sm:$0xff]  ;;  %5182 = vst [vmem:[#allocation41_spill] sm:$0xff] %v2363_v62  ;;  %v2444_v44 = vld [vmem:[%s2096_s3 + $0xb0] sm:$0xff] }
  0x63   : > { %v1182_v56 = vsel %vm1118_vm12, 1.0, %v4757_v19  ;;  %v2240_v59 = vcvt.s32.f32 %v289_v17  ;;  %vm999_vm15 = vcmp.lt.f32.partialorder %v2226_v52, 0.5  ;;  %v1452_v60 = vadd.f32 %v1181_v47, %v1180_v46  ;;  %5172 = vst [vmem:[#allocation31_spill] sm:$0xff] %v2261_v14  ;;  %v2264_v17 = vld [vmem:[%s2104_s27 + $0x40] sm:$0xff]  ;;  %5190 = vst [vmem:[#allocation49_spill] sm:$0xff] %v2444_v44  ;;  %v2737_v26 = vld [vmem:[%s2096_s3 + $0x150] sm:$0xff] }
  0x64   : > { %5167 = vst [vmem:[#allocation26_spill] sm:$0xff] %v2221_v51  ;;  %vm1120_vm0 = vcmp.eq.f32.partialorder %v1056_v45, %v2221_v51  ;;  %v1058_v0 = vsel %vm994_vm6, 1.0, %v4757_v19  ;;  %v1183_v8 = vsel %vm1119_vm14, 1.0, %v4757_v19  ;;  %v2256_v12 = vcvt.s32.f32 %v290_v18  ;;  %v2303_v45 = vld [vmem:[%s2096_s3 + $0x78] sm:$0xff]  ;;  %5274 = vst [vmem:[#allocation100_spill] sm:$0xff] %v2737_v26  ;;  %p6063_p0 = scmp.ne.s32.totalorder %s5147_s21, 0 }
  0x65   : > { %5169 = vst [vmem:[#allocation28_spill] sm:$0xff] %v2240_v59  ;;  %vm1000_vm1 = vcmp.lt.f32.partialorder %v2245_v61, 0.5  ;;  %vm1121_vm2 = vcmp.eq.f32.partialorder %v1057_v55, %v2240_v59  ;;  %v1453_v13 = vadd.f32 %v1452_v60, %v1182_v56  ;;  %v1059_v31 = vsel %vm995_vm7, 1.0, %v4757_v19  ;;  %v2282_v56 = vld [vmem:[%s2096_s3 + $0x70] sm:$0xff]  ;;  %5176 = vst [vmem:[#allocation35_spill] sm:$0xff] %v2303_v45  ;;  %v2324_v55 = vld [vmem:[%s2096_s3 + $0x80] sm:$0xff] }
  0x66   : > { %5171 = vst [vmem:[#allocation30_spill] sm:$0xff] %v2256_v12  ;;  %v1184_v18 = vsel %vm1120_vm0, 1.0, %v4757_v19  ;;  %v2277_v46 = vcvt.s32.f32 %v291_v22  ;;  %vm1001_vm3 = vcmp.lt.f32.partialorder %v2261_v14, 0.5  ;;  %vm1122_vm4 = vcmp.eq.f32.partialorder %v1058_v0, %v2256_v12  ;;  %5174 = vst [vmem:[#allocation33_spill] sm:$0xff] %v2282_v56  ;;  %v2293_v22 = vld [vmem:[%s2104_s27 + $0x48] sm:$0xff]  ;;  %v2345_v0 = vld [vmem:[%s2104_s27 + $0x58] sm:$0xff]  ;;  %p1848_p2 = pnand %p1847_p12, %p6063_p0 }
  0x67   : > { %v1454_v47 = vadd.f32 %v1453_v13, %v1183_v8  ;;  %v1060_v39 = vsel %vm996_vm8, 1.0, %v4757_v19  ;;  %v1185_v4 = vsel %vm1121_vm2, 1.0, %v4757_v19  ;;  %v2298_v8 = vcvt.s32.f32 %v292_v23  ;;  %5178 = vst [vmem:[#allocation37_spill] sm:$0xff] %v2324_v55  ;;  %v2342_v60 = vld [vmem:[%s2096_s3 + $0x88] sm:$0xff]  ;;  %5287 = vst [vmem:[#allocation109_spill] sm:$0xff] %v2780_v3  ;;  %s1923_s16 = smov [#allocation7]  }
  0x68   : > { %5173 = vst [vmem:[#allocation32_spill] sm:$0xff] %v2277_v46  ;;  %vm1002_vm5 = vcmp.lt.f32.partialorder %v2282_v56, 0.5  ;;  %vm1123_vm6 = vcmp.eq.f32.partialorder %v1059_v31, %v2277_v46  ;;  %v1061_v21 = vsel %vm997_vm11, 1.0, %v4757_v19  ;;  %v1186_v23 = vsel %vm1122_vm4, 1.0, %v4757_v19  ;;  %5180 = vst [vmem:[#allocation39_spill] sm:$0xff] %v2342_v60  ;;  %v2423_v31 = vld [vmem:[%s2096_s3 + $0xa8] sm:$0xff]  ;;  %p1849_p9 = pneg %p1848_p2 }
  0x69   : > { %5175 = vst [vmem:[#allocation34_spill] sm:$0xff] %v2298_v8  ;;  %v1455_v13 = vadd.f32 %v1454_v47, %v1184_v18  ;;  %v2319_v18 = vcvt.s32.f32 %v293_v28  ;;  %vm1003_vm7 = vcmp.lt.f32.partialorder %v2303_v45, 0.5  ;;  %vm1124_vm8 = vcmp.eq.f32.partialorder %v1060_v39, %v2298_v8  ;;  %v2384_v39 = vld [vmem:[%s2096_s3 + $0x98] sm:$0xff]  ;;  %5188 = vst [vmem:[#allocation47_spill] sm:$0xff] %v2423_v31  ;;  %v2694_v56 = vld [vmem:[%s2096_s3 + $0x128] sm:$0xff]  ;;  %s1850_s4 = sshll.u32 %s1923_s16, 4  ;;  %s1851_s4 = int_to_ptr.vmem [resolvable:$false] %s1850_s4 }
  0x6a   : > { %v1062_v9 = vsel %vm998_vm13, 1.0, %v4757_v19  ;;  %v1187_v28 = vsel %vm1123_vm6, 1.0, %v4757_v19  ;;  %vm1004_vm9 = vcmp.lt.f32.partialorder %v2324_v55, 0.5  ;;  %v1063_v63 = vsel %vm999_vm15, 1.0, %v4757_v19  ;;  %5184 = vst [vmem:[#allocation43_spill] sm:$0xff] %v2384_v39  ;;  %5261 = vst [vmem:[#allocation91_spill] sm:$0xff] %v2694_v56  ;;  %p1853_p4 = scmp.lt.s32.totalorder %s4695_s25, %s1851_s4 }
  0x6b   : > { %5177 = vst [vmem:[#allocation36_spill] sm:$0xff] %v2319_v18  ;;  %v1456_v47 = vadd.f32 %v1455_v13, %v1185_v4  ;;  %v2337_v4 = vcvt.s32.f32 %v294_v29  ;;  %vm1125_vm10 = vcmp.eq.f32.partialorder %v1061_v21, %v2319_v18  ;;  %v1188_v29 = vsel %vm1124_vm8, 1.0, %v4757_v19  ;;  %v2405_v21 = vld [vmem:[%s2096_s3 + $0xa0] sm:$0xff]  ;;  %s1852_s19 = scalar_lea.vmem %s1851_s4, 256 }
  0x6c   : > { %vm1005_vm11 = vcmp.lt.f32.partialorder %v2342_v60, 0.5  ;;  %v1064_v58 = vsel %vm1000_vm1, 1.0, %v4757_v19  ;;  %v1189_v11 = vsel %vm1125_vm10, 1.0, %v4757_v19  ;;  %vm1006_vm13 = vcmp.lt.f32.partialorder %v2363_v62, 0.5  ;;  %5186 = vst [vmem:[#allocation45_spill] sm:$0xff] %v2405_v21  ;;  %v2650_v62 = vld [vmem:[%s2096_s3 + $0xf8] sm:$0xff]  ;;  %p1854_p5 = scmp.lt.s32.totalorder %s1852_s19, %s1846_s14 }
  0x6d   : > { %5179 = vst [vmem:[#allocation38_spill] sm:$0xff] %v2337_v4  ;;  %v1457_v13 = vadd.f32 %v1456_v47, %v1186_v23  ;;  %v2358_v23 = vcvt.s32.f32 %v295_v30  ;;  %vm1126_vm12 = vcmp.eq.f32.partialorder %v1062_v9, %v2337_v4  ;;  %v2374_v30 = vld [vmem:[%s2104_s27 + $0x60] sm:$0xff]  ;;  %v1065_v54 = vsel %vm1001_vm3, 1.0, %v4757_v19  ;;  %v2426_v9 = vld [vmem:[%s2104_s27 + $0x70] sm:$0xff]  ;;  %v2501_v4 = vld [vmem:[%s2096_s3 + $0xc8] sm:$0xff] }
  0x6e   : > { %vm1007_vm15 = vcmp.lt.f32.partialorder %v2384_v39, 0.5  ;;  %v1066_v50 = vsel %vm1002_vm5, 1.0, %v4757_v19  ;;  %vm1008_vm1 = vcmp.lt.f32.partialorder %v2405_v21, 0.5  ;;  %v1067_v49 = vsel %vm1003_vm7, 1.0, %v4757_v19  ;;  %5199 = vst [vmem:[#allocation55_spill] sm:$0xff] %v2501_v4  ;;  %5248 = vst [vmem:[#allocation82_spill] sm:$0xff] %v2650_v62  ;;  %p1855_p10 = por %p1854_p5, %p1853_p4 }
  0x6f   : > { %5181 = vst [vmem:[#allocation40_spill] sm:$0xff] %v2358_v23  ;;  %v1458_v47 = vadd.f32 %v1457_v13, %v1187_v28  ;;  %v2379_v28 = vcvt.s32.f32 %v296_v32  ;;  %vm1127_vm14 = vcmp.eq.f32.partialorder %v1063_v63, %v2358_v23  ;;  %v1190_v32 = vsel %vm1126_vm12, 1.0, %v4757_v19  ;;  %v2465_v63 = vld [vmem:[%s2096_s3 + $0xb8] sm:$0xff] }
  0x70   : > { %vm1009_vm3 = vcmp.lt.f32.partialorder %v2423_v31, 0.5  ;;  %vm1010_vm5 = vcmp.lt.f32.partialorder %v2444_v44, 0.5  ;;  %5193 = vst [vmem:[#allocation51_spill] sm:$0xff] %v2465_v63  ;;  %v5194_v23 = vunpack.c.1.s8 %v2171_v27  ;;  %vm1011_vm7 = vcmp.lt.f32.partialorder %v2465_v63, 0.5  ;;  %v2672_v60 = vld [vmem:[%s2096_s3 + $0x118] sm:$0xff]  ;;  %p1856_p11 = pnand %p1855_p10, %p1849_p9 }
  0x71   : > { %5183 = vst [vmem:[#allocation42_spill] sm:$0xff] %v2379_v28  ;;  %v1459_v13 = vadd.f32 %v1458_v47, %v1188_v29  ;;  %v2400_v29 = vcvt.s32.f32 %v297_v36  ;;  %vm1128_vm0 = vcmp.eq.f32.partialorder %v1064_v58, %v2379_v28  ;;  %v1191_v36 = vsel %vm1127_vm14, 1.0, %v4757_v19  ;;  %5255 = vst [vmem:[#allocation87_spill] sm:$0xff] %v2672_v60 }
  0x72   : > { %v1068_v58 = vsel %vm1004_vm9, 1.0, %v4757_v19  ;;  %v5200_v18 = vunpack.c.3.s8 %v2171_v27  ;;  %v1071_v41 = vsel %vm1007_vm15, 1.0, %v4757_v19  ;;  %v5207_v8 = vunpack.c.2.s8 %v2189_v35 }
  0x73   : > { %5185 = vst [vmem:[#allocation44_spill] sm:$0xff] %v2400_v29  ;;  %v1460_v47 = vadd.f32 %v1459_v13, %v1189_v11  ;;  %v2418_v11 = vcvt.s32.f32 %v298_v37  ;;  %vm1129_vm2 = vcmp.eq.f32.partialorder %v1065_v54, %v2400_v29  ;;  %v1192_v37 = vsel %vm1128_vm0, 1.0, %v4757_v19  ;;  %v2483_v54 = vld [vmem:[%s2096_s3 + $0xc0] sm:$0xff] }
  0x74   : > { %v1193_v16 = vsel %vm1129_vm2, 1.0, %v4757_v19  ;;  %v1069_v29 = vsel %vm1005_vm11, 1.0, %v4757_v19  ;;  %5196 = vst [vmem:[#allocation53_spill] sm:$0xff] %v2483_v54  ;;  %vm1012_vm9 = vcmp.lt.f32.partialorder %v2483_v54, 0.5  ;;  %vm1013_vm11 = vcmp.lt.f32.partialorder %v2501_v4, 0.5  ;;  %v2669_v54 = vld [vmem:[%s2096_s3 + $0x110] sm:$0xff] }
  0x75   : > { %5187 = vst [vmem:[#allocation46_spill] sm:$0xff] %v2418_v11  ;;  %v1461_v13 = vadd.f32 %v1460_v47, %v1190_v32  ;;  %v2439_v32 = vcvt.s32.f32 %v299_v38  ;;  %vm1130_vm4 = vcmp.eq.f32.partialorder %v1066_v50, %v2418_v11  ;;  %v2455_v38 = vld [vmem:[%s2104_s27 + $0x78] sm:$0xff]  ;;  %v1070_v50 = vsel %vm1006_vm13, 1.0, %v4757_v19  ;;  %5254 = vst [vmem:[#allocation86_spill] sm:$0xff] %v2669_v54 }
  0x76   : > { %v5197_v11 = vunpack.c.2.s8 %v2171_v27  ;;  %v5217_v59 = vunpack.c.2.s8 %v2217_v48  ;;  %v5226_v33 = vunpack.c.2.s8 %v2237_v57  ;;  %v5241_v21 = vunpack.c.1.s8 %v2293_v22  ;;  %v2712_v4 = vld [vmem:[%s2096_s3 + $0x138] sm:$0xff] }
  0x77   : > { %5189 = vst [vmem:[#allocation48_spill] sm:$0xff] %v2439_v32  ;;  %v1462_v47 = vadd.f32 %v1461_v13, %v1191_v36  ;;  %v5191_v36 = vunpack.c.0.s8 %v2171_v27  ;;  %vm1131_vm6 = vcmp.eq.f32.partialorder %v1067_v49, %v2439_v32  ;;  %v2506_v49 = vcvt.s32.f32 %v5200_v18  ;;  %v2525_v18 = vld [vmem:[%s2096_s3 + $0xd0] sm:$0xff]  ;;  %5267 = vst [vmem:[#allocation95_spill] sm:$0xff] %v2712_v4 }
  0x78   : > { %v5202_v32 = vunpack.c.0.s8 %v2189_v35  ;;  %5206 = vst [vmem:[#allocation59_spill] sm:$0xff] %v2525_v18  ;;  %vm1014_vm13 = vcmp.lt.f32.partialorder %v2525_v18, 0.5  ;;  %v5256_v55 = vunpack.c.2.s8 %v2314_v20  ;;  %v5258_v45 = vunpack.c.3.s8 %v2314_v20  ;;  %v2755_v18 = vld [vmem:[%s2096_s3 + $0x160] sm:$0xff] }
  0x79   : > { %v2460_v13 = vcvt.s32.f32 %v5191_v36  ;;  %v1463_v40 = vadd.f32 %v1462_v47, %v1192_v37  ;;  %v1194_v36 = vsel %vm1130_vm4, 1.0, %v4757_v19  ;;  %v2478_v37 = vcvt.s32.f32 %v5194_v23  ;;  %5201 = vst [vmem:[#allocation56_spill] sm:$0xff] %v2506_v49  ;;  %5280 = vst [vmem:[#allocation104_spill] sm:$0xff] %v2755_v18 }
  0x7a   : > { %v1195_v23 = vsel %vm1131_vm6, 1.0, %v4757_v19  ;;  %vm1135_vm14 = vcmp.eq.f32.partialorder %v1071_v41, %v2506_v49  ;;  %v5235_v41 = vunpack.c.2.s8 %v2264_v17  ;;  %v5264_v14 = vunpack.c.1.s8 %v2345_v0 }
  0x7b   : > { %5192 = vst [vmem:[#allocation50_spill] sm:$0xff] %v2460_v13  ;;  %5195 = vst [vmem:[#allocation52_spill] sm:$0xff] %v2478_v37  ;;  %vm1132_vm8 = vcmp.eq.f32.partialorder %v1068_v58, %v2460_v13  ;;  %v1464_v47 = vadd.f32 %v1463_v40, %v1193_v16  ;;  %v2496_v40 = vcvt.s32.f32 %v5197_v11  ;;  %vm1133_vm10 = vcmp.eq.f32.partialorder %v1069_v29, %v2478_v37 }
  0x7c   : > { %v1196_v11 = vsel %vm1132_vm8, 1.0, %v4757_v19  ;;  %v2529_v58 = vcvt.s32.f32 %v5207_v8  ;;  %v5209_v19 = vunpack.c.3.s8 %v2189_v35  ;;  %v5214_v8 = vunpack.c.1.s8 %v2217_v48 }
  0x7d   : > { %5198 = vst [vmem:[#allocation54_spill] sm:$0xff] %v2496_v40  ;;  %v1465_v16 = vadd.f32 %v1464_v47, %v1194_v36  ;;  %v2516_v36 = vcvt.s32.f32 %v5202_v32  ;;  %v5204_v47 = vunpack.c.1.s8 %v2189_v35  ;;  %vm1134_vm12 = vcmp.eq.f32.partialorder %v1070_v50, %v2496_v40  ;;  %v2552_v35 = vld [vmem:[%s2096_s3 + $0xd8] sm:$0xff] }
  0x7e   : > { %5208 = vst [vmem:[#allocation60_spill] sm:$0xff] %v2529_v58  ;;  %v2533_v13 = vcvt.s32.f32 %v5209_v19  ;;  %v5211_v32 = vmov 0.0   ;;  %v2547_v12 = vcvt.s32.f32 %v5214_v8  ;;  %5216 = vst [vmem:[#allocation64_spill] sm:$0xff] %v2552_v35  ;;  %v2556_v29 = vcvt.s32.f32 %v5217_v59 }
  0x7f   : > { %5203 = vst [vmem:[#allocation57_spill] sm:$0xff] %v2516_v36  ;;  %v2520_v28 = vcvt.s32.f32 %v5204_v47  ;;  %v1466_v27 = vadd.f32 %v1465_v16, %v1195_v23  ;;  %v1072_v47 = vsel %vm1008_vm1, 1.0, %v5211_v32  ;;  %v1197_v46 = vsel %vm1133_vm10, 1.0, %v5211_v32 }
  0x80   : > { %5210 = vst [vmem:[#allocation61_spill] sm:$0xff] %v2533_v13  ;;  %v5212_v23 = vunpack.c.0.s8 %v2217_v48  ;;  %5215 = vst [vmem:[#allocation63_spill] sm:$0xff] %v2547_v12  ;;  %v5219_v37 = vunpack.c.3.s8 %v2217_v48  ;;  %v1198_v8 = vsel %vm1134_vm12, 1.0, %v5211_v32  ;;  %v5223_v59 = vunpack.c.1.s8 %v2237_v57 }
  0x81   : > { %5205 = vst [vmem:[#allocation58_spill] sm:$0xff] %v2520_v28  ;;  %v1467_v19 = vadd.f32 %v1466_v27, %v1196_v11  ;;  %5218 = vst [vmem:[#allocation65_spill] sm:$0xff] %v2556_v29  ;;  %v5221_v11 = vunpack.c.0.s8 %v2237_v57  ;;  %vm1015_vm15 = vcmp.lt.f32.partialorder %v2552_v35, 0.5  ;;  %vm1136_vm0 = vcmp.eq.f32.partialorder %v1072_v47, %v2516_v36  ;;  %v2798_v35 = vld [vmem:[%s2096_s3 + $0x188] sm:$0xff] }
  0x82   : > { %v2543_v16 = vcvt.s32.f32 %v5212_v23  ;;  %v2560_v51 = vcvt.s32.f32 %v5219_v37  ;;  %v1073_v23 = vsel %vm1009_vm3, 1.0, %v5211_v32  ;;  %v2574_v42 = vcvt.s32.f32 %v5223_v59  ;;  %v2579_v37 = vld [vmem:[%s2096_s3 + $0xe0] sm:$0xff]  ;;  %5293 = vst [vmem:[#allocation113_spill] sm:$0xff] %v2798_v35 }
  0x83   : > { %v2570_v27 = vcvt.s32.f32 %v5221_v11  ;;  %v1468_v48 = vadd.f32 %v1467_v19, %v1197_v46  ;;  %5225 = vst [vmem:[#allocation69_spill] sm:$0xff] %v2579_v37  ;;  %v2583_v50 = vcvt.s32.f32 %v5226_v33  ;;  %v5228_v40 = vunpack.c.3.s8 %v2237_v57 }
  0x84   : > { %5213 = vst [vmem:[#allocation62_spill] sm:$0xff] %v2543_v16  ;;  %5220 = vst [vmem:[#allocation66_spill] sm:$0xff] %v2560_v51  ;;  %v1074_v11 = vsel %vm1010_vm5, 1.0, %v5211_v32  ;;  %v1199_v59 = vsel %vm1135_vm14, 1.0, %v5211_v32  ;;  %v5230_v46 = vunpack.c.0.s8 %v2264_v17  ;;  %v5232_v33 = vunpack.c.1.s8 %v2264_v17 }
  0x85   : > { %5222 = vst [vmem:[#allocation67_spill] sm:$0xff] %v2570_v27  ;;  %5224 = vst [vmem:[#allocation68_spill] sm:$0xff] %v2574_v42  ;;  %v2587_v25 = vcvt.s32.f32 %v5228_v40  ;;  %vm1016_vm1 = vcmp.lt.f32.partialorder %v2579_v37, 0.5  ;;  %vm1137_vm2 = vcmp.eq.f32.partialorder %v1073_v23, %v2520_v28  ;;  %v1469_v57 = vadd.f32 %v1468_v48, %v1198_v8  ;;  %v2606_v40 = vld [vmem:[%s2096_s3 + $0xe8] sm:$0xff]  ;;  %v2841_v37 = vld [vmem:[%s2096_s3 + $0x1b0] sm:$0xff] }
  0x86   : > { %5227 = vst [vmem:[#allocation70_spill] sm:$0xff] %v2583_v50  ;;  %v2597_v19 = vcvt.s32.f32 %v5230_v46  ;;  %v2601_v24 = vcvt.s32.f32 %v5232_v33  ;;  %5234 = vst [vmem:[#allocation74_spill] sm:$0xff] %v2606_v40  ;;  %v2610_v49 = vcvt.s32.f32 %v5235_v41  ;;  %v5237_v46 = vunpack.c.3.s8 %v2264_v17  ;;  %v2666_v28 = vld [vmem:[%s2096_s3 + $0x108] sm:$0xff] }
  0x87   : > { %5229 = vst [vmem:[#allocation71_spill] sm:$0xff] %v2587_v25  ;;  %v1075_v33 = vsel %vm1011_vm7, 1.0, %v5211_v32  ;;  %v1200_v8 = vsel %vm1136_vm0, 1.0, %v5211_v32  ;;  %v5239_v48 = vunpack.c.0.s8 %v2293_v22  ;;  %v2628_v41 = vcvt.s32.f32 %v5241_v21  ;;  %5306 = vst [vmem:[#allocation122_spill] sm:$0xff] %v2841_v37 }
  0x88   : > { %5231 = vst [vmem:[#allocation72_spill] sm:$0xff] %v2597_v19  ;;  %5233 = vst [vmem:[#allocation73_spill] sm:$0xff] %v2601_v24  ;;  %v2614_v44 = vcvt.s32.f32 %v5237_v46  ;;  %vm1017_vm3 = vcmp.lt.f32.partialorder %v2606_v40, 0.5  ;;  %vm1138_vm4 = vcmp.eq.f32.partialorder %v1074_v11, %v2529_v58  ;;  %v1470_v17 = vadd.f32 %v1469_v57, %v1199_v59  ;;  %v2633_v46 = vld [vmem:[%s2096_s3 + $0xf0] sm:$0xff]  ;;  %v2653_v59 = vld [vmem:[%s2096_s3 + $0x100] sm:$0xff] }
  0x89   : > { %5236 = vst [vmem:[#allocation75_spill] sm:$0xff] %v2610_v49  ;;  %v2624_v31 = vcvt.s32.f32 %v5239_v48  ;;  %5242 = vst [vmem:[#allocation78_spill] sm:$0xff] %v2628_v41  ;;  %v5244_v47 = vunpack.c.2.s8 %v2293_v22  ;;  %v5246_v48 = vunpack.c.3.s8 %v2293_v22  ;;  %v1076_v21 = vsel %vm1012_vm9, 1.0, %v5211_v32  ;;  %v2709_v58 = vld [vmem:[%s2096_s3 + $0x130] sm:$0xff]  ;;  %v2884_v40 = vld [vmem:[%s2096_s3 + $0x1d8] sm:$0xff] }
  0x8a   : > { %5238 = vst [vmem:[#allocation76_spill] sm:$0xff] %v2614_v44  ;;  %5243 = vst [vmem:[#allocation79_spill] sm:$0xff] %v2633_v46  ;;  %v1201_v39 = vsel %vm1137_vm2, 1.0, %v5211_v32  ;;  %v5250_v57 = vunpack.c.0.s8 %v2314_v20  ;;  %v5252_v22 = vunpack.c.1.s8 %v2314_v20  ;;  %vm1018_vm5 = vcmp.lt.f32.partialorder %v2633_v46, 0.5 }
  0x8b   : > { %5240 = vst [vmem:[#allocation77_spill] sm:$0xff] %v2624_v31  ;;  %v2637_v36 = vcvt.s32.f32 %v5244_v47  ;;  %v2641_v63 = vcvt.s32.f32 %v5246_v48  ;;  %5249 = vst [vmem:[#allocation83_spill] sm:$0xff] %v2653_v59  ;;  %vm1139_vm6 = vcmp.eq.f32.partialorder %v1075_v33, %v2533_v13  ;;  %v1471_v23 = vadd.f32 %v1470_v17, %v1200_v8  ;;  %v2752_v13 = vld [vmem:[%s2096_s3 + $0x158] sm:$0xff] }
  0x8c   : > { %v2657_v47 = vcvt.s32.f32 %v5250_v57  ;;  %v2661_v48 = vcvt.s32.f32 %v5252_v22  ;;  %v2676_v57 = vcvt.s32.f32 %v5256_v55  ;;  %v2680_v22 = vcvt.s32.f32 %v5258_v45  ;;  %v2691_v55 = vld [vmem:[%s2096_s3 + $0x120] sm:$0xff]  ;;  %5266 = vst [vmem:[#allocation94_spill] sm:$0xff] %v2709_v58  ;;  %5279 = vst [vmem:[#allocation103_spill] sm:$0xff] %v2752_v13 }
  0x8d   : > { %5245 = vst [vmem:[#allocation80_spill] sm:$0xff] %v2637_v36  ;;  %5247 = vst [vmem:[#allocation81_spill] sm:$0xff] %v2641_v63  ;;  %vm1019_vm7 = vcmp.lt.f32.partialorder %v2650_v62, 0.5  ;;  %vm1020_vm8 = vcmp.lt.f32.partialorder %v2653_v59, 0.5  ;;  %v1077_v8 = vsel %vm1013_vm11, 1.0, %v5211_v32  ;;  %v1202_v17 = vsel %vm1138_vm4, 1.0, %v5211_v32 }
  0x8e   : > { %5251 = vst [vmem:[#allocation84_spill] sm:$0xff] %v2657_v47  ;;  %5253 = vst [vmem:[#allocation85_spill] sm:$0xff] %v2661_v48  ;;  %v5262_v20 = vunpack.c.0.s8 %v2345_v0  ;;  %v2702_v61 = vcvt.s32.f32 %v5264_v14  ;;  %vm1021_vm9 = vcmp.lt.f32.partialorder %v2666_v28, 0.5  ;;  %vm1022_vm10 = vcmp.lt.f32.partialorder %v2669_v54, 0.5 }
  0x8f   : > { %5257 = vst [vmem:[#allocation88_spill] sm:$0xff] %v2676_v57  ;;  %5259 = vst [vmem:[#allocation89_spill] sm:$0xff] %v2680_v22  ;;  %vm1023_vm11 = vcmp.lt.f32.partialorder %v2672_v60, 0.5  ;;  %vm1140_vm12 = vcmp.eq.f32.partialorder %v1076_v21, %v2543_v16  ;;  %v1472_v11 = vadd.f32 %v1471_v23, %v1201_v39  ;;  %v5269_v52 = vunpack.c.2.s8 %v2345_v0  ;;  %v2795_v16 = vld [vmem:[%s2096_s3 + $0x180] sm:$0xff] }
  0x90   : > { %5260 = vst [vmem:[#allocation90_spill] sm:$0xff] %v2691_v55  ;;  %v2698_v45 = vcvt.s32.f32 %v5262_v20  ;;  %5265 = vst [vmem:[#allocation93_spill] sm:$0xff] %v2702_v61  ;;  %v2715_v20 = vld [vmem:[%s2096_s3 + $0x140] sm:$0xff]  ;;  %v5271_v43 = vunpack.c.3.s8 %v2345_v0  ;;  %vm1024_vm14 = vcmp.lt.f32.partialorder %v2691_v55, 0.5  ;;  %vm1025_vm0 = vcmp.lt.f32.partialorder %v2694_v56, 0.5 }
  0x91   : > { %5268 = vst [vmem:[#allocation96_spill] sm:$0xff] %v2715_v20  ;;  %v2719_v14 = vcvt.s32.f32 %v5269_v52  ;;  %v1078_v39 = vsel %vm1014_vm13, 1.0, %v5211_v32  ;;  %v1203_v23 = vsel %vm1139_vm6, 1.0, %v5211_v32  ;;  %v2734_v52 = vld [vmem:[%s2096_s3 + $0x148] sm:$0xff]  ;;  %v5277_v15 = vunpack.c.1.s8 %v2374_v30  ;;  %5292 = vst [vmem:[#allocation112_spill] sm:$0xff] %v2795_v16  ;;  %v5423_v56 = vld [vmem:[#allocation109_spill] sm:$0xff] }
  0x92   : > { %5263 = vst [vmem:[#allocation92_spill] sm:$0xff] %v2698_v45  ;;  %v2723_v34 = vcvt.s32.f32 %v5271_v43  ;;  %5273 = vst [vmem:[#allocation99_spill] sm:$0xff] %v2734_v52  ;;  %v5275_v43 = vunpack.c.0.s8 %v2374_v30  ;;  %vm1026_vm13 = vcmp.lt.f32.partialorder %v2709_v58, 0.5  ;;  %vm1141_vm6 = vcmp.eq.f32.partialorder %v1077_v8, %v2547_v12  ;;  %v2838_v12 = vld [vmem:[%s2096_s3 + $0x1a8] sm:$0xff] }
  0x93   : > { %5270 = vst [vmem:[#allocation97_spill] sm:$0xff] %v2719_v14  ;;  %v2745_v10 = vcvt.s32.f32 %v5277_v15  ;;  %v1473_v33 = vadd.f32 %v1472_v11, %v1202_v17  ;;  %v5282_v7 = vunpack.c.2.s8 %v2374_v30  ;;  %v5284_v6 = vunpack.c.3.s8 %v2374_v30  ;;  %5305 = vst [vmem:[#allocation121_spill] sm:$0xff] %v2838_v12  ;;  %v2906_v14 = vld [vmem:[%s2096_s3 + $0x1e8] sm:$0xff] }
  0x94   : > { %5272 = vst [vmem:[#allocation98_spill] sm:$0xff] %v2723_v34  ;;  %v2741_v0 = vcvt.s32.f32 %v5275_v43  ;;  %v2758_v43 = vld [vmem:[%s2096_s3 + $0x168] sm:$0xff]  ;;  %v1079_v17 = vsel %vm1015_vm15, 1.0, %v5211_v32  ;;  %v1204_v11 = vsel %vm1140_vm12, 1.0, %v5211_v32  ;;  %v5290_v2 = vunpack.c.1.s8 %v2395_v53  ;;  %5319 = vst [vmem:[#allocation131_spill] sm:$0xff] %v2884_v40 }
  0x95   : > { %5278 = vst [vmem:[#allocation102_spill] sm:$0xff] %v2745_v10  ;;  %5281 = vst [vmem:[#allocation105_spill] sm:$0xff] %v2758_v43  ;;  %v2762_v15 = vcvt.s32.f32 %v5282_v7  ;;  %v2766_v5 = vcvt.s32.f32 %v5284_v6  ;;  %v2777_v7 = vld [vmem:[%s2096_s3 + $0x170] sm:$0xff]  ;;  %v5288_v6 = vunpack.c.0.s8 %v2395_v53  ;;  %vm1031_vm15 = vcmp.lt.f32.partialorder %v2752_v13, 0.5 }
  0x96   : > { %5276 = vst [vmem:[#allocation101_spill] sm:$0xff] %v2741_v0  ;;  %5286 = vst [vmem:[#allocation108_spill] sm:$0xff] %v2777_v7  ;;  %v2788_v1 = vcvt.s32.f32 %v5290_v2  ;;  %vm1142_vm4 = vcmp.eq.f32.partialorder %v1078_v39, %v2556_v29  ;;  %v1474_v21 = vadd.f32 %v1473_v33, %v1203_v23  ;;  %v1080_v23 = vsel %vm1016_vm1, 1.0, %v5211_v32  ;;  %v2881_v29 = vld [vmem:[%s2096_s3 + $0x1d0] sm:$0xff] }
  0x97   : > { %5283 = vst [vmem:[#allocation106_spill] sm:$0xff] %v2762_v15  ;;  %5285 = vst [vmem:[#allocation107_spill] sm:$0xff] %v2766_v5  ;;  %v2784_v30 = vcvt.s32.f32 %v5288_v6  ;;  %v2801_v6 = vld [vmem:[%s2096_s3 + $0x190] sm:$0xff]  ;;  %v1205_v33 = vsel %vm1141_vm6, 1.0, %v5211_v32  ;;  %vm1143_vm12 = vcmp.eq.f32.partialorder %v1079_v17, %v2560_v51  ;;  %vm1144_vm6 = vcmp.eq.f32.partialorder %v1080_v23, %v2570_v27  ;;  %v2922_v51 = vld [vmem:[%s2096_s3 + $0x1f8] sm:$0xff] }
  0x98   : > { %5291 = vst [vmem:[#allocation111_spill] sm:$0xff] %v2788_v1  ;;  %5294 = vst [vmem:[#allocation114_spill] sm:$0xff] %v2801_v6  ;;  %v5297_v1 = vunpack.c.3.s8 %v2395_v53  ;;  %v1475_v8 = vadd.f32 %v1474_v21, %v1204_v11  ;;  %v1081_v11 = vsel %vm1017_vm3, 1.0, %v5211_v32  ;;  %v1206_v21 = vsel %vm1142_vm4, 1.0, %v5211_v32 }
  0x99   : > { %5289 = vst [vmem:[#allocation110_spill] sm:$0xff] %v2784_v30  ;;  %v5295_v30 = vunpack.c.2.s8 %v2395_v53  ;;  %5318 = vst [vmem:[#allocation130_spill] sm:$0xff] %v2881_v29  ;;  %vm1047_vm1 = vcmp.lt.f32.partialorder %v2884_v40, 0.5  ;;  %v1085_v46 = vsel %vm1021_vm9, 1.0, %v5211_v32  ;;  %v1086_v62 = vsel %vm1022_vm10, 1.0, %v5211_v32 }
  0x9a   : > { %v2809_v5 = vcvt.s32.f32 %v5297_v1  ;;  %v5301_v1 = vunpack.c.0.s8 %v2426_v9  ;;  %v1476_v39 = vadd.f32 %v1475_v8, %v1205_v33  ;;  %v1082_v33 = vsel %vm1018_vm5, 1.0, %v5211_v32  ;;  %5325 = vst [vmem:[#allocation135_spill] sm:$0xff] %v2906_v14  ;;  %5327 = vst [vmem:[#allocation137_spill] sm:$0xff] %v2922_v51 }
  0x9b   : > { %v2805_v2 = vcvt.s32.f32 %v5295_v30  ;;  %v2820_v30 = vld [vmem:[%s2096_s3 + $0x198] sm:$0xff]  ;;  %v1207_v8 = vsel %vm1143_vm12, 1.0, %v5211_v32  ;;  %vm1145_vm5 = vcmp.eq.f32.partialorder %v1081_v11, %v2574_v42  ;;  %vm1049_vm12 = vcmp.lt.f32.partialorder %v2906_v14, 0.5 }
  0x9c   : > { %5298 = vst [vmem:[#allocation116_spill] sm:$0xff] %v2809_v5  ;;  %5299 = vst [vmem:[#allocation117_spill] sm:$0xff] %v2820_v30  ;;  %v2827_v53 = vcvt.s32.f32 %v5301_v1  ;;  %v5303_v5 = vunpack.c.1.s8 %v2426_v9  ;;  %v2844_v1 = vld [vmem:[%s2096_s3 + $0x1b8] sm:$0xff]  ;;  %v1477_v17 = vadd.f32 %v1476_v39, %v1206_v21  ;;  %v1087_v59 = vsel %vm1023_vm11, 1.0, %v5211_v32 }
  0x9d   : > { %5296 = vst [vmem:[#allocation115_spill] sm:$0xff] %v2805_v2  ;;  %v2823_v2 = vld [vmem:[%s2096_s3 + $0x1a0] sm:$0xff]  ;;  %5307 = vst [vmem:[#allocation123_spill] sm:$0xff] %v2844_v1  ;;  %v1208_v21 = vsel %vm1144_vm6, 1.0, %v5211_v32  ;;  %v2942_v39 = vsel %vm1024_vm14, 1.0, %v5211_v32  ;;  %v2947_v54 = vsel %vm1025_vm0, 1.0, %v5211_v32 }
  0x9e   : > { %5300 = vst [vmem:[#allocation118_spill] sm:$0xff] %v2823_v2  ;;  %5302 = vst [vmem:[#allocation119_spill] sm:$0xff] %v2827_v53  ;;  %v2831_v15 = vcvt.s32.f32 %v5303_v5  ;;  %v5308_v53 = vunpack.c.2.s8 %v2426_v9  ;;  %v1478_v60 = vadd.f32 %v1477_v17, %v1207_v8  ;;  %v2953_v23 = vsel %vm1026_vm13, 1.0, %v5211_v32  ;;  %v5351_v40 = vld [vmem:[#allocation107_spill] sm:$0xff] }
  0x9f   : > { %vm5328_vm9 = vcmp.lt.f32.partialorder %v2712_v4, 0.5  ;;  %vm5329_vm10 = vcmp.lt.f32.partialorder %v2715_v20, 0.5  ;;  %vm5330_vm11 = vcmp.lt.f32.partialorder %v2734_v52, 0.5  ;;  %vm5331_vm14 = vcmp.lt.f32.partialorder %v2737_v26, 0.5 }
  0xa0   : > { %5304 = vst [vmem:[#allocation120_spill] sm:$0xff] %v2831_v15  ;;  %v2848_v5 = vcvt.s32.f32 %v5308_v53  ;;  %v5310_v15 = vunpack.c.3.s8 %v2426_v9  ;;  %v2863_v53 = vld [vmem:[%s2096_s3 + $0x1c0] sm:$0xff]  ;;  %v5314_v9 = vunpack.c.0.s8 %v2455_v38  ;;  %v2958_v27 = vsel %vm5328_vm9, 1.0, %v5211_v32  ;;  %v5434_v4 = vld [vmem:[#allocation130_spill] sm:$0xff] }
  0xa1   : > { %5312 = vst [vmem:[#allocation126_spill] sm:$0xff] %v2863_v53  ;;  %v2963_v55 = vsel %vm5329_vm10, 1.0, %v5211_v32  ;;  %v2971_v8 = vsel %vm5330_vm11, 1.0, %v5211_v32  ;;  %v2976_v17 = vsel %vm5331_vm14, 1.0, %v5211_v32  ;;  %v2982_v20 = vsel %vm1031_vm15, 1.0, %v5211_v32 }
  0xa2   : > { %5309 = vst [vmem:[#allocation124_spill] sm:$0xff] %v2848_v5  ;;  %v2852_v10 = vcvt.s32.f32 %v5310_v15  ;;  %v2866_v5 = vld [vmem:[%s2096_s3 + $0x1c8] sm:$0xff]  ;;  %v2870_v15 = vcvt.s32.f32 %v5314_v9  ;;  %v2887_v9 = vld [vmem:[%s2096_s3 + $0x1e0] sm:$0xff]  ;;  %vm5332_vm13 = vcmp.lt.f32.partialorder %v2755_v18, 0.5  ;;  %vm5333_vm6 = vcmp.lt.f32.partialorder %v2758_v43, 0.5 }
  0xa3   : > { %5313 = vst [vmem:[#allocation127_spill] sm:$0xff] %v2866_v5  ;;  %5320 = vst [vmem:[#allocation132_spill] sm:$0xff] %v2887_v9  ;;  %vm1045_vm2 = vcmp.lt.f32.partialorder %v2866_v5, 0.5  ;;  %vm1048_vm4 = vcmp.lt.f32.partialorder %v2887_v9, 0.5  ;;  %v2987_v11 = vsel %vm5332_vm13, 1.0, %v5211_v32  ;;  %v2992_v42 = vsel %vm5333_vm6, 1.0, %v5211_v32 }
  0xa4   : > { %5311 = vst [vmem:[#allocation125_spill] sm:$0xff] %v2852_v10  ;;  %5315 = vst [vmem:[#allocation128_spill] sm:$0xff] %v2870_v15  ;;  %v5316_v10 = vunpack.c.1.s8 %v2455_v38  ;;  %v5321_v15 = vunpack.c.2.s8 %v2455_v38  ;;  %vm5335_vm15 = vcmp.lt.f32.partialorder %v2780_v3, 0.5  ;;  %vm5336_vm10 = vcmp.lt.f32.partialorder %v2795_v16, 0.5  ;;  %v5350_v9 = vld [vmem:[#allocation106_spill] sm:$0xff] }
  0xa5   : > { %vm5338_vm11 = vcmp.lt.f32.partialorder %v2801_v6, 0.5  ;;  %vm5339_vm14 = vcmp.lt.f32.partialorder %v2820_v30, 0.5  ;;  %vm5340_vm13 = vcmp.lt.f32.partialorder %v2823_v2, 0.5  ;;  %vm1149_vm6 = vcmp.eq.f32.partialorder %v1085_v46, %v2601_v24 }
  0xa6   : > { %v2874_v0 = vcvt.s32.f32 %v5316_v10  ;;  %v2891_v10 = vcvt.s32.f32 %v5321_v15  ;;  %v2909_v15 = vld [vmem:[%s2096_s3 + $0x1f0] sm:$0xff]  ;;  %v3057_v46 = vsel %vm1045_vm2, 1.0, %v5211_v32  ;;  %v1213_v5 = vsel %vm1149_vm6, 1.0, %v5211_v32 }
  0xa7   : > { %5326 = vst [vmem:[#allocation136_spill] sm:$0xff] %v2909_v15  ;;  %vm1050_vm3 = vcmp.lt.f32.partialorder %v2909_v15, 0.5  ;;  %vm1151_vm2 = vcmp.eq.f32.partialorder %v1087_v59, %v2614_v44  ;;  %vm1160_vm6 = vcmp.eq.f32.partialorder %v2987_v11, %v2698_v45  ;;  %v5348_v44 = vld [vmem:[#allocation101_spill] sm:$0xff] }
  0xa8   : > { %5317 = vst [vmem:[#allocation129_spill] sm:$0xff] %v2874_v0  ;;  %5322 = vst [vmem:[#allocation133_spill] sm:$0xff] %v2891_v10  ;;  %v5323_v0 = vunpack.c.3.s8 %v2455_v38  ;;  %v1083_v38 = vsel %vm1019_vm7, 1.0, %v5211_v32  ;;  %vm1051_vm7 = vcmp.lt.f32.partialorder %v2922_v51, 0.5  ;;  %v5349_v51 = vld [vmem:[#allocation102_spill] sm:$0xff] }
  0xa9   : > { %vm1147_vm0 = vcmp.eq.f32.partialorder %v1083_v38, %v2587_v25  ;;  %v3003_v38 = vsel %vm5335_vm15, 1.0, %v5211_v32  ;;  %v3009_v25 = vsel %vm5336_vm10, 1.0, %v5211_v32  ;;  %vm5343_vm15 = vcmp.lt.f32.partialorder %v2844_v1, 0.5 }
  0xaa   : > { %v2895_v34 = vcvt.s32.f32 %v5323_v0  ;;  %v1084_v0 = vsel %vm1020_vm8, 1.0, %v5211_v32  ;;  %vm1146_vm8 = vcmp.eq.f32.partialorder %v1082_v33, %v2583_v50  ;;  %v1209_v33 = vsel %vm1145_vm5, 1.0, %v5211_v32  ;;  %v5433_v58 = vld [vmem:[#allocation127_spill] sm:$0xff]  ;;  %v5436_v52 = vld [vmem:[#allocation132_spill] sm:$0xff] }
  0xab   : > { %v1479_v50 = vadd.f32 %v1478_v60, %v1208_v21  ;;  %v1210_v26 = vsel %vm1146_vm8, 1.0, %v5211_v32  ;;  %vm5334_vm5 = vcmp.lt.f32.partialorder %v2777_v7, 0.5  ;;  %vm1148_vm9 = vcmp.eq.f32.partialorder %v1084_v0, %v2597_v19  ;;  %v5359_v16 = vld [vmem:[#allocation125_spill] sm:$0xff]  ;;  %v5360_v18 = vld [vmem:[#allocation128_spill] sm:$0xff] }
  0xac   : > { %5324 = vst [vmem:[#allocation134_spill] sm:$0xff] %v2895_v34  ;;  %v2998_v60 = vsel %vm5334_vm5, 1.0, %v5211_v32  ;;  %vm5337_vm8 = vcmp.lt.f32.partialorder %v2798_v35, 0.5  ;;  %v3019_v7 = vsel %vm5338_vm11, 1.0, %v5211_v32  ;;  %v1211_v3 = vsel %vm1147_vm0, 1.0, %v5211_v32  ;;  %v5357_v35 = vld [vmem:[#allocation120_spill] sm:$0xff] }
  0xad   : > { %v1480_v21 = vadd.f32 %v1479_v50, %v1209_v33  ;;  %v3014_v43 = vsel %vm5337_vm8, 1.0, %v5211_v32  ;;  %v3025_v50 = vsel %vm5339_vm14, 1.0, %v5211_v32  ;;  %v3030_v0 = vsel %vm5340_vm13, 1.0, %v5211_v32 }
  0xae   : > { %vm5341_vm5 = vcmp.lt.f32.partialorder %v2838_v12, 0.5  ;;  %vm5342_vm0 = vcmp.lt.f32.partialorder %v2841_v37, 0.5  ;;  %v3046_v30 = vsel %vm5343_vm15, 1.0, %v5211_v32  ;;  %v1212_v2 = vsel %vm1148_vm9, 1.0, %v5211_v32  ;;  %v5354_v37 = vld [vmem:[#allocation115_spill] sm:$0xff]  ;;  %v5355_v12 = vld [vmem:[#allocation116_spill] sm:$0xff] }
  0xaf   : > { %v1481_v33 = vadd.f32 %v1480_v21, %v1210_v26  ;;  %v3036_v19 = vsel %vm5341_vm5, 1.0, %v5211_v32  ;;  %v3041_v6 = vsel %vm5342_vm0, 1.0, %v5211_v32  ;;  %vm5344_vm10 = vcmp.lt.f32.partialorder %v2863_v53, 0.5  ;;  %v5361_v13 = vld [vmem:[#allocation129_spill] sm:$0xff] }
  0xb0   : > { %v3052_v26 = vsel %vm5344_vm10, 1.0, %v5211_v32  ;;  %vm1150_vm8 = vcmp.eq.f32.partialorder %v1086_v62, %v2610_v49  ;;  %vm5345_vm11 = vcmp.lt.f32.partialorder %v2881_v29, 0.5  ;;  %v3068_v1 = vsel %vm1047_vm1, 1.0, %v5211_v32  ;;  %v5353_v29 = vld [vmem:[#allocation111_spill] sm:$0xff] }
  0xb1   : > { %v1482_v21 = vadd.f32 %v1481_v33, %v1211_v3  ;;  %v3063_v24 = vsel %vm5345_vm11, 1.0, %v5211_v32  ;;  %v3073_v53 = vsel %vm1048_vm4, 1.0, %v5211_v32  ;;  %v3079_v3 = vsel %vm1049_vm12, 1.0, %v5211_v32 }
  0xb2   : > { %v3084_v62 = vsel %vm1050_vm3, 1.0, %v5211_v32  ;;  %v3090_v49 = vsel %vm1051_vm7, 1.0, %v5211_v32  ;;  %vm1152_vm1 = vcmp.eq.f32.partialorder %v2942_v39, %v2624_v31  ;;  %vm1153_vm4 = vcmp.eq.f32.partialorder %v2947_v54, %v2628_v41  ;;  %v5356_v31 = vld [vmem:[#allocation119_spill] sm:$0xff] }
  0xb3   : > { %v1483_v33 = vadd.f32 %v1482_v21, %v1212_v2  ;;  %v1214_v14 = vsel %vm1150_vm8, 1.0, %v5211_v32  ;;  %vm1154_vm3 = vcmp.eq.f32.partialorder %v2953_v23, %v2637_v36  ;;  %vm1155_vm12 = vcmp.eq.f32.partialorder %v2958_v27, %v2641_v63  ;;  %v5346_v21 = vld [vmem:[#allocation97_spill] sm:$0xff] }
  0xb4   : > { %vm1156_vm9 = vcmp.eq.f32.partialorder %v2963_v55, %v2657_v47  ;;  %vm1157_vm7 = vcmp.eq.f32.partialorder %v2971_v8, %v2661_v48  ;;  %vm1158_vm14 = vcmp.eq.f32.partialorder %v2976_v17, %v2676_v57  ;;  %vm1159_vm13 = vcmp.eq.f32.partialorder %v2982_v20, %v2680_v22  ;;  %v5403_v57 = vld [vmem:[#allocation49_spill] sm:$0xff]  ;;  %v5404_v48 = vld [vmem:[#allocation51_spill] sm:$0xff]  ;;  %v5417_v22 = vld [vmem:[#allocation96_spill] sm:$0xff] }
  0xb5   : > { %v1484_v59 = vadd.f32 %v1483_v33, %v1213_v5  ;;  %v1215_v2 = vsel %vm1151_vm2, 1.0, %v5211_v32  ;;  %vm1161_vm5 = vcmp.eq.f32.partialorder %v2992_v42, %v2702_v61  ;;  %v5347_v33 = vld [vmem:[#allocation98_spill] sm:$0xff]  ;;  %v1216_v15 = vsel %vm1152_vm1, 1.0, %v5211_v32  ;;  %v5415_v47 = vld [vmem:[#allocation87_spill] sm:$0xff] }
  0xb6   : > { %vm1166_vm11 = vcmp.eq.f32.partialorder %v3019_v7, %v5350_v9  ;;  %v1217_v39 = vsel %vm1153_vm4, 1.0, %v5211_v32  ;;  %vm1172_vm1 = vcmp.eq.f32.partialorder %v3052_v26, %v5356_v31  ;;  %vm1173_vm15 = vcmp.eq.f32.partialorder %v3057_v46, %v5357_v35  ;;  %v5387_v35 = vld [vmem:[#allocation17_spill] sm:$0xff]  ;;  %v5406_v31 = vld [vmem:[#allocation55_spill] sm:$0xff] }
  0xb7   : > { %v1485_v5 = vadd.f32 %v1484_v59, %v1214_v14  ;;  %v5352_v14 = vld [vmem:[#allocation110_spill] sm:$0xff]  ;;  %vm1175_vm8 = vcmp.eq.f32.partialorder %v3068_v1, %v5359_v16  ;;  %vm1176_vm0 = vcmp.eq.f32.partialorder %v3073_v53, %v5360_v18  ;;  %vm1177_vm2 = vcmp.eq.f32.partialorder %v3079_v3, %v5361_v13  ;;  %v5383_v3 = vld [vmem:[#allocation13_spill] sm:$0xff]  ;;  %v5385_v16 = vld [vmem:[#allocation15_spill] sm:$0xff] }
  0xb8   : > { %v1218_v54 = vsel %vm1154_vm3, 1.0, %v5211_v32  ;;  %vm1178_vm4 = vcmp.eq.f32.partialorder %v3084_v62, %v2891_v10  ;;  %vm1179_vm10 = vcmp.eq.f32.partialorder %v3090_v49, %v2895_v34  ;;  %v1220_v41 = vsel %vm1156_vm9, 1.0, %v5211_v32  ;;  %v5384_v13 = vld [vmem:[#allocation14_spill] sm:$0xff]  ;;  %v5386_v62 = vld [vmem:[#allocation16_spill] sm:$0xff]  ;;  %v5394_v18 = vld [vmem:[#allocation31_spill] sm:$0xff] }
  0xb9   : > { %v1486_v59 = vadd.f32 %v1485_v5, %v1215_v2  ;;  %v5358_v2 = vld [vmem:[#allocation124_spill] sm:$0xff]  ;;  %v1221_v23 = vsel %vm1157_vm7, 1.0, %v5211_v32  ;;  %v1222_v36 = vsel %vm1158_vm14, 1.0, %v5211_v32  ;;  %v1223_v27 = vsel %vm1159_vm13, 1.0, %v5211_v32  ;;  %v5399_v34 = vld [vmem:[#allocation41_spill] sm:$0xff]  ;;  %v5413_v9 = vld [vmem:[#allocation83_spill] sm:$0xff] }
  0xba   : > { %v1224_v55 = vsel %vm1160_vm6, 1.0, %v5211_v32  ;;  %v1225_v8 = vsel %vm1161_vm5, 1.0, %v5211_v32  ;;  %vm5362_vm3 = vcmp.eq.f32.partialorder %v2998_v60, %v5346_v21  ;;  %vm5364_vm9 = vcmp.eq.f32.partialorder %v3009_v25, %v5348_v44  ;;  %v5396_v44 = vld [vmem:[#allocation35_spill] sm:$0xff]  ;;  %v5409_v21 = vld [vmem:[#allocation69_spill] sm:$0xff] }
  0xbb   : > { %v1487_v5 = vadd.f32 %v1486_v59, %v1216_v15  ;;  %v1219_v15 = vsel %vm1155_vm12, 1.0, %v5211_v32  ;;  %v1226_v17 = vsel %vm5362_vm3, 1.0, %v5211_v32  ;;  %vm5363_vm12 = vcmp.eq.f32.partialorder %v3003_v38, %v5347_v33  ;;  %v5397_v33 = vld [vmem:[#allocation37_spill] sm:$0xff] }
  0xbc   : > { %v3198_v20 = vsel %vm5363_vm12, 1.0, %v5211_v32  ;;  %v3204_v11 = vsel %vm5364_vm9, 1.0, %v5211_v32  ;;  %vm5365_vm7 = vcmp.eq.f32.partialorder %v3014_v43, %v5349_v51  ;;  %v3216_v60 = vsel %vm1166_vm11, 1.0, %v5211_v32 }
  0xbd   : > { %v1488_v59 = vadd.f32 %v1487_v5, %v1217_v39  ;;  %v3210_v42 = vsel %vm5365_vm7, 1.0, %v5211_v32  ;;  %vm5366_vm14 = vcmp.eq.f32.partialorder %v3025_v50, %v5351_v40  ;;  %vm5367_vm13 = vcmp.eq.f32.partialorder %v3030_v0, %v5352_v14  ;;  %v5402_v14 = vld [vmem:[#allocation47_spill] sm:$0xff] }
  0xbe   : > { %v3222_v38 = vsel %vm5366_vm14, 1.0, %v5211_v32  ;;  %v3228_v25 = vsel %vm5367_vm13, 1.0, %v5211_v32  ;;  %vm5368_vm6 = vcmp.eq.f32.partialorder %v3036_v19, %v5353_v29  ;;  %vm5369_vm5 = vcmp.eq.f32.partialorder %v3041_v6, %v5354_v37  ;;  %v5390_v29 = vld [vmem:[#allocation23_spill] sm:$0xff] }
  0xbf   : > { %v1489_v39 = vadd.f32 %v1488_v59, %v1218_v54  ;;  %v3234_v43 = vsel %vm5368_vm6, 1.0, %v5211_v32  ;;  %v3240_v50 = vsel %vm5369_vm5, 1.0, %v5211_v32  ;;  %vm5370_vm11 = vcmp.eq.f32.partialorder %v3046_v30, %v5355_v12  ;;  %v5381_v54 = vld [vmem:[#allocation11_spill] sm:$0xff]  ;;  %v5382_v59 = vld [vmem:[#allocation12_spill] sm:$0xff]  ;;  %v5388_v12 = vld [vmem:[#allocation18_spill] sm:$0xff] }
  0xc0   : > { %v3246_v0 = vsel %vm5370_vm11, 1.0, %v5211_v32  ;;  %v3252_v19 = vsel %vm1172_vm1, 1.0, %v5211_v32  ;;  %v3258_v5 = vsel %vm1173_vm15, 1.0, %v5211_v32  ;;  %vm5374_vm3 = vcmp.eq.f32.partialorder %v3063_v24, %v5358_v2  ;;  %v5395_v2 = vld [vmem:[#allocation33_spill] sm:$0xff]  ;;  %v5407_v37 = vld [vmem:[#allocation59_spill] sm:$0xff] }
  0xc1   : > { %v1490_v7 = vadd.f32 %v1489_v39, %v1219_v15  ;;  %5371 = vst [vmem:[#allocation138_spill] sm:$0xff] %v3246_v0  ;;  %5372 = vst [vmem:[#allocation139_spill] sm:$0xff] %v3252_v19  ;;  %v3264_v6 = vsel %vm5374_vm3, 1.0, %v5211_v32  ;;  %v3270_v30 = vsel %vm1175_vm8, 1.0, %v5211_v32  ;;  %v3276_v26 = vsel %vm1176_vm0, 1.0, %v5211_v32  ;;  %v5392_v39 = vld [vmem:[#allocation27_spill] sm:$0xff] }
  0xc2   : > { %5373 = vst [vmem:[#allocation140_spill] sm:$0xff] %v3258_v5  ;;  %5375 = vst [vmem:[#allocation141_spill] sm:$0xff] %v3264_v6  ;;  %v3282_v24 = vsel %vm1177_vm2, 1.0, %v5211_v32  ;;  %v3288_v1 = vsel %vm1178_vm4, 1.0, %v5211_v32  ;;  %v3294_v53 = vsel %vm1179_vm10, 1.0, %v5211_v32  ;;  %v5389_v32 = vld [vmem:[#allocation21_spill] sm:$0xff] }
  0xc3   : > { %5376 = vst [vmem:[#allocation142_spill] sm:$0xff] %v3270_v30  ;;  %5377 = vst [vmem:[#allocation143_spill] sm:$0xff] %v3276_v26  ;;  %v1491_v46 = vadd.f32 %v1490_v7, %v1220_v41  ;;  %v5393_v7 = vld [vmem:[#allocation29_spill] sm:$0xff]  ;;  %v5400_v41 = vld [vmem:[#allocation43_spill] sm:$0xff]  ;;  %v5442_v0 = vsub.f32 1.0, %v5383_v3 }
  0xc4   : > { %5378 = vst [vmem:[#allocation144_spill] sm:$0xff] %v3282_v24  ;;  %5379 = vst [vmem:[#allocation145_spill] sm:$0xff] %v3288_v1  ;;  %v5410_v24 = vld [vmem:[#allocation74_spill] sm:$0xff]  ;;  %v5411_v26 = vld [vmem:[#allocation79_spill] sm:$0xff] }
  0xc5   : > { %5380 = vst [vmem:[#allocation146_spill] sm:$0xff] %v3294_v53  ;;  %v1492_v15 = vadd.f32 %v1491_v46, %v1221_v23  ;;  %v5391_v23 = vld [vmem:[#allocation25_spill] sm:$0xff]  ;;  %v5430_v5 = vld [vmem:[#allocation122_spill] sm:$0xff]  ;;  %v5437_v30 = vld [vmem:[#allocation135_spill] sm:$0xff]  ;;  %v5445_v53 = vsub.f32 1.0, %v5385_v16  ;;  %v5455_v16 = vsub.f32 1.0, %v5390_v29 }
  0xc6   : > { %v5401_v46 = vld [vmem:[#allocation45_spill] sm:$0xff] }
  0xc7   : > { %v1493_v49 = vadd.f32 %v1492_v15, %v1222_v36  ;;  %v5398_v36 = vld [vmem:[#allocation39_spill] sm:$0xff]  ;;  %v5408_v15 = vld [vmem:[#allocation64_spill] sm:$0xff]  ;;  %v5439_v6 = vld [vmem:[#allocation137_spill] sm:$0xff] }
  0xc9   : > { %v1494_v10 = vadd.f32 %v1493_v49, %v1223_v27  ;;  %v5405_v27 = vld [vmem:[#allocation53_spill] sm:$0xff]  ;;  %v5443_v49 = vsub.f32 1.0, %v5384_v13  ;;  %v5453_v13 = vsub.f32 1.0, %v5389_v32 }
  0xcb   : > { %v1495_v40 = vadd.f32 %v1494_v10, %v1224_v55  ;;  %v5412_v10 = vld [vmem:[#allocation82_spill] sm:$0xff] }
  0xcd   : > { %v1496_v61 = vadd.f32 %v1495_v40, %v1225_v8  ;;  %v5440_v40 = vsub.f32 1.0, %v5381_v54 }
  0xcf   : > { %v1497_v63 = vadd.f32 %v1496_v61, %v1226_v17  ;;  %v5431_v17 = vld [vmem:[#allocation123_spill] sm:$0xff]  ;;  %v3366_v19 = vmax.f32 %v5440_v40, 0.0  ;;  %v3382_v61 = vmax.f32 %v5445_v53, 0.0  ;;  %v3403_v53 = vmax.f32 %v5455_v16, 0.0 }
  0xd1   : > { %v1498_v51 = vadd.f32 %v1497_v63, %v3198_v20  ;;  %v5438_v20 = vld [vmem:[#allocation136_spill] sm:$0xff]  ;;  %v3378_v63 = vmax.f32 %v5443_v49, 0.0  ;;  %5446 = vst [vmem:[#allocation12_spill] sm:$0xff] %v3382_v61  ;;  %v3399_v49 = vmax.f32 %v5453_v13, 0.0  ;;  %5456 = vst [vmem:[#allocation17_spill] sm:$0xff] %v3403_v53 }
  0xd3   : > { %v1499_v55 = vadd.f32 %v1498_v51, %v3204_v11  ;;  %v5435_v11 = vld [vmem:[#allocation131_spill] sm:$0xff]  ;;  %v3374_v51 = vmax.f32 %v5442_v0, 0.0  ;;  %5444 = vst [vmem:[#allocation11_spill] sm:$0xff] %v3378_v63  ;;  %v5451_v0 = vsub.f32 1.0, %v5388_v12  ;;  %5454 = vst [vmem:[#allocation16_spill] sm:$0xff] %v3399_v49  ;;  %v5461_v12 = vsub.f32 1.0, %v5393_v7 }
  0xd4   : > { %v5471_v7 = vsub.f32 1.0, %v5398_v36  ;;  %v5481_v36 = vsub.f32 1.0, %v5403_v57  ;;  %v3665_v63 = vld [vmem:[%s2096_s3 + $0x28] sm:$0xff] }
  0xd5   : > { %v1500_v8 = vadd.f32 %v1499_v55, %v3210_v42  ;;  %v5441_v42 = vsub.f32 1.0, %v5382_v59  ;;  %v5449_v59 = vsub.f32 1.0, %v5387_v35  ;;  %v5459_v35 = vsub.f32 1.0, %v5392_v39  ;;  %5603 = vst [vmem:[#allocation152_spill] sm:$0xff] %v3665_v63 }
  0xd6   : > { %v5469_v39 = vsub.f32 1.0, %v5397_v33 }
  0xd7   : > { %v1501_v1 = vadd.f32 %v1500_v8, %v3216_v60  ;;  %v3370_v55 = vmax.f32 %v5441_v42, 0.0  ;;  %v5447_v60 = vsub.f32 1.0, %v5386_v62  ;;  %v3390_v40 = vmax.f32 %v5449_v59, 0.0 }
  0xd8   : > { %v3395_v8 = vmax.f32 %v5451_v0, 0.0  ;;  %v5457_v62 = vsub.f32 1.0, %v5391_v23  ;;  %v5465_v59 = vsub.f32 1.0, %v5395_v2  ;;  %v5467_v23 = vsub.f32 1.0, %v5396_v44 }
  0xd9   : > { %v3386_v54 = vmax.f32 %v5447_v60, 0.0  ;;  %5450 = vst [vmem:[#allocation14_spill] sm:$0xff] %v3390_v40  ;;  %v1502_v3 = vadd.f32 %v1501_v1, %v3222_v38  ;;  %v3411_v60 = vmax.f32 %v5459_v35, 0.0  ;;  %v3415_v38 = vmax.f32 %v5461_v12, 0.0  ;;  %v3658_v40 = vld [vmem:[%s2096_s3 + $0x20] sm:$0xff] }
  0xda   : > { %5452 = vst [vmem:[#allocation15_spill] sm:$0xff] %v3395_v8  ;;  %v3407_v42 = vmax.f32 %v5457_v62, 0.0  ;;  %v5463_v1 = vsub.f32 1.0, %v5394_v18  ;;  %v3424_v0 = vmax.f32 %v5465_v59, 0.0  ;;  %v3428_v13 = vmax.f32 %v5467_v23, 0.0  ;;  %5600 = vst [vmem:[#allocation150_spill] sm:$0xff] %v3658_v40 }
  0xdb   : > { %5448 = vst [vmem:[#allocation13_spill] sm:$0xff] %v3386_v54  ;;  %5460 = vst [vmem:[#allocation21_spill] sm:$0xff] %v3411_v60  ;;  %v1503_v29 = vadd.f32 %v1502_v3, %v3228_v25  ;;  %v3432_v16 = vmax.f32 %v5469_v39, 0.0  ;;  %v3436_v62 = vmax.f32 %v5471_v7, 0.0  ;;  %v5473_v18 = vsub.f32 1.0, %v5399_v34  ;;  %v5601_v54 = vld [vmem:[#allocation26_spill] sm:$0xff] }
  0xdc   : > { %5458 = vst [vmem:[#allocation18_spill] sm:$0xff] %v3407_v42  ;;  %5462 = vst [vmem:[#allocation23_spill] sm:$0xff] %v3415_v38  ;;  %v3419_v32 = vmax.f32 %v5463_v1, 0.0  ;;  %v5475_v2 = vsub.f32 1.0, %v5400_v41  ;;  %v5477_v44 = vsub.f32 1.0, %v5401_v46  ;;  %v5479_v12 = vsub.f32 1.0, %v5402_v14 }
  0xdd   : > { %5466 = vst [vmem:[#allocation27_spill] sm:$0xff] %v3424_v0  ;;  %5468 = vst [vmem:[#allocation29_spill] sm:$0xff] %v3428_v13  ;;  %v3440_v35 = vmax.f32 %v5473_v18, 0.0  ;;  %v1504_v33 = vadd.f32 %v1503_v29, %v3234_v43  ;;  %v3457_v59 = vmax.f32 %v5481_v36, 0.0  ;;  %v5483_v34 = vsub.f32 1.0, %v5404_v48 }
  0xde   : > { %5464 = vst [vmem:[#allocation25_spill] sm:$0xff] %v3419_v32  ;;  %5470 = vst [vmem:[#allocation31_spill] sm:$0xff] %v3432_v16  ;;  %v3444_v25 = vmax.f32 %v5475_v2, 0.0  ;;  %v3448_v3 = vmax.f32 %v5477_v44, 0.0  ;;  %v3453_v1 = vmax.f32 %v5479_v12, 0.0  ;;  %v5485_v41 = vsub.f32 1.0, %v5405_v27 }
  0xdf   : > { %5472 = vst [vmem:[#allocation33_spill] sm:$0xff] %v3436_v62  ;;  %5474 = vst [vmem:[#allocation35_spill] sm:$0xff] %v3440_v35  ;;  %v3461_v23 = vmax.f32 %v5483_v34, 0.0  ;;  %v5487_v7 = vsub.f32 1.0, %v5406_v31  ;;  %v5489_v43 = vsub.f32 1.0, %v5407_v37  ;;  %v5491_v2 = vsub.f32 1.0, %v5408_v15 }
  0xe0   : > { %5476 = vst [vmem:[#allocation37_spill] sm:$0xff] %v3444_v25  ;;  %5478 = vst [vmem:[#allocation39_spill] sm:$0xff] %v3448_v3  ;;  %v3465_v39 = vmax.f32 %v5485_v41, 0.0  ;;  %v1505_v12 = vadd.f32 %v1504_v33, %v3240_v50  ;;  %v5493_v36 = vsub.f32 1.0, %v5409_v21  ;;  %v5495_v41 = vsub.f32 1.0, %v5410_v24 }
  0xe1   : > { %5480 = vst [vmem:[#allocation41_spill] sm:$0xff] %v3453_v1  ;;  %5482 = vst [vmem:[#allocation43_spill] sm:$0xff] %v3457_v59  ;;  %v3469_v18 = vmax.f32 %v5487_v7, 0.0  ;;  %v3473_v29 = vmax.f32 %v5489_v43, 0.0  ;;  %v3477_v44 = vmax.f32 %v5491_v2, 0.0  ;;  %v5497_v7 = vsub.f32 1.0, %v5411_v26 }
  0xe2   : > { %5484 = vst [vmem:[#allocation45_spill] sm:$0xff] %v3461_v23  ;;  %5486 = vst [vmem:[#allocation47_spill] sm:$0xff] %v3465_v39  ;;  %v3482_v34 = vmax.f32 %v5493_v36, 0.0  ;;  %v3486_v45 = vmax.f32 %v5495_v41, 0.0  ;;  %v5499_v43 = vsub.f32 1.0, %v5412_v10  ;;  %v5501_v2 = vsub.f32 1.0, %v5413_v9 }
  0xe3   : > { %5488 = vst [vmem:[#allocation49_spill] sm:$0xff] %v3469_v18  ;;  %5490 = vst [vmem:[#allocation51_spill] sm:$0xff] %v3473_v29  ;;  %v3490_v18 = vmax.f32 %v5497_v7, 0.0  ;;  %v5503_v50 = vsub.f32 1.0, %v2666_v28  ;;  %v5505_v36 = vld [vmem:[#allocation86_spill] sm:$0xff]  ;;  %v5509_v7 = vsub.f32 1.0, %v5415_v47  ;;  %v3662_v61 = vmul.f32 %v3658_v40, %v5601_v54 }
  0xe4   : > { %5492 = vst [vmem:[#allocation53_spill] sm:$0xff] %v3477_v44  ;;  %5494 = vst [vmem:[#allocation55_spill] sm:$0xff] %v3482_v34  ;;  %v3494_v29 = vmax.f32 %v5499_v43, 0.0  ;;  %v3498_v44 = vmax.f32 %v5501_v2, 0.0  ;;  %v5506_v34 = vsub.f32 1.0, %v5505_v36  ;;  %v5511_v43 = vld [vmem:[#allocation90_spill] sm:$0xff] }
  0xe5   : > { %5496 = vst [vmem:[#allocation59_spill] sm:$0xff] %v3486_v45  ;;  %5498 = vst [vmem:[#allocation64_spill] sm:$0xff] %v3490_v18  ;;  %v3502_v33 = vmax.f32 %v5503_v50, 0.0  ;;  %v5508_v45 = vld [vmem:[#allocation138_spill] sm:$0xff]  ;;  %v3511_v18 = vmax.f32 %v5509_v7, 0.0  ;;  %v5514_v2 = vld [vmem:[#allocation91_spill] sm:$0xff] }
  0xe6   : > { %5500 = vst [vmem:[#allocation69_spill] sm:$0xff] %v3494_v29  ;;  %5502 = vst [vmem:[#allocation74_spill] sm:$0xff] %v3498_v44  ;;  %v3506_v41 = vmax.f32 %v5506_v34, 0.0  ;;  %v1506_v39 = vadd.f32 %v1505_v12, %v5508_v45  ;;  %v5512_v29 = vsub.f32 1.0, %v5511_v43  ;;  %v5515_v44 = vsub.f32 1.0, %v5514_v2  ;;  %v5517_v50 = vld [vmem:[#allocation94_spill] sm:$0xff] }
  0xe7   : > { %5504 = vst [vmem:[#allocation79_spill] sm:$0xff] %v3502_v33  ;;  %5510 = vst [vmem:[#allocation83_spill] sm:$0xff] %v3511_v18  ;;  %v5518_v33 = vsub.f32 1.0, %v5517_v50  ;;  %v5520_v34 = vld [vmem:[#allocation95_spill] sm:$0xff]  ;;  %v5523_v45 = vsub.f32 1.0, %v5417_v22  ;;  %v5611_v40 = vld [vmem:[#allocation32_spill] sm:$0xff] }
  0xe8   : > { %5507 = vst [vmem:[#allocation82_spill] sm:$0xff] %v3506_v41  ;;  %v3515_v23 = vmax.f32 %v5512_v29, 0.0  ;;  %v3519_v59 = vmax.f32 %v5515_v44, 0.0  ;;  %v5521_v41 = vsub.f32 1.0, %v5520_v34  ;;  %v5525_v7 = vld [vmem:[#allocation99_spill] sm:$0xff]  ;;  %v5529_v44 = vld [vmem:[#allocation100_spill] sm:$0xff] }
  0xe9   : > { %v3523_v1 = vmax.f32 %v5518_v33, 0.0  ;;  %v3531_v12 = vmax.f32 %v5523_v45, 0.0  ;;  %v5526_v18 = vsub.f32 1.0, %v5525_v7  ;;  %v5532_v33 = vld [vmem:[#allocation103_spill] sm:$0xff]  ;;  %v5538_v45 = vld [vmem:[#allocation105_spill] sm:$0xff]  ;;  %5602 = vst [vmem:[#allocation151_spill] sm:$0xff] %v3662_v61 }
  0xea   : > { %5513 = vst [vmem:[#allocation87_spill] sm:$0xff] %v3515_v23  ;;  %5516 = vst [vmem:[#allocation96_spill] sm:$0xff] %v3519_v59  ;;  %v3527_v3 = vmax.f32 %v5521_v41, 0.0  ;;  %v5528_v23 = vld [vmem:[#allocation139_spill] sm:$0xff]  ;;  %v5530_v59 = vsub.f32 1.0, %v5529_v44  ;;  %v5535_v41 = vld [vmem:[#allocation104_spill] sm:$0xff] }
  0xeb   : > { %5519 = vst [vmem:[#allocation109_spill] sm:$0xff] %v3523_v1  ;;  %5524 = vst [vmem:[#allocation123_spill] sm:$0xff] %v3531_v12  ;;  %v3535_v29 = vmax.f32 %v5526_v18, 0.0  ;;  %v1507_v25 = vadd.f32 %v1506_v39, %v5528_v23  ;;  %v5533_v1 = vsub.f32 1.0, %v5532_v33  ;;  %v5539_v12 = vsub.f32 1.0, %v5538_v45  ;;  %v5541_v18 = vld [vmem:[#allocation108_spill] sm:$0xff] }
  0xec   : > { %5522 = vst [vmem:[#allocation122_spill] sm:$0xff] %v3527_v3  ;;  %v3540_v35 = vmax.f32 %v5530_v59, 0.0  ;;  %v5536_v3 = vsub.f32 1.0, %v5535_v41  ;;  %v5544_v23 = vsub.f32 1.0, %v5423_v56  ;;  %v5546_v39 = vld [vmem:[#allocation112_spill] sm:$0xff] }
  0xed   : > { %5527 = vst [vmem:[#allocation127_spill] sm:$0xff] %v3535_v29  ;;  %v3544_v62 = vmax.f32 %v5533_v1, 0.0  ;;  %v3552_v13 = vmax.f32 %v5539_v12, 0.0  ;;  %v5542_v29 = vsub.f32 1.0, %v5541_v18  ;;  %v5553_v12 = vld [vmem:[#allocation114_spill] sm:$0xff] }
  0xee   : > { %5531 = vst [vmem:[#allocation130_spill] sm:$0xff] %v3540_v35  ;;  %v3548_v16 = vmax.f32 %v5536_v3, 0.0  ;;  %v3560_v59 = vmax.f32 %v5544_v23, 0.0  ;;  %v5547_v35 = vsub.f32 1.0, %v5546_v39  ;;  %v5550_v3 = vld [vmem:[#allocation113_spill] sm:$0xff]  ;;  %v5559_v23 = vld [vmem:[#allocation118_spill] sm:$0xff] }
  0xef   : > { %5534 = vst [vmem:[#allocation131_spill] sm:$0xff] %v3544_v62  ;;  %5540 = vst [vmem:[#allocation135_spill] sm:$0xff] %v3552_v13  ;;  %v3556_v0 = vmax.f32 %v5542_v29, 0.0  ;;  %v5549_v62 = vld [vmem:[#allocation140_spill] sm:$0xff]  ;;  %v5554_v13 = vsub.f32 1.0, %v5553_v12  ;;  %v5556_v29 = vld [vmem:[#allocation117_spill] sm:$0xff] }
  0xf0   : > { %5537 = vst [vmem:[#allocation132_spill] sm:$0xff] %v3548_v16  ;;  %5545 = vst [vmem:[#allocation138_spill] sm:$0xff] %v3560_v59  ;;  %v3564_v1 = vmax.f32 %v5547_v35, 0.0  ;;  %v1508_v32 = vadd.f32 %v1507_v25, %v5549_v62  ;;  %v5551_v16 = vsub.f32 1.0, %v5550_v3  ;;  %v5560_v59 = vsub.f32 1.0, %v5559_v23  ;;  %v5562_v35 = vld [vmem:[#allocation121_spill] sm:$0xff] }
  0xf1   : > { %5543 = vst [vmem:[#allocation86_spill] sm:$0xff] %v3556_v0  ;;  %v3573_v60 = vmax.f32 %v5554_v13, 0.0  ;;  %v5557_v0 = vsub.f32 1.0, %v5556_v29  ;;  %v5567_v13 = vsub.f32 1.0, %v5431_v17 }
  0xf2   : > { %5548 = vst [vmem:[#allocation90_spill] sm:$0xff] %v3564_v1  ;;  %v3569_v38 = vmax.f32 %v5551_v16, 0.0  ;;  %v3581_v53 = vmax.f32 %v5560_v59, 0.0  ;;  %v5563_v1 = vsub.f32 1.0, %v5562_v35  ;;  %v5565_v16 = vsub.f32 1.0, %v5430_v5 }
  0xf3   : > { %5555 = vst [vmem:[#allocation94_spill] sm:$0xff] %v3573_v60  ;;  %v3577_v42 = vmax.f32 %v5557_v0, 0.0  ;;  %v3593_v60 = vmax.f32 %v5567_v13, 0.0  ;;  %v5569_v0 = vld [vmem:[#allocation141_spill] sm:$0xff] }
  0xf4   : > { %5552 = vst [vmem:[#allocation91_spill] sm:$0xff] %v3569_v38  ;;  %5561 = vst [vmem:[#allocation99_spill] sm:$0xff] %v3581_v53  ;;  %v3585_v62 = vmax.f32 %v5563_v1, 0.0  ;;  %v3589_v25 = vmax.f32 %v5565_v16, 0.0  ;;  %v5570_v38 = vld [vmem:[#allocation126_spill] sm:$0xff]  ;;  %v5573_v53 = vsub.f32 1.0, %v5433_v58 }
  0xf5   : > { %5558 = vst [vmem:[#allocation95_spill] sm:$0xff] %v3577_v42  ;;  %5568 = vst [vmem:[#allocation103_spill] sm:$0xff] %v3593_v60  ;;  %v1509_v42 = vadd.f32 %v1508_v32, %v5569_v0  ;;  %v5571_v49 = vsub.f32 1.0, %v5570_v38  ;;  %v5579_v32 = vsub.f32 1.0, %v5436_v52  ;;  %v5585_v60 = vld [vmem:[#allocation142_spill] sm:$0xff] }
  0xf6   : > { %5564 = vst [vmem:[#allocation139_spill] sm:$0xff] %v3585_v62  ;;  %5566 = vst [vmem:[#allocation100_spill] sm:$0xff] %v3589_v25  ;;  %v3602_v1 = vmax.f32 %v5573_v53, 0.0  ;;  %v5575_v62 = vsub.f32 1.0, %v5434_v4  ;;  %v5577_v25 = vsub.f32 1.0, %v5435_v11  ;;  %v5583_v53 = vsub.f32 1.0, %v5438_v20 }
  0xf7   : > { %v3598_v59 = vmax.f32 %v5571_v49, 0.0  ;;  %v3614_v0 = vmax.f32 %v5579_v32, 0.0  ;;  %v5581_v49 = vsub.f32 1.0, %v5437_v30  ;;  %v5589_v32 = vld [vmem:[#allocation19_spill] sm:$0xff]  ;;  %v5633_v20 = vld [vmem:[#allocation46_spill] sm:$0xff] }
  0xf8   : > { %5574 = vst [vmem:[#allocation105_spill] sm:$0xff] %v3602_v1  ;;  %v3606_v16 = vmax.f32 %v5575_v62, 0.0  ;;  %v3610_v13 = vmax.f32 %v5577_v25, 0.0  ;;  %v3622_v1 = vmax.f32 %v5583_v53, 0.0  ;;  %v1510_v62 = vadd.f32 %v1509_v42, %v5585_v60  ;;  %v3644_v42 = vld [vmem:[%s2096_s3 + $0x10] sm:$0xff]  ;;  %v5595_v60 = vld [vmem:[#allocation22_spill] sm:$0xff] }
  0xf9   : > { %5572 = vst [vmem:[#allocation104_spill] sm:$0xff] %v3598_v59  ;;  %5580 = vst [vmem:[#allocation140_spill] sm:$0xff] %v3614_v0  ;;  %v3618_v59 = vmax.f32 %v5581_v49, 0.0  ;;  %v3637_v49 = vld [vmem:[%s2096_s3 + $0x8] sm:$0xff] }
  0xfa   : > { %5576 = vst [vmem:[#allocation108_spill] sm:$0xff] %v3606_v16  ;;  %5578 = vst [vmem:[#allocation112_spill] sm:$0xff] %v3610_v13  ;;  %v5586_v16 = vsub.f32 1.0, %v5439_v6  ;;  %v3630_v13 = vld [vmem:[%s2096_s3] sm:$0xff] }
  0xfb   : > { %5582 = vst [vmem:[#allocation113_spill] sm:$0xff] %v3618_v59  ;;  %5584 = vst [vmem:[#allocation114_spill] sm:$0xff] %v3622_v1  ;;  %v3634_v0 = vmul.f32 %v3630_v13, %v5589_v32  ;;  %v5592_v59 = vld [vmem:[#allocation20_spill] sm:$0xff]  ;;  %v3687_v6 = vld [vmem:[%s2096_s3 + $0x40] sm:$0xff] }
  0xfc   : > { %v3627_v25 = vmax.f32 %v5586_v16, 0.0  ;;  %5588 = vst [vmem:[#allocation118_spill] sm:$0xff] %v3630_v13  ;;  %5591 = vst [vmem:[#allocation141_spill] sm:$0xff] %v3637_v49  ;;  %v3641_v53 = vmul.f32 %v3637_v49, %v5592_v59  ;;  %v3648_v16 = vmul.f32 %v3644_v42, %v5595_v60  ;;  %v5598_v1 = vld [vmem:[#allocation24_spill] sm:$0xff]  ;;  %v3673_v13 = vld [vmem:[%s2096_s3 + $0x30] sm:$0xff] }
  0xfd   : > { %5590 = vst [vmem:[#allocation121_spill] sm:$0xff] %v3634_v0  ;;  %5594 = vst [vmem:[#allocation142_spill] sm:$0xff] %v3644_v42  ;;  %v5604_v49 = vld [vmem:[#allocation28_spill] sm:$0xff] }
  0xfe   : > { %5587 = vst [vmem:[#allocation117_spill] sm:$0xff] %v3627_v25  ;;  %5593 = vst [vmem:[#allocation126_spill] sm:$0xff] %v3641_v53  ;;  %v3651_v25 = vld [vmem:[%s2096_s3 + $0x18] sm:$0xff]  ;;  %v3669_v42 = vmul.f32 %v3665_v63, %v5604_v49  ;;  %v5614_v63 = vld [vmem:[#allocation34_spill] sm:$0xff] }
  0xff   : > { %5596 = vst [vmem:[#allocation147_spill] sm:$0xff] %v3648_v16  ;;  %5597 = vst [vmem:[#allocation148_spill] sm:$0xff] %v3651_v25  ;;  %v3655_v8 = vmul.f32 %v3651_v25, %v5598_v1  ;;  %v5606_v16 = vld [vmem:[#allocation143_spill] sm:$0xff]  ;;  %v5608_v25 = vld [vmem:[#allocation30_spill] sm:$0xff] }
 0x100   : > { %5605 = vst [vmem:[#allocation153_spill] sm:$0xff] %v3669_v42  ;;  %v1511_v53 = vadd.f32 %v1510_v62, %v5606_v16  ;;  %5607 = vst [vmem:[#allocation143_spill] sm:$0xff] %v3673_v13  ;;  %v3680_v0 = vld [vmem:[%s2096_s3 + $0x38] sm:$0xff]  ;;  %v3691_v62 = vmul.f32 %v3687_v6, %v5614_v63  ;;  %v3694_v16 = vld [vmem:[%s2096_s3 + $0x48] sm:$0xff] }
 0x101   : > { %5599 = vst [vmem:[#allocation149_spill] sm:$0xff] %v3655_v8  ;;  %v3677_v8 = vmul.f32 %v3673_v13, %v5608_v25  ;;  %5610 = vst [vmem:[#allocation155_spill] sm:$0xff] %v3680_v0  ;;  %v3684_v61 = vmul.f32 %v3680_v0, %v5611_v40  ;;  %v5617_v42 = vld [vmem:[#allocation36_spill] sm:$0xff]  ;;  %v3701_v13 = vld [vmem:[%s2096_s3 + $0x50] sm:$0xff] }
 0x102   : > { %5613 = vst [vmem:[#allocation157_spill] sm:$0xff] %v3687_v6  ;;  %5615 = vst [vmem:[#allocation158_spill] sm:$0xff] %v3691_v62  ;;  %v3698_v25 = vmul.f32 %v3694_v16, %v5617_v42  ;;  %v3708_v0 = vld [vmem:[%s2096_s3 + $0x58] sm:$0xff]  ;;  %v3715_v6 = vld [vmem:[%s2096_s3 + $0x60] sm:$0xff] }
 0x103   : > { %5609 = vst [vmem:[#allocation154_spill] sm:$0xff] %v3677_v8  ;;  %5612 = vst [vmem:[#allocation156_spill] sm:$0xff] %v3684_v61  ;;  %v5620_v8 = vld [vmem:[#allocation38_spill] sm:$0xff]  ;;  %v5623_v61 = vld [vmem:[#allocation40_spill] sm:$0xff] }
 0x104   : > { %5616 = vst [vmem:[#allocation159_spill] sm:$0xff] %v3694_v16  ;;  %5618 = vst [vmem:[#allocation160_spill] sm:$0xff] %v3698_v25  ;;  %v3705_v40 = vmul.f32 %v3701_v13, %v5620_v8  ;;  %v3712_v63 = vmul.f32 %v3708_v0, %v5623_v61  ;;  %v5626_v62 = vld [vmem:[#allocation42_spill] sm:$0xff]  ;;  %v5628_v16 = vld [vmem:[#allocation144_spill] sm:$0xff] }
 0x105   : > { %5619 = vst [vmem:[#allocation161_spill] sm:$0xff] %v3701_v13  ;;  %5622 = vst [vmem:[#allocation163_spill] sm:$0xff] %v3708_v0  ;;  %v3719_v42 = vmul.f32 %v3715_v6, %v5626_v62  ;;  %v1512_v25 = vadd.f32 %v1511_v53, %v5628_v16  ;;  %v3723_v49 = vld [vmem:[%s2096_s3 + $0x68] sm:$0xff]  ;;  %v5630_v8 = vld [vmem:[#allocation44_spill] sm:$0xff] }
 0x106   : > { %5621 = vst [vmem:[#allocation162_spill] sm:$0xff] %v3705_v40  ;;  %5624 = vst [vmem:[#allocation164_spill] sm:$0xff] %v3712_v63  ;;  %v3727_v13 = vmul.f32 %v3723_v49, %v5630_v8  ;;  %v3730_v40 = vld [vmem:[%s2096_s3 + $0x70] sm:$0xff]  ;;  %v3737_v0 = vld [vmem:[%s2096_s3 + $0x78] sm:$0xff] }
 0x107   : > { %5625 = vst [vmem:[#allocation165_spill] sm:$0xff] %v3715_v6  ;;  %5627 = vst [vmem:[#allocation166_spill] sm:$0xff] %v3719_v42  ;;  %v3734_v61 = vmul.f32 %v3730_v40, %v5633_v20  ;;  %v5636_v63 = vld [vmem:[#allocation48_spill] sm:$0xff]  ;;  %v3744_v6 = vld [vmem:[%s2096_s3 + $0x80] sm:$0xff] }
 0x108   : > { %5629 = vst [vmem:[#allocation144_spill] sm:$0xff] %v3723_v49  ;;  %5631 = vst [vmem:[#allocation167_spill] sm:$0xff] %v3727_v13  ;;  %v3741_v62 = vmul.f32 %v3737_v0, %v5636_v63  ;;  %v5639_v53 = vld [vmem:[#allocation50_spill] sm:$0xff]  ;;  %v5642_v49 = vld [vmem:[#allocation52_spill] sm:$0xff] }
 0x109   : > { %5632 = vst [vmem:[#allocation168_spill] sm:$0xff] %v3730_v40  ;;  %5634 = vst [vmem:[#allocation169_spill] sm:$0xff] %v3734_v61  ;;  %v3748_v16 = vmul.f32 %v3744_v6, %v5639_v53  ;;  %v3751_v8 = vld [vmem:[%s2096_s3 + $0x88] sm:$0xff]  ;;  %v3758_v20 = vld [vmem:[%s2096_s3 + $0x90] sm:$0xff] }
 0x10a   : > { %5635 = vst [vmem:[#allocation170_spill] sm:$0xff] %v3737_v0  ;;  %5637 = vst [vmem:[#allocation171_spill] sm:$0xff] %v3741_v62  ;;  %v3755_v13 = vmul.f32 %v3751_v8, %v5642_v49  ;;  %v5645_v40 = vld [vmem:[#allocation54_spill] sm:$0xff]  ;;  %v3765_v63 = vld [vmem:[%s2096_s3 + $0x98] sm:$0xff] }
 0x10b   : > { %5638 = vst [vmem:[#allocation172_spill] sm:$0xff] %v3744_v6  ;;  %5640 = vst [vmem:[#allocation173_spill] sm:$0xff] %v3748_v16  ;;  %v3762_v61 = vmul.f32 %v3758_v20, %v5645_v40  ;;  %v5648_v0 = vld [vmem:[#allocation56_spill] sm:$0xff]  ;;  %v5649_v53 = vld [vmem:[#allocation145_spill] sm:$0xff] }
 0x10c   : > { %5641 = vst [vmem:[#allocation174_spill] sm:$0xff] %v3751_v8  ;;  %5643 = vst [vmem:[#allocation175_spill] sm:$0xff] %v3755_v13  ;;  %v3769_v62 = vmul.f32 %v3765_v63, %v5648_v0  ;;  %v1513_v6 = vadd.f32 %v1512_v25, %v5649_v53  ;;  %v5650_v16 = vld [vmem:[#allocation57_spill] sm:$0xff]  ;;  %v5651_v49 = vld [vmem:[#allocation58_spill] sm:$0xff] }
 0x10d   : > { %5644 = vst [vmem:[#allocation176_spill] sm:$0xff] %v3758_v20  ;;  %5646 = vst [vmem:[#allocation177_spill] sm:$0xff] %v3762_v61  ;;  %v3774_v42 = vmul.f32 %v5650_v16, %v5401_v46  ;;  %v3778_v8 = vmul.f32 %v5651_v49, %v5402_v14  ;;  %v5652_v13 = vld [vmem:[#allocation60_spill] sm:$0xff]  ;;  %v5653_v20 = vld [vmem:[#allocation61_spill] sm:$0xff] }
 0x10e   : > { %5647 = vst [vmem:[#allocation178_spill] sm:$0xff] %v3765_v63  ;;  %v3782_v40 = vmul.f32 %v5652_v13, %v5403_v57  ;;  %v3786_v61 = vmul.f32 %v5653_v20, %v5404_v48  ;;  %v5654_v0 = vld [vmem:[#allocation62_spill] sm:$0xff]  ;;  %v5655_v25 = vld [vmem:[#allocation63_spill] sm:$0xff]  ;;  %v5656_v53 = vld [vmem:[#allocation65_spill] sm:$0xff] }
 0x10f   : > { %v3790_v63 = vmul.f32 %v5654_v0, %v5405_v27  ;;  %v3794_v46 = vmul.f32 %v5655_v25, %v5406_v31  ;;  %v3798_v14 = vmul.f32 %v5656_v53, %v5407_v37  ;;  %v5657_v49 = vld [vmem:[#allocation146_spill] sm:$0xff]  ;;  %v5659_v48 = vld [vmem:[#allocation67_spill] sm:$0xff]  ;;  %v5660_v27 = vld [vmem:[#allocation68_spill] sm:$0xff] }
 0x110   : > { %v1514_v16 = vadd.f32 %v1513_v6, %v5657_v49  ;;  %v5658_v57 = vld [vmem:[#allocation66_spill] sm:$0xff]  ;;  %v3807_v20 = vmul.f32 %v5659_v48, %v5409_v21  ;;  %v3811_v0 = vmul.f32 %v5660_v27, %v5410_v24  ;;  %v5662_v37 = vld [vmem:[#allocation71_spill] sm:$0xff]  ;;  %v5663_v6 = vld [vmem:[#allocation72_spill] sm:$0xff] }
 0x111   : > { %v3803_v13 = vmul.f32 %v5658_v57, %v5408_v15  ;;  %v5661_v31 = vld [vmem:[#allocation70_spill] sm:$0xff]  ;;  %v3819_v53 = vmul.f32 %v5662_v37, %v5412_v10  ;;  %v3823_v15 = vmul.f32 %v5663_v6, %v5413_v9  ;;  %v5664_v49 = vld [vmem:[#allocation73_spill] sm:$0xff]  ;;  %v5665_v24 = vld [vmem:[#allocation75_spill] sm:$0xff] }
 0x112   : > { %v3815_v25 = vmul.f32 %v5661_v31, %v5411_v26  ;;  %v3827_v21 = vmul.f32 %v5664_v49, %v2666_v28  ;;  %1515 = vadd.xlane.f32.xlu1 %v1514_v16  ;;  %v3831_v27 = vmul.f32 %v5665_v24, %v5505_v36  ;;  %v5666_v26 = vld [vmem:[#allocation76_spill] sm:$0xff]  ;;  %v5667_v10 = vld [vmem:[#allocation77_spill] sm:$0xff]  ;;  %v5668_v9 = vld [vmem:[#allocation78_spill] sm:$0xff] }
 0x113   : > { %v3835_v31 = vmul.f32 %v5666_v26, %v5415_v47  ;;  %v3839_v37 = vmul.f32 %v5667_v10, %v5511_v43  ;;  %v3843_v6 = vmul.f32 %v5668_v9, %v5514_v2  ;;  %v5669_v28 = vld [vmem:[#allocation80_spill] sm:$0xff]  ;;  %v5670_v16 = vld [vmem:[#allocation81_spill] sm:$0xff]  ;;  %v5684_v57 = vld [vmem:[#allocation102_spill] sm:$0xff] }
 0x114   : > { %v3847_v49 = vmul.f32 %v5669_v28, %v5517_v50  ;;  %v3851_v36 = vmul.f32 %v5670_v16, %v5520_v34  ;;  %v5671_v24 = vld [vmem:[#allocation84_spill] sm:$0xff]  ;;  %v5672_v26 = vld [vmem:[#allocation85_spill] sm:$0xff]  ;;  %v668_v28 = vsub.f32 1.0, %v5589_v32  ;;  %v669_v34 = vsub.f32 1.0, %v5592_v59 }
 0x115   : > { %v3855_v47 = vmul.f32 %v5671_v24, %v5417_v22  ;;  %v3859_v43 = vmul.f32 %v5672_v26, %v5525_v7  ;;  %v5673_v10 = vld [vmem:[#allocation88_spill] sm:$0xff]  ;;  %v5674_v9 = vld [vmem:[#allocation89_spill] sm:$0xff] }
 0x116   : > { %v3863_v2 = vmul.f32 %v5673_v10, %v5529_v44  ;;  %v3867_v50 = vmul.f32 %v5674_v9, %v5532_v33  ;;  %v5675_v16 = vld [vmem:[#allocation92_spill] sm:$0xff]  ;;  %v5676_v24 = vld [vmem:[#allocation93_spill] sm:$0xff]  ;;  %v5680_v10 = vld [vmem:[#allocation98_spill] sm:$0xff] }
 0x117   : > { %v3873_v22 = vmul.f32 %v5675_v16, %v5535_v41  ;;  %v3877_v7 = vmul.f32 %v5676_v24, %v5538_v45  ;;  %v5678_v26 = vld [vmem:[#allocation97_spill] sm:$0xff]  ;;  %v3885_v33 = vmul.f32 %v5680_v10, %v5423_v56  ;;  %v3893_v41 = vmul.f32 %v5684_v57, %v5550_v3  ;;  %v5686_v16 = vld [vmem:[#allocation106_spill] sm:$0xff]  ;;  %v5694_v3 = vld [vmem:[#allocation115_spill] sm:$0xff] }
 0x118   : > { %v3881_v44 = vmul.f32 %v5678_v26, %v5541_v18  ;;  %v5682_v9 = vld [vmem:[#allocation101_spill] sm:$0xff]  ;;  %v3897_v45 = vmul.f32 %v5686_v16, %v5553_v12  ;;  %v670_v24 = vsub.f32 1.0, %v5595_v60  ;;  %v5688_v18 = vld [vmem:[#allocation107_spill] sm:$0xff]  ;;  %v5690_v56 = vld [vmem:[#allocation110_spill] sm:$0xff]  ;;  %v3914_v57 = vmul.f32 %v5694_v3, %v5430_v5 }
 0x119   : > { %5677 = vst [vmem:[#allocation145_spill] sm:$0xff] %v3877_v7  ;;  %5681 = vst [vmem:[#allocation179_spill] sm:$0xff] %v3885_v33  ;;  %v3889_v48 = vmul.f32 %v5682_v9, %v5546_v39  ;;  %v3902_v26 = vmul.f32 %v5688_v18, %v5556_v29  ;;  %v3906_v10 = vmul.f32 %v5690_v56, %v5559_v23  ;;  %v5692_v39 = vld [vmem:[#allocation111_spill] sm:$0xff]  ;;  %v5696_v12 = vld [vmem:[#allocation116_spill] sm:$0xff]  ;;  %v671_v60 = vsub.f32 1.0, %v5598_v1 }
 0x11a   : > { %5679 = vst [vmem:[#allocation146_spill] sm:$0xff] %v3881_v44  ;;  %5685 = vst [vmem:[#allocation181_spill] sm:$0xff] %v3893_v41  ;;  %v3910_v9 = vmul.f32 %v5692_v39, %v5562_v35  ;;  %v3918_v16 = vmul.f32 %v5696_v12, %v5431_v17  ;;  %v732_v29 = vmul.f32 %v668_v28, %v3366_v19  ;;  %v5698_v23 = vld [vmem:[#allocation119_spill] sm:$0xff]  ;;  %v5700_v35 = vld [vmem:[#allocation120_spill] sm:$0xff] }
 0x11b   : > { %5683 = vst [vmem:[#allocation180_spill] sm:$0xff] %v3889_v48  ;;  %5687 = vst [vmem:[#allocation182_spill] sm:$0xff] %v3897_v45  ;;  %v733_v18 = vmul.f32 %v669_v34, %v3370_v55  ;;  %v3925_v56 = vmul.f32 %v5698_v23, %v5570_v38  ;;  %v3929_v39 = vmul.f32 %v5700_v35, %v5433_v58  ;;  %v5702_v5 = vld [vmem:[#allocation124_spill] sm:$0xff]  ;;  %v5704_v17 = vld [vmem:[#allocation125_spill] sm:$0xff]  ;;  %v672_v23 = vsub.f32 1.0, %v5601_v54 }
 0x11c   : > { %5689 = vst [vmem:[#allocation183_spill] sm:$0xff] %v3902_v26  ;;  %5691 = vst [vmem:[#allocation184_spill] sm:$0xff] %v3906_v10  ;;  %v3933_v3 = vmul.f32 %v5702_v5, %v5434_v4  ;;  %v3937_v12 = vmul.f32 %v5704_v17, %v5435_v11  ;;  %v5706_v28 = vld [vmem:[#allocation128_spill] sm:$0xff]  ;;  %v5708_v34 = vld [vmem:[#allocation129_spill] sm:$0xff]  ;;  %v734_v58 = vmul.f32 %v670_v24, %v3374_v51 }
 0x11d   : > { %5693 = vst [vmem:[#allocation185_spill] sm:$0xff] %v3910_v9  ;;  %5695 = vst [vmem:[#allocation186_spill] sm:$0xff] %v3914_v57  ;;  %v3941_v1 = vmul.f32 %v5706_v28, %v5436_v52  ;;  %v3945_v38 = vmul.f32 %v5708_v34, %v5437_v30  ;;  %v5710_v35 = vld [vmem:[#allocation136_spill] sm:$0xff]  ;;  %v5713_v5 = vld [vmem:[#allocation137_spill] sm:$0xff]  ;;  %v796_v24 = vmul.f32 %v732_v29, %v3366_v19 }
 0x11e   : > { %5697 = vst [vmem:[#allocation187_spill] sm:$0xff] %v3918_v16  ;;  %5699 = vst [vmem:[#allocation188_spill] sm:$0xff] %v3925_v56  ;;  %v5716_v17 = vld [vmem:[#allocation121_spill] sm:$0xff]  ;;  %v5720_v30 = vld [vmem:[#allocation28_spill] sm:$0xff]  ;;  %v797_v32 = vmul.f32 %v733_v18, %v3370_v55  ;;  %v798_v55 = vmul.f32 %v734_v58, %v3374_v51 }
 0x11f   : > { %5701 = vst [vmem:[#allocation189_spill] sm:$0xff] %v3929_v39  ;;  %5703 = vst [vmem:[#allocation190_spill] sm:$0xff] %v3933_v3  ;;  %v5711_v39 = vld [vmem:[#allocation133_spill] sm:$0xff]  ;;  %v5714_v3 = vld [vmem:[#allocation134_spill] sm:$0xff] }
 0x120   : > { %5705 = vst [vmem:[#allocation191_spill] sm:$0xff] %v3937_v12  ;;  %5707 = vst [vmem:[#allocation192_spill] sm:$0xff] %v3941_v1  ;;  %v3951_v4 = vmul.f32 %v5711_v39, %v5710_v35  ;;  %v3955_v11 = vmul.f32 %v5714_v3, %v5713_v5  ;;  %v5717_v12 = vld [vmem:[#allocation118_spill] sm:$0xff]  ;;  %v5719_v28 = vld [vmem:[#allocation141_spill] sm:$0xff] }
 0x121   : > { %5709 = vst [vmem:[#allocation193_spill] sm:$0xff] %v3945_v38  ;;  %v604_v52 = vmul.f32 %v5717_v12, %v5716_v17  ;;  %v5718_v1 = vld [vmem:[#allocation126_spill] sm:$0xff]  ;;  %v673_v38 = vsub.f32 1.0, %v5720_v30  ;;  %v5721_v34 = vld [vmem:[#allocation11_spill] sm:$0xff]  ;;  %v5724_v56 = vld [vmem:[#allocation149_spill] sm:$0xff] }
 0x122   : > { %5712 = vst [vmem:[#allocation136_spill] sm:$0xff] %v3951_v4  ;;  %5715 = vst [vmem:[#allocation137_spill] sm:$0xff] %v3955_v11  ;;  %v605_v59 = vmul.f32 %v5719_v28, %v5718_v1  ;;  %v735_v54 = vmul.f32 %v671_v60, %v5721_v34  ;;  %v5722_v35 = vld [vmem:[#allocation147_spill] sm:$0xff]  ;;  %v5723_v4 = vld [vmem:[#allocation142_spill] sm:$0xff] }
 0x123   : > { %v606_v39 = vmul.f32 %v5723_v4, %v5722_v35  ;;  %v5725_v5 = vld [vmem:[#allocation148_spill] sm:$0xff]  ;;  %v5726_v3 = vld [vmem:[#allocation151_spill] sm:$0xff]  ;;  %v5727_v16 = vld [vmem:[#allocation150_spill] sm:$0xff]  ;;  %v860_v45 = vadd.f32 %v796_v24, %v604_v52 }
 0x124   : > { %v607_v11 = vmul.f32 %v5725_v5, %v5724_v56  ;;  %v608_v17 = vmul.f32 %v5727_v16, %v5726_v3  ;;  %v5728_v12 = vld [vmem:[#allocation153_spill] sm:$0xff]  ;;  %v5729_v57 = vld [vmem:[#allocation152_spill] sm:$0xff]  ;;  %v5730_v28 = vld [vmem:[#allocation154_spill] sm:$0xff]  ;;  %v861_v51 = vadd.f32 %v797_v32, %v605_v59 }
 0x125   : > { %v609_v1 = vmul.f32 %v5729_v57, %v5728_v12  ;;  %v5731_v30 = vld [vmem:[#allocation143_spill] sm:$0xff]  ;;  %v5732_v60 = vld [vmem:[#allocation30_spill] sm:$0xff]  ;;  %v5733_v19 = vld [vmem:[#allocation12_spill] sm:$0xff]  ;;  %v862_v52 = vadd.f32 %v798_v55, %v606_v39 }
 0x126   : > { %v610_v9 = vmul.f32 %v5731_v30, %v5730_v28  ;;  %v674_v10 = vsub.f32 1.0, %v5732_v60  ;;  %v736_v29 = vmul.f32 %v672_v23, %v5733_v19  ;;  %v5734_v18 = vld [vmem:[#allocation156_spill] sm:$0xff]  ;;  %v5735_v35 = vld [vmem:[#allocation155_spill] sm:$0xff]  ;;  %v5736_v56 = vld [vmem:[#allocation158_spill] sm:$0xff]  ;;  %v799_v23 = vmul.f32 %v735_v54, %v5721_v34 }
 0x127   : > { %v3980_v4 = vmul.f32 %v5735_v35, %v5734_v18  ;;  %v5737_v5 = vld [vmem:[#allocation157_spill] sm:$0xff]  ;;  %v5738_v3 = vld [vmem:[#allocation160_spill] sm:$0xff]  ;;  %v5739_v16 = vld [vmem:[#allocation159_spill] sm:$0xff] }
 0x128   : > { %v3984_v26 = vmul.f32 %v5737_v5, %v5736_v56  ;;  %v3988_v12 = vmul.f32 %v5739_v16, %v5738_v3  ;;  %v5740_v57 = vld [vmem:[#allocation32_spill] sm:$0xff]  ;;  %v5741_v30 = vld [vmem:[#allocation13_spill] sm:$0xff]  ;;  %v5742_v58 = vld [vmem:[#allocation162_spill] sm:$0xff]  ;;  %v800_v32 = vmul.f32 %v736_v29, %v5733_v19  ;;  %v863_v19 = vadd.f32 %v799_v23, %v607_v11 }
 0x129   : > { %v675_v28 = vsub.f32 1.0, %v5740_v57  ;;  %v737_v60 = vmul.f32 %v673_v38, %v5741_v30  ;;  %v5743_v41 = vld [vmem:[#allocation161_spill] sm:$0xff]  ;;  %v5744_v35 = vld [vmem:[#allocation164_spill] sm:$0xff]  ;;  %v5745_v48 = vld [vmem:[#allocation163_spill] sm:$0xff]  ;;  %v1244_v29 = vadd.f32 %v861_v51, %v860_v45 }
 0x12a   : > { %v3995_v18 = vmul.f32 %v5743_v41, %v5742_v58  ;;  %v3999_v56 = vmul.f32 %v5745_v48, %v5744_v35  ;;  %v5746_v5 = vld [vmem:[#allocation166_spill] sm:$0xff]  ;;  %v5747_v33 = vld [vmem:[#allocation165_spill] sm:$0xff]  ;;  %v5748_v16 = vld [vmem:[#allocation167_spill] sm:$0xff]  ;;  %v864_v45 = vadd.f32 %v800_v32, %v608_v17 }
 0x12b   : > { %v4003_v3 = vmul.f32 %v5747_v33, %v5746_v5  ;;  %v5749_v57 = vld [vmem:[#allocation144_spill] sm:$0xff]  ;;  %v5751_v38 = vld [vmem:[#allocation34_spill] sm:$0xff]  ;;  %v5753_v24 = vld [vmem:[#allocation169_spill] sm:$0xff]  ;;  %v801_v39 = vmul.f32 %v737_v60, %v5741_v30  ;;  %v1245_v30 = vadd.f32 %v1244_v29, %v862_v52 }
 0x12c   : > { %v4007_v44 = vmul.f32 %v5749_v57, %v5748_v16  ;;  %v676_v54 = vsub.f32 1.0, %v5751_v38  ;;  %v5752_v34 = vld [vmem:[#allocation14_spill] sm:$0xff]  ;;  %v5754_v58 = vld [vmem:[#allocation168_spill] sm:$0xff]  ;;  %v5756_v35 = vld [vmem:[#allocation171_spill] sm:$0xff] }
 0x12d   : > { %v738_v59 = vmul.f32 %v674_v10, %v5752_v34  ;;  %v4014_v41 = vmul.f32 %v5754_v58, %v5753_v24  ;;  %v5757_v48 = vld [vmem:[#allocation170_spill] sm:$0xff]  ;;  %v5759_v33 = vld [vmem:[#allocation173_spill] sm:$0xff]  ;;  %v5760_v7 = vld [vmem:[#allocation172_spill] sm:$0xff]  ;;  %v865_v52 = vadd.f32 %v801_v39, %v609_v1  ;;  %v1246_v29 = vadd.f32 %v1245_v30, %v863_v19 }
 0x12e   : > { %5750 = vst [vmem:[#allocation121_spill] sm:$0xff] %v4007_v44  ;;  %v4018_v5 = vmul.f32 %v5757_v48, %v5756_v35  ;;  %v4022_v16 = vmul.f32 %v5760_v7, %v5759_v33  ;;  %v5762_v57 = vld [vmem:[#allocation36_spill] sm:$0xff]  ;;  %v5763_v10 = vld [vmem:[#allocation15_spill] sm:$0xff]  ;;  %v5765_v24 = vld [vmem:[#allocation174_spill] sm:$0xff] }
 0x12f   : > { %5755 = vst [vmem:[#allocation126_spill] sm:$0xff] %v4014_v41  ;;  %v677_v38 = vsub.f32 1.0, %v5762_v57  ;;  %v739_v44 = vmul.f32 %v675_v28, %v5763_v10  ;;  %v5764_v55 = vld [vmem:[#allocation175_spill] sm:$0xff]  ;;  %v5766_v35 = vld [vmem:[#allocation177_spill] sm:$0xff]  ;;  %v5767_v48 = vld [vmem:[#allocation176_spill] sm:$0xff]  ;;  %v802_v11 = vmul.f32 %v738_v59, %v5752_v34  ;;  %v1247_v30 = vadd.f32 %v1246_v29, %v864_v45 }
 0x130   : > { %5758 = vst [vmem:[#allocation11_spill] sm:$0xff] %v4018_v5  ;;  %5761 = vst [vmem:[#allocation147_spill] sm:$0xff] %v4022_v16  ;;  %v4029_v58 = vmul.f32 %v5765_v24, %v5764_v55  ;;  %v4033_v5 = vmul.f32 %v5767_v48, %v5766_v35  ;;  %v5768_v33 = vld [vmem:[#allocation178_spill] sm:$0xff]  ;;  %v5770_v28 = vld [vmem:[#allocation16_spill] sm:$0xff] }
 0x131   : > { %v4037_v7 = vmul.f32 %v5768_v33, %v3769_v62  ;;  %v5769_v57 = vld [vmem:[#allocation38_spill] sm:$0xff]  ;;  %v740_v41 = vmul.f32 %v676_v54, %v5770_v28  ;;  %v4043_v60 = vld [vmem:[%s2096_s3 + $0xa0] sm:$0xff]  ;;  %v4057_v55 = vld [vmem:[%s2096_s3 + $0xb0] sm:$0xff]  ;;  %v866_v19 = vadd.f32 %v802_v11, %v610_v9  ;;  %v1248_v29 = vadd.f32 %v1247_v30, %v865_v52 }
 0x132   : > { %v678_v16 = vsub.f32 1.0, %v5769_v57  ;;  %5771 = vst [vmem:[#allocation149_spill] sm:$0xff] %v4043_v60  ;;  %v4047_v23 = vmul.f32 %v4043_v60, %v3774_v42  ;;  %v4050_v51 = vld [vmem:[%s2096_s3 + $0xa8] sm:$0xff]  ;;  %5773 = vst [vmem:[#allocation153_spill] sm:$0xff] %v4057_v55  ;;  %v4061_v54 = vmul.f32 %v4057_v55, %v3782_v40  ;;  %v5774_v17 = vld [vmem:[#allocation40_spill] sm:$0xff]  ;;  %v803_v42 = vmul.f32 %v739_v44, %v5763_v10 }
 0x133   : > { %5772 = vst [vmem:[#allocation151_spill] sm:$0xff] %v4050_v51  ;;  %v4054_v62 = vmul.f32 %v4050_v51, %v3778_v8  ;;  %v679_v34 = vsub.f32 1.0, %v5774_v17  ;;  %v5775_v59 = vld [vmem:[#allocation17_spill] sm:$0xff]  ;;  %v4067_v35 = vld [vmem:[%s2096_s3 + $0xb8] sm:$0xff]  ;;  %v4081_v55 = vld [vmem:[%s2096_s3 + $0xc8] sm:$0xff] }
 0x134   : > { %v741_v32 = vmul.f32 %v677_v38, %v5775_v59  ;;  %5776 = vst [vmem:[#allocation154_spill] sm:$0xff] %v4067_v35  ;;  %v4071_v8 = vmul.f32 %v4067_v35, %v3786_v61  ;;  %v4074_v51 = vld [vmem:[%s2096_s3 + $0xc0] sm:$0xff]  ;;  %5778 = vst [vmem:[#allocation156_spill] sm:$0xff] %v4081_v55  ;;  %v4085_v44 = vmul.f32 %v4081_v55, %v3794_v46  ;;  %v5779_v1 = vld [vmem:[#allocation42_spill] sm:$0xff] }
 0x135   : > { %5777 = vst [vmem:[#allocation12_spill] sm:$0xff] %v4074_v51  ;;  %v4078_v40 = vmul.f32 %v4074_v51, %v3790_v63  ;;  %v680_v38 = vsub.f32 1.0, %v5779_v1  ;;  %v5780_v10 = vld [vmem:[#allocation18_spill] sm:$0xff]  ;;  %v804_v61 = vmul.f32 %v740_v41, %v5770_v28  ;;  %v4091_v35 = vld [vmem:[%s2096_s3 + $0xd0] sm:$0xff]  ;;  %v4098_v51 = vld [vmem:[%s2096_s3 + $0xd8] sm:$0xff]  ;;  %v867_v45 = vadd.f32 %v803_v42, %v3980_v4 }
 0x136   : > { %v742_v39 = vmul.f32 %v678_v16, %v5780_v10  ;;  %5781 = vst [vmem:[#allocation158_spill] sm:$0xff] %v4091_v35  ;;  %v4095_v63 = vmul.f32 %v4091_v35, %v3798_v14  ;;  %5782 = vst [vmem:[#allocation160_spill] sm:$0xff] %v4098_v51  ;;  %v4102_v46 = vmul.f32 %v4098_v51, %v3803_v13  ;;  %v4105_v55 = vld [vmem:[%s2096_s3 + $0xe0] sm:$0xff]  ;;  %v5784_v9 = vld [vmem:[#allocation44_spill] sm:$0xff] }
 0x137   : > { %5783 = vst [vmem:[#allocation13_spill] sm:$0xff] %v4105_v55  ;;  %v4109_v41 = vmul.f32 %v4105_v55, %v3807_v20  ;;  %v681_v16 = vsub.f32 1.0, %v5784_v9  ;;  %v5785_v28 = vld [vmem:[#allocation21_spill] sm:$0xff]  ;;  %v805_v14 = vmul.f32 %v741_v32, %v5775_v59  ;;  %v4116_v13 = vld [vmem:[%s2096_s3 + $0xe8] sm:$0xff]  ;;  %v4123_v20 = vld [vmem:[%s2096_s3 + $0xf0] sm:$0xff]  ;;  %v868_v30 = vadd.f32 %v804_v61, %v3984_v26 }
 0x138   : > { %v743_v11 = vmul.f32 %v679_v34, %v5785_v28  ;;  %5786 = vst [vmem:[#allocation162_spill] sm:$0xff] %v4116_v13  ;;  %v4120_v51 = vmul.f32 %v4116_v13, %v3811_v0  ;;  %5787 = vst [vmem:[#allocation164_spill] sm:$0xff] %v4123_v20  ;;  %v4127_v55 = vmul.f32 %v4123_v20, %v3815_v25  ;;  %v4130_v34 = vld [vmem:[%s2096_s3 + $0xf8] sm:$0xff]  ;;  %v5789_v4 = vld [vmem:[#allocation46_spill] sm:$0xff] }
 0x139   : > { %5788 = vst [vmem:[#allocation166_spill] sm:$0xff] %v4130_v34  ;;  %v4134_v59 = vmul.f32 %v4130_v34, %v3819_v53  ;;  %v682_v32 = vsub.f32 1.0, %v5789_v4  ;;  %v5790_v42 = vld [vmem:[#allocation23_spill] sm:$0xff]  ;;  %v806_v0 = vmul.f32 %v742_v39, %v5780_v10  ;;  %v1249_v13 = vadd.f32 %v1248_v29, %v866_v19  ;;  %v4141_v25 = vld [vmem:[%s2096_s3 + $0x100] sm:$0xff]  ;;  %v4148_v53 = vld [vmem:[%s2096_s3 + $0x108] sm:$0xff] }
 0x13a   : > { %v744_v52 = vmul.f32 %v680_v38, %v5790_v42  ;;  %5791 = vst [vmem:[#allocation167_spill] sm:$0xff] %v4141_v25  ;;  %v4145_v20 = vmul.f32 %v4141_v25, %v3823_v15  ;;  %5792 = vst [vmem:[#allocation14_spill] sm:$0xff] %v4148_v53  ;;  %v4152_v34 = vmul.f32 %v4148_v53, %v3827_v21  ;;  %v4155_v38 = vld [vmem:[%s2096_s3 + $0x110] sm:$0xff]  ;;  %v5794_v26 = vld [vmem:[#allocation48_spill] sm:$0xff] }
 0x13b   : > { %5793 = vst [vmem:[#allocation169_spill] sm:$0xff] %v4155_v38  ;;  %v4159_v10 = vmul.f32 %v4155_v38, %v3831_v27  ;;  %v683_v39 = vsub.f32 1.0, %v5794_v26  ;;  %v5795_v61 = vld [vmem:[#allocation25_spill] sm:$0xff]  ;;  %v807_v15 = vmul.f32 %v743_v11, %v5785_v28  ;;  %v869_v29 = vadd.f32 %v805_v14, %v3988_v12  ;;  %v4166_v21 = vld [vmem:[%s2096_s3 + $0x118] sm:$0xff]  ;;  %v5800_v12 = vld [vmem:[#allocation50_spill] sm:$0xff] }
 0x13c   : > { %v745_v19 = vmul.f32 %v681_v16, %v5795_v61  ;;  %v1250_v25 = vadd.f32 %v1249_v13, %v867_v45  ;;  %5796 = vst [vmem:[#allocation171_spill] sm:$0xff] %v4166_v21  ;;  %v4170_v53 = vmul.f32 %v4166_v21, %v3835_v31  ;;  %v4173_v27 = vld [vmem:[%s2096_s3 + $0x120] sm:$0xff]  ;;  %v4180_v16 = vld [vmem:[%s2096_s3 + $0x128] sm:$0xff]  ;;  %v684_v11 = vsub.f32 1.0, %v5800_v12  ;;  %v5801_v14 = vld [vmem:[#allocation27_spill] sm:$0xff] }
 0x13d   : > { %5797 = vst [vmem:[#allocation173_spill] sm:$0xff] %v4173_v27  ;;  %v4177_v38 = vmul.f32 %v4173_v27, %v3839_v37  ;;  %5798 = vst [vmem:[#allocation15_spill] sm:$0xff] %v4180_v16  ;;  %v4184_v28 = vmul.f32 %v4180_v16, %v3843_v6  ;;  %v746_v45 = vmul.f32 %v682_v32, %v5801_v14  ;;  %v4191_v37 = vld [vmem:[%s2096_s3 + $0x130] sm:$0xff]  ;;  %v4198_v6 = vld [vmem:[%s2096_s3 + $0x138] sm:$0xff] }
 0x13e   : > { %v808_v31 = vmul.f32 %v744_v52, %v5790_v42  ;;  %v870_v13 = vadd.f32 %v806_v0, %v3995_v18  ;;  %v1251_v21 = vadd.f32 %v1250_v25, %v868_v30  ;;  %5802 = vst [vmem:[#allocation174_spill] sm:$0xff] %v4191_v37  ;;  %v4195_v27 = vmul.f32 %v4191_v37, %v3847_v49  ;;  %v4205_v32 = vld [vmem:[%s2096_s3 + $0x140] sm:$0xff]  ;;  %v5808_v18 = vld [vmem:[#allocation52_spill] sm:$0xff] }
 0x13f   : > { %5799 = vst [vmem:[#allocation175_spill] sm:$0xff] %v4184_v28  ;;  %5804 = vst [vmem:[#allocation176_spill] sm:$0xff] %v4198_v6  ;;  %v4202_v16 = vmul.f32 %v4198_v6, %v3851_v36  ;;  %v4209_v42 = vmul.f32 %v4205_v32, %v3855_v47  ;;  %v685_v52 = vsub.f32 1.0, %v5808_v18  ;;  %v5809_v0 = vld [vmem:[#allocation29_spill] sm:$0xff]  ;;  %v809_v49 = vmul.f32 %v745_v19, %v5795_v61  ;;  %v4216_v36 = vld [vmem:[%s2096_s3 + $0x148] sm:$0xff] }
 0x140   : > { %5803 = vst [vmem:[#allocation177_spill] sm:$0xff] %v4195_v27  ;;  %5806 = vst [vmem:[#allocation38_spill] sm:$0xff] %v4205_v32  ;;  %v747_v30 = vmul.f32 %v683_v39, %v5809_v0  ;;  %v871_v25 = vadd.f32 %v807_v15, %v3999_v56  ;;  %v1252_v37 = vadd.f32 %v1251_v21, %v869_v29  ;;  %v4223_v47 = vld [vmem:[%s2096_s3 + $0x150] sm:$0xff]  ;;  %v4230_v39 = vld [vmem:[%s2096_s3 + $0x158] sm:$0xff] }
 0x141   : > { %5805 = vst [vmem:[#allocation178_spill] sm:$0xff] %v4202_v16  ;;  %5807 = vst [vmem:[#allocation16_spill] sm:$0xff] %v4209_v42  ;;  %v4220_v6 = vmul.f32 %v4216_v36, %v3859_v43  ;;  %v4227_v32 = vmul.f32 %v4223_v47, %v3863_v2  ;;  %v4234_v61 = vmul.f32 %v4230_v39, %v3867_v50  ;;  %v5816_v56 = vld [vmem:[#allocation54_spill] sm:$0xff]  ;;  %v5817_v15 = vld [vmem:[#allocation31_spill] sm:$0xff] }
 0x142   : > { %5810 = vst [vmem:[#allocation40_spill] sm:$0xff] %v4216_v36  ;;  %5812 = vst [vmem:[#allocation42_spill] sm:$0xff] %v4223_v47  ;;  %v686_v19 = vsub.f32 1.0, %v5816_v56  ;;  %v748_v29 = vmul.f32 %v684_v11, %v5817_v15  ;;  %v810_v43 = vmul.f32 %v746_v45, %v5801_v14  ;;  %v872_v21 = vadd.f32 %v808_v31, %v4003_v3  ;;  %v4241_v2 = vld [vmem:[%s2096_s3 + $0x160] sm:$0xff]  ;;  %v4248_v50 = vld [vmem:[%s2096_s3 + $0x168] sm:$0xff] }
 0x143   : > { %5811 = vst [vmem:[#allocation17_spill] sm:$0xff] %v4220_v6  ;;  %5813 = vst [vmem:[#allocation18_spill] sm:$0xff] %v4227_v32  ;;  %v1253_v36 = vadd.f32 %v1252_v37, %v870_v13  ;;  %v4245_v47 = vmul.f32 %v4241_v2, %v3873_v22  ;;  %v4255_v11 = vld [vmem:[%s2096_s3 + $0x170] sm:$0xff]  ;;  %v5824_v14 = vld [vmem:[#allocation146_spill] sm:$0xff]  ;;  %v811_v22 = vmul.f32 %v747_v30, %v5809_v0 }
 0x144   : > { %5814 = vst [vmem:[#allocation44_spill] sm:$0xff] %v4230_v39  ;;  %5815 = vst [vmem:[#allocation21_spill] sm:$0xff] %v4234_v61  ;;  %v5821_v39 = vld [vmem:[#allocation145_spill] sm:$0xff]  ;;  %v4259_v45 = vmul.f32 %v4255_v11, %v5824_v14  ;;  %v5826_v3 = vld [vmem:[#allocation56_spill] sm:$0xff] }
 0x145   : > { %5818 = vst [vmem:[#allocation46_spill] sm:$0xff] %v4241_v2  ;;  %5819 = vst [vmem:[#allocation23_spill] sm:$0xff] %v4245_v47  ;;  %v4252_v61 = vmul.f32 %v4248_v50, %v5821_v39  ;;  %v687_v31 = vsub.f32 1.0, %v5826_v3  ;;  %v5827_v13 = vld [vmem:[#allocation33_spill] sm:$0xff]  ;;  %v1254_v35 = vadd.f32 %v1253_v36, %v871_v25  ;;  %v4266_v32 = vld [vmem:[%s2096_s3 + $0x178] sm:$0xff] }
 0x146   : > { %5820 = vst [vmem:[#allocation48_spill] sm:$0xff] %v4248_v50  ;;  %5823 = vst [vmem:[#allocation50_spill] sm:$0xff] %v4255_v11  ;;  %v749_v37 = vmul.f32 %v685_v52, %v5827_v13  ;;  %v5828_v2 = vld [vmem:[#allocation121_spill] sm:$0xff]  ;;  %v5830_v39 = vld [vmem:[#allocation179_spill] sm:$0xff] }
 0x147   : > { %5822 = vst [vmem:[#allocation25_spill] sm:$0xff] %v4252_v61  ;;  %5825 = vst [vmem:[#allocation27_spill] sm:$0xff] %v4259_v45  ;;  %v873_v47 = vadd.f32 %v809_v49, %v5828_v2  ;;  %v4270_v50 = vmul.f32 %v4266_v32, %v5830_v39  ;;  %v4273_v14 = vld [vmem:[%s2096_s3 + $0x180] sm:$0xff]  ;;  %v5833_v11 = vld [vmem:[#allocation180_spill] sm:$0xff]  ;;  %v812_v39 = vmul.f32 %v748_v29, %v5817_v15 }
 0x148   : > { %5829 = vst [vmem:[#allocation52_spill] sm:$0xff] %v4266_v32  ;;  %5832 = vst [vmem:[#allocation54_spill] sm:$0xff] %v4273_v14  ;;  %v4277_v45 = vmul.f32 %v4273_v14, %v5833_v11  ;;  %v4280_v52 = vld [vmem:[%s2096_s3 + $0x188] sm:$0xff]  ;;  %v5836_v0 = vld [vmem:[#allocation181_spill] sm:$0xff]  ;;  %v1255_v61 = vadd.f32 %v1254_v35, %v872_v21 }
 0x149   : > { %5831 = vst [vmem:[#allocation29_spill] sm:$0xff] %v4270_v50  ;;  %5835 = vst [vmem:[#allocation145_spill] sm:$0xff] %v4280_v52  ;;  %v4284_v30 = vmul.f32 %v4280_v52, %v5836_v0  ;;  %v5838_v49 = vld [vmem:[#allocation57_spill] sm:$0xff]  ;;  %v5839_v36 = vld [vmem:[#allocation35_spill] sm:$0xff] }
 0x14a   : > { %5834 = vst [vmem:[#allocation31_spill] sm:$0xff] %v4277_v45  ;;  %v688_v25 = vsub.f32 1.0, %v5838_v49  ;;  %v750_v2 = vmul.f32 %v686_v19, %v5839_v36  ;;  %v5840_v32 = vld [vmem:[#allocation126_spill] sm:$0xff]  ;;  %v4291_v11 = vld [vmem:[%s2096_s3 + $0x190] sm:$0xff]  ;;  %v4298_v0 = vld [vmem:[%s2096_s3 + $0x198] sm:$0xff] }
 0x14b   : > { %5837 = vst [vmem:[#allocation146_spill] sm:$0xff] %v4284_v30  ;;  %v874_v50 = vadd.f32 %v810_v43, %v5840_v32  ;;  %5841 = vst [vmem:[#allocation56_spill] sm:$0xff] %v4291_v11  ;;  %v5842_v14 = vld [vmem:[#allocation182_spill] sm:$0xff]  ;;  %v5845_v52 = vld [vmem:[#allocation183_spill] sm:$0xff]  ;;  %v813_v43 = vmul.f32 %v749_v37, %v5827_v13 }
 0x14c   : > { %v4295_v45 = vmul.f32 %v4291_v11, %v5842_v14  ;;  %5844 = vst [vmem:[#allocation121_spill] sm:$0xff] %v4298_v0  ;;  %v4302_v30 = vmul.f32 %v4298_v0, %v5845_v52  ;;  %v5847_v19 = vld [vmem:[#allocation58_spill] sm:$0xff]  ;;  %v5848_v15 = vld [vmem:[#allocation37_spill] sm:$0xff]  ;;  %v5850_v35 = vld [vmem:[#allocation184_spill] sm:$0xff]  ;;  %v1256_v11 = vadd.f32 %v1255_v61, %v873_v47 }
 0x14d   : > { %v689_v6 = vsub.f32 1.0, %v5847_v19  ;;  %v751_v29 = vmul.f32 %v687_v31, %v5848_v15  ;;  %v4307_v42 = vld [vmem:[%s2096_s3 + $0x1a0] sm:$0xff]  ;;  %v5852_v21 = vld [vmem:[#allocation11_spill] sm:$0xff]  ;;  %v5857_v31 = vld [vmem:[#allocation186_spill] sm:$0xff] }
 0x14e   : > { %5843 = vst [vmem:[#allocation33_spill] sm:$0xff] %v4295_v45  ;;  %5846 = vst [vmem:[#allocation179_spill] sm:$0xff] %v4302_v30  ;;  %v4311_v32 = vmul.f32 %v4307_v42, %v5850_v35  ;;  %v875_v14 = vadd.f32 %v811_v22, %v5852_v21  ;;  %v4316_v45 = vld [vmem:[%s2096_s3 + $0x1a8] sm:$0xff]  ;;  %v5854_v52 = vld [vmem:[#allocation185_spill] sm:$0xff]  ;;  %v814_v21 = vmul.f32 %v750_v2, %v5839_v36 }
 0x14f   : > { %5849 = vst [vmem:[#allocation180_spill] sm:$0xff] %v4307_v42  ;;  %5853 = vst [vmem:[#allocation35_spill] sm:$0xff] %v4316_v45  ;;  %v4320_v0 = vmul.f32 %v4316_v45, %v5854_v52  ;;  %v4323_v30 = vld [vmem:[%s2096_s3 + $0x1b0] sm:$0xff]  ;;  %v4330_v27 = vld [vmem:[%s2096_s3 + $0x1b8] sm:$0xff]  ;;  %v1257_v42 = vadd.f32 %v1256_v11, %v874_v50 }
 0x150   : > { %5851 = vst [vmem:[#allocation181_spill] sm:$0xff] %v4311_v32  ;;  %5856 = vst [vmem:[#allocation182_spill] sm:$0xff] %v4323_v30  ;;  %v4327_v16 = vmul.f32 %v4323_v30, %v5857_v31  ;;  %v5860_v35 = vld [vmem:[#allocation187_spill] sm:$0xff]  ;;  %v5862_v47 = vld [vmem:[#allocation60_spill] sm:$0xff] }
 0x151   : > { %5855 = vst [vmem:[#allocation126_spill] sm:$0xff] %v4320_v0  ;;  %5859 = vst [vmem:[#allocation37_spill] sm:$0xff] %v4330_v27  ;;  %v4334_v13 = vmul.f32 %v4330_v27, %v5860_v35  ;;  %v690_v61 = vsub.f32 1.0, %v5862_v47  ;;  %v5863_v37 = vld [vmem:[#allocation39_spill] sm:$0xff]  ;;  %v4341_v0 = vld [vmem:[%s2096_s3 + $0x1c0] sm:$0xff]  ;;  %v877_v47 = vadd.f32 %v813_v43, %v4029_v58 }
 0x152   : > { %5858 = vst [vmem:[#allocation183_spill] sm:$0xff] %v4327_v16  ;;  %v752_v22 = vmul.f32 %v688_v25, %v5863_v37  ;;  %v5864_v52 = vld [vmem:[#allocation147_spill] sm:$0xff]  ;;  %5865 = vst [vmem:[#allocation11_spill] sm:$0xff] %v4341_v0  ;;  %v5866_v31 = vld [vmem:[#allocation188_spill] sm:$0xff]  ;;  %v1258_v25 = vadd.f32 %v1257_v42, %v875_v14  ;;  %v878_v14 = vadd.f32 %v814_v21, %v4033_v5 }
 0x153   : > { %5861 = vst [vmem:[#allocation184_spill] sm:$0xff] %v4334_v13  ;;  %v876_v45 = vadd.f32 %v812_v39, %v5864_v52  ;;  %v4345_v30 = vmul.f32 %v4341_v0, %v5866_v31  ;;  %v5868_v16 = vld [vmem:[#allocation61_spill] sm:$0xff]  ;;  %v815_v13 = vmul.f32 %v751_v29, %v5848_v15  ;;  %v5870_v19 = vld [vmem:[#allocation19_spill] sm:$0xff]  ;;  %v5871_v36 = vld [vmem:[#allocation118_spill] sm:$0xff] }
 0x154   : > { %v691_v32 = vsub.f32 1.0, %v5868_v16  ;;  %v5869_v35 = vld [vmem:[#allocation41_spill] sm:$0xff]  ;;  %v924_v2 = vsub.f32 %v5871_v36, %v5870_v19  ;;  %v5872_v39 = vld [vmem:[#allocation20_spill] sm:$0xff]  ;;  %v4356_v52 = vld [vmem:[%s2096_s3 + $0x1c8] sm:$0xff]  ;;  %v816_v43 = vmul.f32 %v752_v22, %v5863_v37 }
 0x155   : > { %5867 = vst [vmem:[#allocation185_spill] sm:$0xff] %v4345_v30  ;;  %v753_v27 = vmul.f32 %v689_v6, %v5869_v35  ;;  %v5873_v50 = vld [vmem:[#allocation141_spill] sm:$0xff]  ;;  %5874 = vst [vmem:[#allocation186_spill] sm:$0xff] %v4356_v52  ;;  %v4363_v0 = vld [vmem:[%s2096_s3 + $0x1d0] sm:$0xff]  ;;  %v1259_v36 = vadd.f32 %v1258_v25, %v876_v45 }
 0x156   : > { %v925_v11 = vsub.f32 %v5873_v50, %v5872_v39  ;;  %v5875_v28 = vld [vmem:[#allocation189_spill] sm:$0xff]  ;;  %5877 = vst [vmem:[#allocation39_spill] sm:$0xff] %v4363_v0  ;;  %v5878_v6 = vld [vmem:[#allocation190_spill] sm:$0xff]  ;;  %v5881_v29 = vld [vmem:[#allocation43_spill] sm:$0xff]  ;;  %v1316_v49 = vmul.f32 %v924_v2, %v924_v2 }
 0x157   : > { %v4360_v31 = vmul.f32 %v4356_v52, %v5875_v28  ;;  %v4367_v15 = vmul.f32 %v4363_v0, %v5878_v6  ;;  %v5880_v58 = vld [vmem:[#allocation62_spill] sm:$0xff]  ;;  %v754_v19 = vmul.f32 %v690_v61, %v5881_v29  ;;  %v5884_v52 = vld [vmem:[#allocation63_spill] sm:$0xff]  ;;  %v5885_v30 = vld [vmem:[#allocation45_spill] sm:$0xff]  ;;  %v817_v60 = vmul.f32 %v753_v27, %v5869_v35 }
 0x158   : > { %v692_v42 = vsub.f32 1.0, %v5880_v58  ;;  %v5882_v39 = vld [vmem:[#allocation22_spill] sm:$0xff]  ;;  %v755_v16 = vmul.f32 %v691_v32, %v5885_v30  ;;  %v879_v6 = vadd.f32 %v815_v13, %v4037_v7  ;;  %v1260_v0 = vadd.f32 %v1259_v36, %v877_v47  ;;  %v5887_v58 = vld [vmem:[#allocation148_spill] sm:$0xff]  ;;  %v5889_v5 = vld [vmem:[#allocation191_spill] sm:$0xff] }
 0x159   : > { %5876 = vst [vmem:[#allocation187_spill] sm:$0xff] %v4360_v31  ;;  %5879 = vst [vmem:[#allocation147_spill] sm:$0xff] %v4367_v15  ;;  %v5883_v50 = vld [vmem:[#allocation142_spill] sm:$0xff]  ;;  %v693_v31 = vsub.f32 1.0, %v5884_v52  ;;  %v5886_v15 = vld [vmem:[#allocation24_spill] sm:$0xff]  ;;  %v1317_v37 = vmul.f32 %v925_v11, %v925_v11  ;;  %v818_v27 = vmul.f32 %v754_v19, %v5881_v29  ;;  %v880_v7 = vadd.f32 %v816_v43, %v4047_v23 }
 0x15a   : > { %v926_v28 = vsub.f32 %v5883_v50, %v5882_v39  ;;  %v927_v61 = vsub.f32 %v5887_v58, %v5886_v15  ;;  %v4382_v22 = vld [vmem:[%s2096_s3 + $0x1d8] sm:$0xff]  ;;  %v5891_v21 = vld [vmem:[#allocation65_spill] sm:$0xff]  ;;  %v5892_v39 = vld [vmem:[#allocation47_spill] sm:$0xff]  ;;  %v1261_v13 = vadd.f32 %v1260_v0, %v878_v14 }
 0x15b   : > { %5888 = vst [vmem:[#allocation188_spill] sm:$0xff] %v4382_v22  ;;  %v4386_v45 = vmul.f32 %v4382_v22, %v5889_v5  ;;  %v694_v25 = vsub.f32 1.0, %v5891_v21  ;;  %v756_v32 = vmul.f32 %v692_v42, %v5892_v39  ;;  %v5893_v47 = vld [vmem:[#allocation26_spill] sm:$0xff]  ;;  %v5896_v36 = vld [vmem:[#allocation49_spill] sm:$0xff]  ;;  %v819_v5 = vmul.f32 %v755_v16, %v5885_v30  ;;  %v5897_v21 = vld [vmem:[#allocation28_spill] sm:$0xff] }
 0x15c   : > { %v5894_v35 = vld [vmem:[#allocation150_spill] sm:$0xff]  ;;  %v1318_v2 = vmul.f32 %v926_v28, %v926_v28  ;;  %v757_v50 = vmul.f32 %v693_v31, %v5896_v36  ;;  %v881_v22 = vadd.f32 %v817_v60, %v4054_v62  ;;  %v5898_v42 = vld [vmem:[#allocation152_spill] sm:$0xff]  ;;  %v1319_v29 = vmul.f32 %v927_v61, %v927_v61  ;;  %v5899_v23 = vld [vmem:[#allocation67_spill] sm:$0xff] }
 0x15d   : > { %5890 = vst [vmem:[#allocation41_spill] sm:$0xff] %v4386_v45  ;;  %v928_v15 = vsub.f32 %v5894_v35, %v5893_v47  ;;  %v5895_v11 = vld [vmem:[#allocation66_spill] sm:$0xff]  ;;  %v1262_v45 = vadd.f32 %v1261_v13, %v879_v6  ;;  %v929_v52 = vsub.f32 %v5898_v42, %v5897_v21  ;;  %v1380_v19 = vadd.f32 %v1317_v37, %v1316_v49  ;;  %v5900_v43 = vld [vmem:[#allocation51_spill] sm:$0xff]  ;;  %v5903_v62 = vld [vmem:[#allocation68_spill] sm:$0xff] }
 0x15e   : > { %v695_v58 = vsub.f32 1.0, %v5895_v11  ;;  %v696_v0 = vsub.f32 1.0, %v5899_v23  ;;  %v758_v14 = vmul.f32 %v694_v25, %v5900_v43  ;;  %v820_v28 = vmul.f32 %v756_v32, %v5892_v39  ;;  %v5901_v31 = vld [vmem:[#allocation30_spill] sm:$0xff]  ;;  %v5902_v11 = vld [vmem:[#allocation143_spill] sm:$0xff]  ;;  %v5904_v13 = vld [vmem:[#allocation53_spill] sm:$0xff] }
 0x15f   : > { %v882_v47 = vadd.f32 %v818_v27, %v4061_v54  ;;  %v1263_v35 = vadd.f32 %v1262_v45, %v880_v7  ;;  %v930_v16 = vsub.f32 %v5902_v11, %v5901_v31  ;;  %v1320_v30 = vmul.f32 %v928_v15, %v928_v15  ;;  %v5905_v25 = vld [vmem:[#allocation32_spill] sm:$0xff]  ;;  %v5906_v42 = vld [vmem:[#allocation155_spill] sm:$0xff]  ;;  %v5907_v45 = vld [vmem:[#allocation70_spill] sm:$0xff] }
 0x160   : > { %v1381_v60 = vadd.f32 %v1380_v19, %v1318_v2  ;;  %v697_v6 = vsub.f32 1.0, %v5903_v62  ;;  %v759_v21 = vmul.f32 %v695_v58, %v5904_v13  ;;  %v821_v49 = vmul.f32 %v757_v50, %v5896_v36  ;;  %v5908_v7 = vld [vmem:[#allocation55_spill] sm:$0xff]  ;;  %v5909_v58 = vld [vmem:[#allocation34_spill] sm:$0xff]  ;;  %v5910_v31 = vld [vmem:[#allocation157_spill] sm:$0xff] }
 0x161   : > { %v883_v61 = vadd.f32 %v819_v5, %v4071_v8  ;;  %v1264_v37 = vadd.f32 %v1263_v35, %v881_v22  ;;  %v931_v39 = vsub.f32 %v5906_v42, %v5905_v25  ;;  %v1321_v32 = vmul.f32 %v929_v52, %v929_v52  ;;  %v5911_v22 = vld [vmem:[#allocation71_spill] sm:$0xff] }
 0x162   : > { %v1382_v54 = vadd.f32 %v1381_v60, %v1319_v29  ;;  %v698_v27 = vsub.f32 1.0, %v5907_v45  ;;  %v760_v11 = vmul.f32 %v696_v0, %v5908_v7  ;;  %v822_v15 = vmul.f32 %v758_v14, %v5900_v43  ;;  %v5912_v35 = vld [vmem:[#allocation59_spill] sm:$0xff]  ;;  %v5913_v0 = vld [vmem:[#allocation36_spill] sm:$0xff] }
 0x163   : > { %v884_v2 = vadd.f32 %v820_v28, %v4078_v40  ;;  %v1265_v19 = vadd.f32 %v1264_v37, %v882_v47  ;;  %v932_v36 = vsub.f32 %v5910_v31, %v5909_v58  ;;  %v1322_v50 = vmul.f32 %v930_v16, %v930_v16  ;;  %v5914_v42 = vld [vmem:[#allocation159_spill] sm:$0xff]  ;;  %v5915_v28 = vld [vmem:[#allocation72_spill] sm:$0xff] }
 0x164   : > { %v1383_v8 = vadd.f32 %v1382_v54, %v1320_v30  ;;  %v699_v5 = vsub.f32 1.0, %v5911_v22  ;;  %v761_v25 = vmul.f32 %v697_v6, %v5912_v35  ;;  %v823_v52 = vmul.f32 %v759_v21, %v5904_v13  ;;  %v5916_v37 = vld [vmem:[#allocation64_spill] sm:$0xff]  ;;  %v5917_v6 = vld [vmem:[#allocation161_spill] sm:$0xff] }
 0x165   : > { %v885_v29 = vadd.f32 %v821_v49, %v4085_v44  ;;  %v1266_v60 = vadd.f32 %v1265_v19, %v883_v61  ;;  %v933_v43 = vsub.f32 %v5914_v42, %v5913_v0  ;;  %v1323_v14 = vmul.f32 %v931_v39, %v931_v39  ;;  %v5918_v49 = vld [vmem:[#allocation73_spill] sm:$0xff]  ;;  %v5925_v42 = vld [vmem:[#allocation79_spill] sm:$0xff] }
 0x166   : > { %v1384_v40 = vadd.f32 %v1383_v8, %v1321_v32  ;;  %v700_v47 = vsub.f32 1.0, %v5915_v28  ;;  %v762_v58 = vmul.f32 %v698_v27, %v5916_v37  ;;  %v824_v16 = vmul.f32 %v760_v11, %v5908_v7  ;;  %v5919_v19 = vld [vmem:[#allocation69_spill] sm:$0xff]  ;;  %v5920_v27 = vld [vmem:[#allocation163_spill] sm:$0xff] }
 0x167   : > { %v886_v30 = vadd.f32 %v822_v15, %v4095_v63  ;;  %v1267_v54 = vadd.f32 %v1266_v60, %v884_v2  ;;  %v934_v13 = vsub.f32 %v5917_v6, %v5769_v57  ;;  %v1324_v21 = vmul.f32 %v932_v36, %v932_v36  ;;  %v5921_v15 = vld [vmem:[#allocation75_spill] sm:$0xff]  ;;  %v5922_v60 = vld [vmem:[#allocation74_spill] sm:$0xff] }
 0x168   : > { %v1385_v44 = vadd.f32 %v1384_v40, %v1322_v50  ;;  %v701_v61 = vsub.f32 1.0, %v5918_v49  ;;  %v763_v31 = vmul.f32 %v699_v5, %v5919_v19  ;;  %v825_v39 = vmul.f32 %v761_v25, %v5912_v35  ;;  %v5923_v5 = vld [vmem:[#allocation165_spill] sm:$0xff] }
 0x169   : > { %v887_v32 = vadd.f32 %v823_v52, %v4102_v46  ;;  %v1268_v8 = vadd.f32 %v1267_v54, %v885_v29  ;;  %v935_v7 = vsub.f32 %v5920_v27, %v5774_v17  ;;  %v1325_v11 = vmul.f32 %v933_v43, %v933_v43  ;;  %v5924_v52 = vld [vmem:[#allocation76_spill] sm:$0xff]  ;;  %v5928_v54 = vld [vmem:[#allocation82_spill] sm:$0xff] }
 0x16a   : > { %v1386_v63 = vadd.f32 %v1385_v44, %v1323_v14  ;;  %v702_v2 = vsub.f32 1.0, %v5921_v15  ;;  %v764_v57 = vmul.f32 %v700_v47, %v5922_v60  ;;  %v826_v36 = vmul.f32 %v762_v58, %v5916_v37  ;;  %v5926_v47 = vld [vmem:[#allocation144_spill] sm:$0xff] }
 0x16b   : > { %v888_v50 = vadd.f32 %v824_v16, %v4109_v41  ;;  %v1269_v0 = vadd.f32 %v1268_v8, %v886_v30  ;;  %v936_v35 = vsub.f32 %v5923_v5, %v5779_v1  ;;  %v1326_v25 = vmul.f32 %v934_v13, %v934_v13  ;;  %v5927_v16 = vld [vmem:[#allocation77_spill] sm:$0xff]  ;;  %v5929_v44 = vld [vmem:[#allocation168_spill] sm:$0xff] }
 0x16c   : > { %v1387_v46 = vadd.f32 %v1386_v63, %v1324_v21  ;;  %v703_v29 = vsub.f32 1.0, %v5924_v52  ;;  %v765_v17 = vmul.f32 %v701_v61, %v5925_v42  ;;  %v827_v43 = vmul.f32 %v763_v31, %v5919_v19  ;;  %v5930_v31 = vld [vmem:[#allocation78_spill] sm:$0xff] }
 0x16d   : > { %v889_v14 = vadd.f32 %v825_v39, %v4120_v51  ;;  %v1270_v40 = vadd.f32 %v1269_v0, %v887_v32  ;;  %v937_v37 = vsub.f32 %v5926_v47, %v5784_v9  ;;  %v1327_v58 = vmul.f32 %v935_v7, %v935_v7  ;;  %v5931_v32 = vld [vmem:[#allocation83_spill] sm:$0xff] }
 0x16e   : > { %v1388_v41 = vadd.f32 %v1387_v46, %v1325_v11  ;;  %v704_v30 = vsub.f32 1.0, %v5927_v16  ;;  %v766_v1 = vmul.f32 %v702_v2, %v5928_v54  ;;  %v828_v6 = vmul.f32 %v764_v57, %v5922_v60  ;;  %v5932_v11 = vld [vmem:[#allocation170_spill] sm:$0xff]  ;;  %v5933_v60 = vld [vmem:[#allocation80_spill] sm:$0xff] }
 0x16f   : > { %v890_v13 = vadd.f32 %v826_v36, %v4127_v55  ;;  %v1271_v21 = vadd.f32 %v1270_v40, %v888_v50  ;;  %v938_v61 = vsub.f32 %v5929_v44, %v5789_v4  ;;  %v1328_v19 = vmul.f32 %v936_v35, %v936_v35  ;;  %v5934_v36 = vld [vmem:[#allocation87_spill] sm:$0xff]  ;;  %v5935_v35 = vld [vmem:[#allocation172_spill] sm:$0xff]  ;;  %v5940_v44 = vld [vmem:[#allocation85_spill] sm:$0xff] }
 0x170   : > { %v1389_v51 = vadd.f32 %v1388_v41, %v1326_v25  ;;  %v705_v39 = vsub.f32 1.0, %v5930_v31  ;;  %v767_v9 = vmul.f32 %v703_v29, %v5931_v32  ;;  %v829_v8 = vmul.f32 %v765_v17, %v5925_v42  ;;  %v5936_v29 = vld [vmem:[#allocation81_spill] sm:$0xff]  ;;  %v5937_v17 = vld [vmem:[#allocation96_spill] sm:$0xff] }
 0x171   : > { %v891_v27 = vadd.f32 %v827_v43, %v4134_v59  ;;  %v1272_v7 = vadd.f32 %v1271_v21, %v889_v14  ;;  %v939_v63 = vsub.f32 %v5932_v11, %v5794_v26  ;;  %v1329_v2 = vmul.f32 %v937_v37, %v937_v37 }
 0x172   : > { %v1390_v55 = vadd.f32 %v1389_v51, %v1327_v58  ;;  %v706_v57 = vsub.f32 1.0, %v5933_v60  ;;  %v768_v4 = vmul.f32 %v704_v30, %v5934_v36  ;;  %v830_v50 = vmul.f32 %v766_v1, %v5928_v54  ;;  %v5938_v58 = vld [vmem:[#allocation84_spill] sm:$0xff]  ;;  %v5939_v30 = vld [vmem:[#allocation109_spill] sm:$0xff] }
 0x173   : > { %v892_v0 = vadd.f32 %v828_v6, %v4145_v20  ;;  %v1273_v5 = vadd.f32 %v1272_v7, %v890_v13  ;;  %v940_v25 = vsub.f32 %v5935_v35, %v5800_v12  ;;  %v1330_v46 = vmul.f32 %v938_v61, %v938_v61  ;;  %v5943_v7 = vld [vmem:[#allocation123_spill] sm:$0xff] }
 0x174   : > { %v1391_v59 = vadd.f32 %v1390_v55, %v1328_v19  ;;  %v707_v42 = vsub.f32 1.0, %v5936_v29  ;;  %v769_v26 = vmul.f32 %v705_v39, %v5937_v17  ;;  %v831_v43 = vmul.f32 %v767_v9, %v5931_v32  ;;  %v5941_v19 = vld [vmem:[#allocation122_spill] sm:$0xff]  ;;  %v5945_v55 = vld [vmem:[#allocation149_spill] sm:$0xff] }
 0x175   : > { %v893_v14 = vadd.f32 %v829_v8, %v4152_v34  ;;  %v1274_v40 = vadd.f32 %v1273_v5, %v891_v27  ;;  %v941_v47 = vsub.f32 %v5765_v24, %v5808_v18  ;;  %v1331_v37 = vmul.f32 %v939_v63, %v939_v63  ;;  %v5942_v8 = vld [vmem:[#allocation88_spill] sm:$0xff]  ;;  %v5948_v5 = vld [vmem:[#allocation175_spill] sm:$0xff] }
 0x176   : > { %v1392_v20 = vadd.f32 %v1391_v59, %v1329_v2  ;;  %v708_v41 = vsub.f32 1.0, %v5938_v58  ;;  %v770_v12 = vmul.f32 %v706_v57, %v5939_v30  ;;  %v832_v54 = vmul.f32 %v768_v4, %v5934_v36  ;;  %v5944_v2 = vld [vmem:[#allocation57_spill] sm:$0xff]  ;;  %v5950_v59 = vld [vmem:[#allocation151_spill] sm:$0xff] }
 0x177   : > { %v894_v1 = vadd.f32 %v830_v50, %v4159_v10  ;;  %v1275_v6 = vadd.f32 %v1274_v40, %v892_v0  ;;  %v942_v13 = vsub.f32 %v5767_v48, %v5816_v56  ;;  %v1332_v21 = vmul.f32 %v940_v25, %v940_v25  ;;  %v5946_v4 = vld [vmem:[#allocation89_spill] sm:$0xff]  ;;  %v5947_v0 = vld [vmem:[#allocation127_spill] sm:$0xff] }
 0x178   : > { %v1393_v34 = vadd.f32 %v1392_v20, %v1330_v46  ;;  %v709_v61 = vsub.f32 1.0, %v5940_v44  ;;  %v771_v24 = vmul.f32 %v707_v42, %v5941_v19  ;;  %v833_v18 = vmul.f32 %v769_v26, %v5937_v17  ;;  %v5949_v46 = vld [vmem:[#allocation58_spill] sm:$0xff]  ;;  %v5951_v26 = vld [vmem:[#allocation92_spill] sm:$0xff] }
 0x179   : > { %v895_v51 = vadd.f32 %v831_v43, %v4170_v53  ;;  %v1276_v39 = vadd.f32 %v1275_v6, %v893_v14  ;;  %v943_v32 = vsub.f32 %v5768_v33, %v5826_v3  ;;  %v1333_v9 = vmul.f32 %v941_v47, %v941_v47  ;;  %v5952_v14 = vld [vmem:[#allocation130_spill] sm:$0xff] }
 0x17a   : > { %v1394_v10 = vadd.f32 %v1393_v34, %v1331_v37  ;;  %v710_v27 = vsub.f32 1.0, %v5942_v8  ;;  %v772_v48 = vmul.f32 %v708_v41, %v5943_v7  ;;  %v834_v56 = vmul.f32 %v770_v12, %v5939_v30  ;;  %v5953_v37 = vld [vmem:[#allocation177_spill] sm:$0xff]  ;;  %v5954_v30 = vld [vmem:[#allocation60_spill] sm:$0xff]  ;;  %v5957_v34 = vld [vmem:[#allocation131_spill] sm:$0xff] }
 0x17b   : > { %v896_v11 = vadd.f32 %v832_v54, %v4177_v38  ;;  %v1277_v63 = vadd.f32 %v1276_v39, %v894_v1  ;;  %v944_v57 = vsub.f32 %v5945_v55, %v5944_v2  ;;  %v1334_v36 = vmul.f32 %v942_v13, %v942_v13  ;;  %v5955_v12 = vld [vmem:[#allocation153_spill] sm:$0xff]  ;;  %v5963_v2 = vld [vmem:[#allocation16_spill] sm:$0xff] }
 0x17c   : > { %v1395_v53 = vadd.f32 %v1394_v10, %v1332_v21  ;;  %v711_v50 = vsub.f32 1.0, %v5946_v4  ;;  %v773_v33 = vmul.f32 %v709_v61, %v5947_v0  ;;  %v835_v3 = vmul.f32 %v771_v24, %v5941_v19  ;;  %v5956_v13 = vld [vmem:[#allocation93_spill] sm:$0xff]  ;;  %v5958_v24 = vld [vmem:[#allocation178_spill] sm:$0xff] }
 0x17d   : > { %v897_v35 = vadd.f32 %v833_v18, %v5948_v5  ;;  %v1278_v25 = vadd.f32 %v1277_v63, %v895_v51  ;;  %v945_v42 = vsub.f32 %v5950_v59, %v5949_v46  ;;  %v1335_v17 = vmul.f32 %v943_v32, %v943_v32  ;;  %v5959_v39 = vld [vmem:[#allocation61_spill] sm:$0xff]  ;;  %v5960_v32 = vld [vmem:[#allocation154_spill] sm:$0xff] }
 0x17e   : > { %v1396_v38 = vadd.f32 %v1395_v53, %v1333_v9  ;;  %v712_v43 = vsub.f32 1.0, %v5951_v26  ;;  %v774_v40 = vmul.f32 %v710_v27, %v5952_v14  ;;  %v836_v47 = vmul.f32 %v772_v48, %v5943_v7  ;;  %v5961_v7 = vld [vmem:[#allocation97_spill] sm:$0xff]  ;;  %v5965_v53 = vld [vmem:[#allocation12_spill] sm:$0xff] }
 0x17f   : > { %v898_v20 = vadd.f32 %v834_v56, %v5953_v37  ;;  %v1279_v41 = vadd.f32 %v1278_v25, %v896_v11  ;;  %v946_v54 = vsub.f32 %v5955_v12, %v5954_v30  ;;  %v1336_v1 = vmul.f32 %v944_v57, %v944_v57  ;;  %v5962_v56 = vld [vmem:[#allocation132_spill] sm:$0xff]  ;;  %v5968_v59 = vld [vmem:[#allocation17_spill] sm:$0xff] }
 0x180   : > { %v1397_v6 = vadd.f32 %v1396_v38, %v1334_v36  ;;  %v713_v21 = vsub.f32 1.0, %v5956_v13  ;;  %v775_v61 = vmul.f32 %v711_v50, %v5957_v34  ;;  %v837_v19 = vmul.f32 %v773_v33, %v5947_v0  ;;  %v5964_v36 = vld [vmem:[#allocation62_spill] sm:$0xff]  ;;  %v5969_v38 = vld [vmem:[#allocation63_spill] sm:$0xff]  ;;  %v5971_v37 = vld [vmem:[#allocation101_spill] sm:$0xff] }
 0x181   : > { %v899_v18 = vadd.f32 %v835_v3, %v5958_v24  ;;  %v1280_v51 = vadd.f32 %v1279_v41, %v897_v35  ;;  %v947_v9 = vsub.f32 %v5960_v32, %v5959_v39  ;;  %v1337_v10 = vmul.f32 %v945_v42, %v945_v42  ;;  %v5966_v3 = vld [vmem:[#allocation98_spill] sm:$0xff]  ;;  %v5967_v35 = vld [vmem:[#allocation135_spill] sm:$0xff] }
 0x182   : > { %v1398_v27 = vadd.f32 %v1397_v6, %v1335_v17  ;;  %v714_v48 = vsub.f32 1.0, %v5961_v7  ;;  %v776_v11 = vmul.f32 %v712_v43, %v5962_v56  ;;  %v838_v63 = vmul.f32 %v774_v40, %v5952_v14  ;;  %v5970_v43 = vld [vmem:[#allocation156_spill] sm:$0xff]  ;;  %v5972_v41 = vld [vmem:[#allocation86_spill] sm:$0xff] }
 0x183   : > { %v900_v55 = vadd.f32 %v836_v47, %v5963_v2  ;;  %v1281_v57 = vadd.f32 %v1280_v51, %v898_v20  ;;  %v948_v50 = vsub.f32 %v5965_v53, %v5964_v36  ;;  %v1338_v0 = vmul.f32 %v946_v54, %v946_v54  ;;  %v5973_v54 = vld [vmem:[#allocation18_spill] sm:$0xff] }
 0x184   : > { %v1399_v33 = vadd.f32 %v1398_v27, %v1336_v1  ;;  %v715_v5 = vsub.f32 1.0, %v5966_v3  ;;  %v777_v25 = vmul.f32 %v713_v21, %v5967_v35  ;;  %v839_v46 = vmul.f32 %v775_v61, %v5957_v34  ;;  %v5974_v21 = vld [vmem:[#allocation65_spill] sm:$0xff]  ;;  %v5975_v24 = vld [vmem:[#allocation158_spill] sm:$0xff] }
 0x185   : > { %v901_v42 = vadd.f32 %v837_v19, %v5968_v59  ;;  %v1282_v17 = vadd.f32 %v1281_v57, %v899_v18  ;;  %v949_v14 = vsub.f32 %v5970_v43, %v5969_v38  ;;  %v1339_v40 = vmul.f32 %v947_v9, %v947_v9  ;;  %v5976_v18 = vld [vmem:[#allocation102_spill] sm:$0xff]  ;;  %v5980_v57 = vld [vmem:[#allocation160_spill] sm:$0xff]  ;;  %v5986_v43 = vld [vmem:[#allocation91_spill] sm:$0xff] }
 0x186   : > { %v1400_v47 = vadd.f32 %v1399_v33, %v1337_v10  ;;  %v716_v20 = vsub.f32 1.0, %v5971_v37  ;;  %v778_v30 = vmul.f32 %v714_v48, %v5972_v41  ;;  %v840_v12 = vmul.f32 %v776_v11, %v5962_v56  ;;  %v5977_v39 = vld [vmem:[#allocation138_spill] sm:$0xff]  ;;  %v5978_v10 = vld [vmem:[#allocation21_spill] sm:$0xff] }
 0x187   : > { %v902_v1 = vadd.f32 %v838_v63, %v5973_v54  ;;  %v1283_v6 = vadd.f32 %v1282_v17, %v900_v55  ;;  %v950_v34 = vsub.f32 %v5975_v24, %v5974_v21  ;;  %v1340_v61 = vmul.f32 %v948_v50, %v948_v50  ;;  %v5979_v48 = vld [vmem:[#allocation66_spill] sm:$0xff] }
 0x188   : > { %v1401_v19 = vadd.f32 %v1400_v47, %v1338_v0  ;;  %v717_v51 = vsub.f32 1.0, %v5976_v18  ;;  %v779_v32 = vmul.f32 %v715_v5, %v5977_v39  ;;  %v841_v9 = vmul.f32 %v777_v25, %v5967_v35  ;;  %v5981_v55 = vld [vmem:[#allocation106_spill] sm:$0xff]  ;;  %v5983_v0 = vld [vmem:[#allocation23_spill] sm:$0xff]  ;;  %v5984_v5 = vld [vmem:[#allocation13_spill] sm:$0xff] }
 0x189   : > { %v903_v27 = vadd.f32 %v839_v46, %v5978_v10  ;;  %v1284_v2 = vadd.f32 %v1283_v6, %v901_v42  ;;  %v951_v56 = vsub.f32 %v5980_v57, %v5979_v48  ;;  %v1341_v11 = vmul.f32 %v949_v14, %v949_v14  ;;  %v5982_v53 = vld [vmem:[#allocation90_spill] sm:$0xff]  ;;  %v5985_v42 = vld [vmem:[#allocation107_spill] sm:$0xff] }
 0x18a   : > { %v1402_v63 = vadd.f32 %v1401_v19, %v1339_v40  ;;  %v718_v36 = vsub.f32 1.0, %v5981_v55  ;;  %v780_v33 = vmul.f32 %v716_v20, %v5982_v53  ;;  %v842_v50 = vmul.f32 %v778_v30, %v5972_v41  ;;  %v5987_v40 = vld [vmem:[#allocation25_spill] sm:$0xff]  ;;  %v5988_v20 = vld [vmem:[#allocation162_spill] sm:$0xff]  ;;  %v5994_v48 = vld [vmem:[#allocation95_spill] sm:$0xff] }
 0x18b   : > { %v904_v59 = vadd.f32 %v840_v12, %v5983_v0  ;;  %v1285_v17 = vadd.f32 %v1284_v2, %v902_v1  ;;  %v952_v35 = vsub.f32 %v5984_v5, %v5899_v23  ;;  %v1342_v25 = vmul.f32 %v950_v34, %v950_v34  ;;  %v5989_v1 = vld [vmem:[#allocation110_spill] sm:$0xff]  ;;  %v5997_v0 = vld [vmem:[#allocation115_spill] sm:$0xff] }
 0x18c   : > { %v1403_v46 = vadd.f32 %v1402_v63, %v1340_v61  ;;  %v719_v38 = vsub.f32 1.0, %v5985_v42  ;;  %v781_v47 = vmul.f32 %v717_v51, %v5986_v43  ;;  %v843_v14 = vmul.f32 %v779_v32, %v5977_v39  ;;  %v5990_v24 = vld [vmem:[#allocation94_spill] sm:$0xff]  ;;  %v5991_v61 = vld [vmem:[#allocation27_spill] sm:$0xff]  ;;  %v5992_v51 = vld [vmem:[#allocation164_spill] sm:$0xff] }
 0x18d   : > { %v905_v54 = vadd.f32 %v841_v9, %v5987_v40  ;;  %v1286_v6 = vadd.f32 %v1285_v17, %v903_v27  ;;  %v953_v41 = vsub.f32 %v5988_v20, %v5903_v62  ;;  %v1343_v30 = vmul.f32 %v951_v56, %v951_v56  ;;  %v5993_v27 = vld [vmem:[#allocation111_spill] sm:$0xff]  ;;  %v5995_v56 = vld [vmem:[#allocation29_spill] sm:$0xff]  ;;  %v6001_v40 = vld [vmem:[#allocation116_spill] sm:$0xff] }
 0x18e   : > { %v1404_v12 = vadd.f32 %v1403_v46, %v1341_v11  ;;  %v720_v21 = vsub.f32 1.0, %v5989_v1  ;;  %v782_v23 = vmul.f32 %v718_v36, %v5990_v24  ;;  %v844_v34 = vmul.f32 %v780_v33, %v5982_v53  ;;  %v5996_v36 = vld [vmem:[#allocation166_spill] sm:$0xff]  ;;  %v5998_v17 = vld [vmem:[#allocation99_spill] sm:$0xff] }
 0x18f   : > { %v906_v19 = vadd.f32 %v842_v50, %v5991_v61  ;;  %v1287_v10 = vadd.f32 %v1286_v6, %v904_v59  ;;  %v954_v39 = vsub.f32 %v5992_v51, %v5907_v45  ;;  %v1344_v32 = vmul.f32 %v952_v35, %v952_v35  ;;  %v5999_v35 = vld [vmem:[#allocation31_spill] sm:$0xff] }
 0x190   : > { %v1405_v9 = vadd.f32 %v1404_v12, %v1342_v25  ;;  %v721_v2 = vsub.f32 1.0, %v5993_v27  ;;  %v783_v62 = vmul.f32 %v719_v38, %v5994_v48  ;;  %v845_v57 = vmul.f32 %v781_v47, %v5986_v43  ;;  %v6000_v38 = vld [vmem:[#allocation167_spill] sm:$0xff] }
 0x191   : > { %v907_v11 = vadd.f32 %v843_v14, %v5995_v56  ;;  %v1288_v63 = vadd.f32 %v1287_v10, %v905_v54  ;;  %v955_v53 = vsub.f32 %v5996_v36, %v5911_v22  ;;  %v1345_v33 = vmul.f32 %v953_v41, %v953_v41  ;;  %v6002_v6 = vld [vmem:[#allocation139_spill] sm:$0xff]  ;;  %v6003_v41 = vld [vmem:[#allocation146_spill] sm:$0xff]  ;;  %v6006_v10 = vld [vmem:[#allocation100_spill] sm:$0xff] }
 0x192   : > { %v1406_v50 = vadd.f32 %v1405_v9, %v1343_v30  ;;  %v722_v59 = vsub.f32 1.0, %v5997_v0  ;;  %v784_v45 = vmul.f32 %v720_v21, %v5998_v17  ;;  %v846_v5 = vmul.f32 %v782_v23, %v5990_v24  ;;  %v6004_v21 = vld [vmem:[#allocation14_spill] sm:$0xff]  ;;  %v6005_v61 = vld [vmem:[#allocation119_spill] sm:$0xff]  ;;  %v6009_v56 = vld [vmem:[#allocation120_spill] sm:$0xff] }
 0x193   : > { %v908_v25 = vadd.f32 %v844_v34, %v5999_v35  ;;  %v1289_v46 = vadd.f32 %v1288_v63, %v906_v19  ;;  %v956_v43 = vsub.f32 %v6000_v38, %v5915_v28  ;;  %v1346_v47 = vmul.f32 %v954_v39, %v954_v39  ;;  %v6007_v39 = vld [vmem:[#allocation33_spill] sm:$0xff]  ;;  %v6010_v63 = vld [vmem:[#allocation103_spill] sm:$0xff]  ;;  %v6013_v35 = vld [vmem:[#allocation124_spill] sm:$0xff] }
 0x194   : > { %v1407_v14 = vadd.f32 %v1406_v50, %v1344_v32  ;;  %v723_v54 = vsub.f32 1.0, %v6001_v40  ;;  %v785_v22 = vmul.f32 %v721_v2, %v6002_v6  ;;  %v847_v20 = vmul.f32 %v783_v62, %v5994_v48  ;;  %v6008_v2 = vld [vmem:[#allocation169_spill] sm:$0xff] }
 0x195   : > { %v909_v30 = vadd.f32 %v845_v57, %v6003_v41  ;;  %v1290_v12 = vadd.f32 %v1289_v46, %v907_v11  ;;  %v957_v24 = vsub.f32 %v6004_v21, %v5918_v49  ;;  %v1347_v23 = vmul.f32 %v955_v53, %v955_v53  ;;  %v6011_v53 = vld [vmem:[#allocation179_spill] sm:$0xff]  ;;  %v6014_v46 = vld [vmem:[#allocation104_spill] sm:$0xff]  ;;  %v6017_v41 = vld [vmem:[#allocation125_spill] sm:$0xff] }
 0x196   : > { %v1408_v34 = vadd.f32 %v1407_v14, %v1345_v33  ;;  %v724_v19 = vsub.f32 1.0, %v6005_v61  ;;  %v786_v28 = vmul.f32 %v722_v59, %v6006_v10  ;;  %v848_v51 = vmul.f32 %v784_v45, %v5998_v17  ;;  %v6012_v59 = vld [vmem:[#allocation171_spill] sm:$0xff] }
 0x197   : > { %v910_v32 = vadd.f32 %v846_v5, %v6007_v39  ;;  %v1291_v9 = vadd.f32 %v1290_v12, %v908_v25  ;;  %v958_v48 = vsub.f32 %v6008_v2, %v5921_v15  ;;  %v1348_v62 = vmul.f32 %v956_v43, %v956_v43  ;;  %v6015_v43 = vld [vmem:[#allocation181_spill] sm:$0xff]  ;;  %v6021_v39 = vld [vmem:[#allocation128_spill] sm:$0xff] }
 0x198   : > { %v1409_v57 = vadd.f32 %v1408_v34, %v1346_v47  ;;  %v725_v11 = vsub.f32 1.0, %v6009_v56  ;;  %v787_v49 = vmul.f32 %v723_v54, %v6010_v63  ;;  %v849_v36 = vmul.f32 %v785_v22, %v6002_v6  ;;  %v6016_v54 = vld [vmem:[#allocation173_spill] sm:$0xff] }
 0x199   : > { %v911_v33 = vadd.f32 %v847_v20, %v6011_v53  ;;  %v1292_v50 = vadd.f32 %v1291_v9, %v909_v30  ;;  %v959_v17 = vsub.f32 %v6012_v59, %v5924_v52  ;;  %v1349_v45 = vmul.f32 %v957_v24, %v957_v24  ;;  %v6018_v12 = vld [vmem:[#allocation105_spill] sm:$0xff]  ;;  %v6019_v24 = vld [vmem:[#allocation126_spill] sm:$0xff]  ;;  %v6022_v9 = vld [vmem:[#allocation108_spill] sm:$0xff] }
 0x19a   : > { %v1410_v5 = vadd.f32 %v1409_v57, %v1347_v23  ;;  %v726_v25 = vsub.f32 1.0, %v6013_v35  ;;  %v788_v15 = vmul.f32 %v724_v19, %v6014_v46  ;;  %v850_v38 = vmul.f32 %v786_v28, %v6006_v10  ;;  %v6020_v19 = vld [vmem:[#allocation15_spill] sm:$0xff]  ;;  %v6025_v53 = vld [vmem:[#allocation129_spill] sm:$0xff] }
 0x19b   : > { %v912_v47 = vadd.f32 %v848_v51, %v6015_v43  ;;  %v1293_v14 = vadd.f32 %v1292_v50, %v910_v32  ;;  %v960_v6 = vsub.f32 %v6016_v54, %v5927_v16  ;;  %v1350_v22 = vmul.f32 %v958_v48, %v958_v48  ;;  %v6023_v48 = vld [vmem:[#allocation183_spill] sm:$0xff]  ;;  %v6026_v50 = vld [vmem:[#allocation112_spill] sm:$0xff]  ;;  %v6029_v43 = vld [vmem:[#allocation133_spill] sm:$0xff] }
 0x19c   : > { %v1411_v20 = vadd.f32 %v1410_v5, %v1348_v62  ;;  %v727_v30 = vsub.f32 1.0, %v6017_v41  ;;  %v789_v52 = vmul.f32 %v725_v11, %v6018_v12  ;;  %v851_v21 = vmul.f32 %v787_v49, %v6010_v63  ;;  %v6024_v11 = vld [vmem:[#allocation174_spill] sm:$0xff] }
 0x19d   : > { %v913_v23 = vadd.f32 %v849_v36, %v6019_v24  ;;  %v1294_v34 = vadd.f32 %v1293_v14, %v911_v33  ;;  %v961_v10 = vsub.f32 %v6020_v19, %v5930_v31  ;;  %v1351_v28 = vmul.f32 %v959_v17, %v959_v17  ;;  %v6027_v17 = vld [vmem:[#allocation184_spill] sm:$0xff]  ;;  %v6033_v24 = vld [vmem:[#allocation134_spill] sm:$0xff] }
 0x19e   : > { %v1412_v51 = vadd.f32 %v1411_v20, %v1349_v45  ;;  %v728_v32 = vsub.f32 1.0, %v6021_v39  ;;  %v790_v16 = vmul.f32 %v726_v25, %v6022_v9  ;;  %v852_v2 = vmul.f32 %v788_v15, %v6014_v46  ;;  %v6028_v25 = vld [vmem:[#allocation176_spill] sm:$0xff] }
 0x19f   : > { %v914_v62 = vadd.f32 %v850_v38, %v6023_v48  ;;  %v1295_v57 = vadd.f32 %v1294_v34, %v912_v47  ;;  %v962_v63 = vsub.f32 %v6024_v11, %v5933_v60  ;;  %v1352_v49 = vmul.f32 %v960_v6, %v960_v6  ;;  %v6030_v14 = vld [vmem:[#allocation140_spill] sm:$0xff]  ;;  %v6031_v6 = vld [vmem:[#allocation185_spill] sm:$0xff] }
 0x1a0   : > { %v1413_v36 = vadd.f32 %v1412_v51, %v1350_v22  ;;  %v729_v33 = vsub.f32 1.0, %v6025_v53  ;;  %v791_v31 = vmul.f32 %v727_v30, %v6026_v50  ;;  %v853_v59 = vmul.f32 %v789_v52, %v6018_v12  ;;  %v6032_v30 = vld [vmem:[#allocation38_spill] sm:$0xff]  ;;  %v4617_v48 = vld [vmem:[%s2096_s3 + $0x1e0] sm:$0xff] }
 0x1a1   : > { %v915_v45 = vadd.f32 %v851_v21, %v6027_v17  ;;  %v1296_v5 = vadd.f32 %v1295_v57, %v913_v23  ;;  %v963_v46 = vsub.f32 %v6028_v25, %v5936_v29  ;;  %v1353_v15 = vmul.f32 %v961_v10, %v961_v10  ;;  %v6034_v29 = vld [vmem:[#allocation113_spill] sm:$0xff]  ;;  %v6035_v10 = vld [vmem:[#allocation187_spill] sm:$0xff]  ;;  %v6038_v57 = vld [vmem:[#allocation114_spill] sm:$0xff] }
 0x1a2   : > { %v1414_v38 = vadd.f32 %v1413_v36, %v1351_v28  ;;  %v730_v47 = vsub.f32 1.0, %v6029_v43  ;;  %v792_v60 = vmul.f32 %v728_v32, %v6030_v14  ;;  %v854_v54 = vmul.f32 %v790_v16, %v6022_v9  ;;  %v6036_v32 = vld [vmem:[#allocation40_spill] sm:$0xff]  ;;  %v4627_v17 = vld [vmem:[%s2096_s3 + $0x1e8] sm:$0xff]  ;;  %v6042_v25 = vld [vmem:[#allocation117_spill] sm:$0xff] }
 0x1a3   : > { %v916_v22 = vadd.f32 %v852_v2, %v6031_v6  ;;  %v1297_v20 = vadd.f32 %v1296_v5, %v914_v62  ;;  %v964_v12 = vsub.f32 %v6032_v30, %v5938_v58  ;;  %v1354_v52 = vmul.f32 %v962_v63, %v962_v63  ;;  %v6037_v58 = vld [vmem:[#allocation192_spill] sm:$0xff] }
 0x1a4   : > { %v1415_v21 = vadd.f32 %v1414_v38, %v1352_v49  ;;  %v731_v23 = vsub.f32 1.0, %v6033_v24  ;;  %v793_v34 = vmul.f32 %v729_v33, %v6034_v29  ;;  %v855_v19 = vmul.f32 %v791_v31, %v6026_v50  ;;  %v6039_v49 = vld [vmem:[#allocation147_spill] sm:$0xff]  ;;  %v6040_v50 = vld [vmem:[#allocation42_spill] sm:$0xff]  ;;  %v6043_v38 = vld [vmem:[#allocation41_spill] sm:$0xff] }
 0x1a5   : > { %v917_v28 = vadd.f32 %v853_v59, %v6035_v10  ;;  %v1298_v51 = vadd.f32 %v1297_v20, %v915_v45  ;;  %v965_v9 = vsub.f32 %v6036_v32, %v5940_v44  ;;  %v1355_v16 = vmul.f32 %v963_v46, %v963_v46  ;;  %v6041_v45 = vld [vmem:[#allocation193_spill] sm:$0xff]  ;;  %v6045_v20 = vld [vmem:[#allocation136_spill] sm:$0xff] }
 0x1a6   : > { %v1416_v2 = vadd.f32 %v1415_v21, %v1353_v15  ;;  %v664_v62 = vmul.f32 %v4617_v48, %v6037_v58  ;;  %v794_v11 = vmul.f32 %v730_v47, %v6038_v57  ;;  %v856_v63 = vmul.f32 %v792_v60, %v6030_v14  ;;  %v6044_v60 = vld [vmem:[#allocation44_spill] sm:$0xff] }
 0x1a7   : > { %v918_v36 = vadd.f32 %v854_v54, %v6039_v49  ;;  %v1299_v33 = vadd.f32 %v1298_v51, %v916_v22  ;;  %v966_v31 = vsub.f32 %v6040_v50, %v5942_v8  ;;  %v1356_v59 = vmul.f32 %v964_v12, %v964_v12  ;;  %v4637_v22 = vld [vmem:[%s2096_s3 + $0x1f0] sm:$0xff]  ;;  %v4645_v10 = vld [vmem:[%s2096_s3 + $0x1f8] sm:$0xff] }
 0x1a8   : > { %v1417_v44 = vadd.f32 %v1416_v2, %v1354_v52  ;;  %v665_v5 = vmul.f32 %v4627_v17, %v6041_v45  ;;  %v795_v46 = vmul.f32 %v731_v23, %v6042_v25  ;;  %v857_v15 = vmul.f32 %v793_v34, %v6034_v29  ;;  %v6046_v23 = vld [vmem:[#allocation46_spill] sm:$0xff] }
 0x1a9   : > { %v919_v47 = vadd.f32 %v855_v19, %v6043_v38  ;;  %v1300_v14 = vadd.f32 %v1299_v33, %v917_v28  ;;  %v967_v54 = vsub.f32 %v6044_v60, %v5946_v4  ;;  %v1357_v6 = vmul.f32 %v965_v9, %v965_v9  ;;  %v6047_v28 = vld [vmem:[#allocation137_spill] sm:$0xff] }
 0x1aa   : > { %v1418_v8 = vadd.f32 %v1417_v44, %v1355_v16  ;;  %v666_v30 = vmul.f32 %v4637_v22, %v6045_v20  ;;  %v858_v12 = vmul.f32 %v794_v11, %v6038_v57  ;;  %v920_v52 = vadd.f32 %v856_v63, %v664_v62  ;;  %v6048_v16 = vld [vmem:[#allocation48_spill] sm:$0xff]  ;;  %v6054_v20 = vld [vmem:[#allocation121_spill] sm:$0xff] }
 0x1ab   : > { %v1301_v21 = vadd.f32 %v1300_v14, %v918_v36  ;;  %v968_v29 = vsub.f32 %v6046_v23, %v5951_v26  ;;  %v1358_v34 = vmul.f32 %v966_v31, %v966_v31  ;;  %v667_v4 = vmul.f32 %v4645_v10, %v6047_v28  ;;  %v6049_v26 = vld [vmem:[#allocation50_spill] sm:$0xff]  ;;  %v6050_v31 = vld [vmem:[#allocation52_spill] sm:$0xff] }
 0x1ac   : > { %v1419_v19 = vadd.f32 %v1418_v8, %v1356_v59  ;;  %v859_v51 = vmul.f32 %v795_v46, %v6042_v25  ;;  %v921_v32 = vadd.f32 %v857_v15, %v665_v5  ;;  %v969_v2 = vsub.f32 %v6048_v16, %v5956_v13  ;;  %v6051_v25 = vld [vmem:[#allocation54_spill] sm:$0xff] }
 0x1ad   : > { %v1302_v9 = vadd.f32 %v1301_v21, %v919_v47  ;;  %v1359_v58 = vmul.f32 %v967_v54, %v967_v54  ;;  %v922_v57 = vadd.f32 %v858_v12, %v666_v30  ;;  %v970_v63 = vsub.f32 %v6049_v26, %v5961_v7  ;;  %v6052_v47 = vld [vmem:[#allocation145_spill] sm:$0xff]  ;;  %v6053_v54 = vld [vmem:[#allocation56_spill] sm:$0xff] }
 0x1ae   : > { %v1420_v62 = vadd.f32 %v1419_v19, %v1357_v6  ;;  %v1360_v49 = vmul.f32 %v968_v29, %v968_v29  ;;  %v923_v33 = vadd.f32 %v859_v51, %v667_v4  ;;  %v971_v59 = vsub.f32 %v6050_v31, %v5966_v3  ;;  %v6057_v4 = vld [vmem:[#allocation182_spill] sm:$0xff] }
 0x1af   : > { %v1303_v11 = vadd.f32 %v1302_v9, %v920_v52  ;;  %v1361_v44 = vmul.f32 %v969_v2, %v969_v2  ;;  %v972_v13 = vsub.f32 %v6051_v25, %v5971_v37  ;;  %v1362_v46 = vmul.f32 %v970_v63, %v970_v63  ;;  %v6055_v37 = vld [vmem:[#allocation180_spill] sm:$0xff]  ;;  %v6058_v9 = vld [vmem:[#allocation37_spill] sm:$0xff] }
 0x1b0   : > { %v1421_v36 = vadd.f32 %v1420_v62, %v1358_v34  ;;  %v973_v14 = vsub.f32 %v6052_v47, %v5976_v18  ;;  %v1363_v7 = vmul.f32 %v971_v59, %v971_v59  ;;  %v974_v6 = vsub.f32 %v6053_v54, %v5981_v55  ;;  %v6056_v18 = vld [vmem:[#allocation35_spill] sm:$0xff] }
 0x1b1   : > { %v1304_v50 = vadd.f32 %v1303_v11, %v921_v32  ;;  %v1364_v8 = vmul.f32 %v972_v13, %v972_v13  ;;  %v975_v30 = vsub.f32 %v6054_v20, %v5985_v42  ;;  %v976_v21 = vsub.f32 %v6055_v37, %v5989_v1  ;;  %v6060_v11 = vld [vmem:[#allocation186_spill] sm:$0xff] }
 0x1b2   : > { %v1422_v45 = vadd.f32 %v1421_v36, %v1359_v58  ;;  %v1365_v12 = vmul.f32 %v973_v14, %v973_v14  ;;  %v1366_v23 = vmul.f32 %v974_v6, %v974_v6  ;;  %v977_v34 = vsub.f32 %v6056_v18, %v5993_v27  ;;  %v6059_v58 = vld [vmem:[#allocation11_spill] sm:$0xff] }
 0x1b3   : > { %v1305_v5 = vadd.f32 %v1304_v50, %v922_v57  ;;  %v1367_v19 = vmul.f32 %v975_v30, %v975_v30  ;;  %v978_v55 = vsub.f32 %v6057_v4, %v5997_v0  ;;  %v1368_v51 = vmul.f32 %v976_v21, %v976_v21  ;;  %v6062_v50 = vld [vmem:[#allocation188_spill] sm:$0xff] }
 0x1b4   : > { %v1423_v15 = vadd.f32 %v1422_v45, %v1360_v49  ;;  %v979_v42 = vsub.f32 %v6058_v9, %v6001_v40  ;;  %v1369_v16 = vmul.f32 %v977_v34, %v977_v34  ;;  %v980_v1 = vsub.f32 %v6059_v58, %v6005_v61  ;;  %v6061_v49 = vld [vmem:[#allocation39_spill] sm:$0xff] }
 0x1b5   : > { %v1306_v38 = vadd.f32 %v1305_v5, %v923_v33  ;;  %v1370_v62 = vmul.f32 %v978_v55, %v978_v55  ;;  %v981_v27 = vsub.f32 %v6060_v11, %v6009_v56  ;;  %v982_v0 = vsub.f32 %v6061_v49, %v6013_v35 }
 0x1b6   : > { %v1424_v60 = vadd.f32 %v1423_v15, %v1361_v44  ;;  %v1371_v26 = vmul.f32 %v979_v42, %v979_v42  ;;  %v1372_v36 = vmul.f32 %v980_v1, %v980_v1  ;;  %v983_v40 = vsub.f32 %v6062_v50, %v6017_v41 }
 0x1b7   : > { %1307 = vadd.xlane.f32.xlu0 %v1306_v38  ;;  %v1373_v31 = vmul.f32 %v981_v27, %v981_v27  ;;  %v984_v61 = vsub.f32 %v4617_v48, %v6021_v39  ;;  %v1374_v44 = vmul.f32 %v982_v0, %v982_v0  ;;  %v985_v56 = vsub.f32 %v4627_v17, %v6025_v53 }
 0x1b8   : > { %v1425_v3 = vadd.f32 %v1424_v60, %v1362_v46  ;;  %v1375_v5 = vmul.f32 %v983_v40, %v983_v40  ;;  %v986_v35 = vsub.f32 %v4637_v22, %v6029_v43  ;;  %v987_v41 = vsub.f32 %v4645_v10, %v6033_v24 }
 0x1b9   : > { %v1376_v13 = vmul.f32 %v984_v61, %v984_v61  ;;  %v1377_v15 = vmul.f32 %v985_v56, %v985_v56 }
 0x1ba   : > { %v1426_v52 = vadd.f32 %v1425_v3, %v1363_v7  ;;  %v1378_v47 = vmul.f32 %v986_v35, %v986_v35  ;;  %v1379_v39 = vmul.f32 %v987_v41, %v987_v41  ;;  %v1516_v3 = vpop.xlane.xlu1 %1515 }
 0x1bb   : > { %v1517_v20 = vrot.slane %v1516_v3, 4 }
 0x1bc   : > { %v1427_v29 = vadd.f32 %v1426_v52, %v1364_v8 }
 0x1bd   : > { %v1518_v24 = vadd.f32 %v1517_v20, %v1516_v3 }
 0x1be   : > { %v1428_v28 = vadd.f32 %v1427_v29, %v1365_v12 }
 0x1bf   : > { %v1519_v30 = vrot.slane %v1518_v24, 2 }
 0x1c0   : > { %v1429_v32 = vadd.f32 %v1428_v28, %v1366_v23  ;;  %v1524_v28 = vlaneseq }
 0x1c1   : > { %v1520_v37 = vadd.f32 %v1519_v30, %v1518_v24 }
 0x1c2   : > { %v1430_v2 = vadd.f32 %v1429_v32, %v1367_v19  ;;  %v1525_v4 = vand.u32 127, %v1524_v28 }
 0x1c3   : > { %v1521_v29 = vrot.slane %v1520_v37, 1 }
 0x1c4   : > { %v1431_v57 = vadd.f32 %v1430_v2, %v1368_v51  ;;  %vm1528_vm0 = vcmp.eq.s32.totalorder %v1525_v4, 2  ;;  %vm1527_vm15 = vcmp.eq.s32.totalorder %v1525_v4, 1  ;;  %vm1526_vm10 = vcmp.eq.s32.totalorder %v1525_v4, 0 }
 0x1c5   : > { %v1522_v19 = vadd.f32 %v1521_v29, %v1520_v37 }
 0x1c6   : > { %v1432_v63 = vadd.f32 %v1431_v57, %v1369_v16 }
 0x1c8   : > { %v1433_v33 = vadd.f32 %v1432_v63, %v1370_v62 }
 0x1ca   : > { %v1434_v59 = vadd.f32 %v1433_v33, %v1371_v26 }
 0x1cc   : > { %v1435_v45 = vadd.f32 %v1434_v59, %v1372_v36 }
 0x1ce   : > { %v1436_v25 = vadd.f32 %v1435_v45, %v1373_v31 }
 0x1d0   : > { %v1437_v46 = vadd.f32 %v1436_v25, %v1374_v44 }
 0x1d2   : > { %v1438_v38 = vadd.f32 %v1437_v46, %v1375_v5 }
 0x1d4   : > { %v1439_v14 = vadd.f32 %v1438_v38, %v1376_v13 }
 0x1d6   : > { %v1440_v48 = vadd.f32 %v1439_v14, %v1377_v15 }
 0x1d8   : > { %v1441_v7 = vadd.f32 %v1440_v48, %v1378_v47 }
 0x1da   : > { %v1442_v60 = vadd.f32 %v1441_v7, %v1379_v39 }
 0x1dc   : > { %1443 = vadd.xlane.f32.xlu0 %v1442_v60 }
 0x244   : > { %v1308_v53 = vpop.xlane.xlu0 %1307 }
 0x245   : > { %v1309_v17 = vrot.slane %v1308_v53, 4 }
 0x247   : > { %v1310_v54 = vadd.f32 %v1309_v17, %v1308_v53 }
 0x249   : > { %v1311_v6 = vrot.slane %v1310_v54, 2 }
 0x24b   : > { %v1312_v8 = vadd.f32 %v1311_v6, %v1310_v54 }
 0x24d   : > { %v1313_v43 = vrot.slane %v1312_v8, 1 }
 0x24f   : > { %v1314_v22 = vadd.f32 %v1313_v43, %v1312_v8 }
 0x251   : > { %1662 = vpush %v1314_v22 }
 0x269   : > { %v1444_v10 = vpop.xlane.xlu0 %1443 }
 0x26a   : > { %v1445_v12 = vrot.slane %v1444_v10, 4 }
 0x26c   : > { %v1446_v52 = vadd.f32 %v1445_v12, %v1444_v10 }
 0x26e   : > { %v1447_v21 = vrot.slane %v1446_v52, 2 }
 0x270   : > { %v1448_v23 = vadd.f32 %v1447_v21, %v1446_v52 }
 0x272   : > { %v1449_v18 = vrot.slane %v1448_v23, 1 }
 0x274   : > { %v1450_v34 = vadd.f32 %v1449_v18, %v1448_v23 }
 0x276   : > { %1664 = vpush %v1450_v34 }
 0x277   : > { %1666 = vpush %v1522_v19 }
 0x282   : > { %s1663_s5 = spop %1662 }
 0x283   : > { %v1533_v42 = vstv %s1663_s5 }
 0x2a7   : > { %s1665_s8 = spop %1664 }
 0x2a8   : > { %s1667_s28 = spop %1666  ;;  %v1531_v55 = vstv %s1665_s8 }
 0x2a9   : > { %v1529_v51 = vstv %s1667_s28 }
 0x2aa   : > { %v1530_v32 = vsel %vm1528_vm0, %v1529_v51, 0.0 }
 0x2ab   : > { %v1532_v9 = vsel %vm1527_vm15, %v1531_v55, %v1530_v32 }
 0x2ac   : > { %v1534_v16 = vsel %vm1526_vm10, %v1533_v42, %v1532_v9 }
 0x2ad   : > { %1535 = vst [vmem:[%s201_s24] sm:$0xff] %v1534_v16 }
 0x2ae   : > { %1859 = shalt.err (!%p1856_p11)
}
 0x2af   : > { %s1860_s30 = scalar_lea.hbm %s4693_s7, 128  ;;  %s1864_s26 = scalar_lea.hbm %s4738_s2, 512 }
 0x2b0   : > { %p1861_p7 = scmp.ne.s32.totalorder %s4693_s7, %s1860_s30  ;;  %p1865_p1 = scmp.lt.u32.totalorder %s4693_s7, %s4738_s2 }
 0x2b1   : > { %p1866_p3 = scmp.lt.u32.totalorder %s1864_s26, %s1860_s30  ;;  %p1868_p12 = scmp.lt.u32.totalorder %s1860_s30, %s4693_s7 }
 0x2b2   : > { %p1862_p8 = pnand %p1861_p7, %p6063_p0 }
 0x2b3   : > { %p1867_p6 = por %p1866_p3, %p1865_p1 }
 0x2b4   : > { %p1863_p13 = pneg %p1862_p8 }
 0x2b5   : > { %p1869_p2 = por %p1868_p12, %p1867_p6 }
 0x2b7   : > { %p1870_p9 = pnand %p1869_p2, %p1863_p13 }
 0x2b9   : > { %1873 = shalt.err (!%p1870_p9)
}
 0x2ba   : > { %1672 = dma.vmem_to_hbm [thread:$0]  (%p6063_p0), %s4695_s25, 128, %s4693_s7, %s1537_s13  }
 0x2bb PF: > { %p1686_p4 = scmp.ge.s32.totalorder %s1916_s12, 2  ;;  %s1562_s5 = sand.u32 1, %s1904_s9  }
 0x2bc   : > { %p6064_p5 = scmp.ne.s32.totalorder %s5148_s22, 0  ;;  %s1563_s8 = scalar_lea.sflag [#allocation4], %s1562_s5 }
 0x2be   : > { %p1682_p10 = pnand %p1686_p4, %p6064_p5 }
 0x2c0   : > { %1899 = dma.done.wait (!%p1682_p10), %s1563_s8, 128  }
 0x2c1   : > { %1901 = vsyncadd (!%p1682_p10), %s1563_s8, 4294967168  ;;  %p18_p11 = scmp.ge.s32.totalorder %s1964_s15, 6   ;;  %s6065_s9 = smov %s1908_s10 }
 0x2c2   : > { %s6066_s10 = smov %s1912_s11  ;;  %s6067_s11 = smov %s1976_s18 }
 0x2c3   : > { %s6068_s12 = smov %s1964_s15  ;;  %20 = sbr.rel (!%p18_p11) target bundleno = 7 (0x7), region = 86 }
 0x2ca   :  { %1568 = vsyncpa [#allocation3], 1 }
 0x2cb   :  { %1570 = vsyncpa [#allocation3 + $0x1], 1 }
 0x2cc   :  { %1571 = vsyncpa [#allocation6], 1 }
 0x2cd   :  { %1573 = vsyncpa [#allocation6 + $0x1], 1 }
 0x2ce   :  { %1574 = vsyncpa [#allocation4], 1 }
 0x2cf   :  { %1576 = vsyncpa [#allocation4 + $0x1], 1 }

</bundles_post_ra>
